<compile_context>
chip_gen: v7x
topology: tpu7x:2x2x1
jax: 0.10.0
libtpu: 0.0.40
codegen_flags: <defaults>
</compile_context>

<pallas_src>
import jax
import jax.numpy as jnp
from jax import lax
from jax.experimental import pallas as pl
from jax.experimental.pallas import tpu as pltpu

N_EMBED = 264
N_HEAD = 4
HEAD_SIZE = N_EMBED // N_HEAD      # 66
HP = 128                           # per-head padded width (lane aligned)
HIDDEN = 4 * N_EMBED               # 1056
PROJ_ROWS = N_HEAD * HP            # 512
QKV_COLS = 3 * PROJ_ROWS           # 1536
BLOCK_SIZE = 128                   # max sequence length (causal buffer size)
EPS = 1e-5                         # nn.LayerNorm default
NEG_BIG = -1e30                    # plain Python float (NOT a jnp scalar)


def _layernorm(x, gamma, beta):
    mu = jnp.mean(x, axis=-1, keepdims=True)
    var = jnp.mean((x - mu) ** 2, axis=-1, keepdims=True)  # biased, like torch
    return (x - mu) * lax.rsqrt(var + EPS) * gamma + beta


def _softmax_rows(a):
    m = jnp.max(a, axis=-1, keepdims=True)
    e = jnp.exp(a - m)
    return e * pl.reciprocal(jnp.sum(e, axis=-1, keepdims=True), approx=True)


def block_kernel(x_ref,
                 wqkv_ref, wproj_ref, bproj_ref,
                 g1_ref, b1_ref, g2_ref, b2_ref,
                 w1_ref, bm1_ref, w2_ref, bm2_ref,
                 o_ref,
                 attn_scratch):
    bb, T, D = x_ref.shape            # (BLOCK_BATCH, T, D)
    M = bb * T

    x = x_ref[...].reshape(M, D)      # fold batch into the MXU M dimension

    # ---- ln1 (f32) ----
    h = _layernorm(x, g1_ref[0], b1_ref[0])

    # ---- fused QKV projection: one MXU launch, bf16 operands, f32 accum ----
    # (head_size**-0.5 is pre-folded into the Wq third of wqkv host-side.)
    qkv = jnp.dot(h.astype(jnp.bfloat16), wqkv_ref[...],
                  preferred_element_type=jnp.float32)         # (M, 1536)

    q = qkv[:, 0:PROJ_ROWS].astype(jnp.bfloat16).reshape(bb, T, PROJ_ROWS)
    k = qkv[:, PROJ_ROWS:2 * PROJ_ROWS].astype(jnp.bfloat16).reshape(bb, T, PROJ_ROWS)
    v = qkv[:, 2 * PROJ_ROWS:3 * PROJ_ROWS].astype(jnp.bfloat16).reshape(bb, T, PROJ_ROWS)

    # additive causal mask, built once (0 where allowed, -1e30 where masked)
    rows = lax.broadcasted_iota(jnp.int32, (T, T), 0)
    cols = lax.broadcasted_iota(jnp.int32, (T, T), 1)
    mask = jnp.where(cols <= rows, 0.0, NEG_BIG).astype(jnp.float32)  # (T, T)

    # ---- per-head causal attention (128-lane-aligned slices), batched over bb ----
    for hh in range(N_HEAD):          # static unrolled loop over heads
        s = hh * HP
        qh = q[:, :, s:s + HP]        # (bb, T, HP)
        kh = k[:, :, s:s + HP]
        vh = v[:, :, s:s + HP]
        # q . k^T per sequence (contract last dims, batch over dim 0)
        aff = lax.dot_general(qh, kh, (((2,), (2,)), ((0,), (0,))),
                              preferred_element_type=jnp.float32)     # (bb, T, T)
        aff = aff + mask
        p = _softmax_rows(aff)
        head = lax.dot_general(p.astype(jnp.bfloat16), vh,
                               (((2,), (1,)), ((0,), (0,))),
                               preferred_element_type=jnp.float32)    # (bb, T, HP)
        # stream into lane-aligned scratch; only one head output stays live
        attn_scratch[:, :, s:s + HP] = head

    attn = attn_scratch[...].reshape(M, PROJ_ROWS).astype(jnp.bfloat16)

    # padded rows of wproj are zero, so the padded head lanes are inert
    sa = jnp.dot(attn, wproj_ref[...],
                 preferred_element_type=jnp.float32) + bproj_ref[0]
    x2 = x + sa                                                # residual 1

    # ---- ln2 + MLP ----
    h2 = _layernorm(x2, g2_ref[0], b2_ref[0])
    m = jnp.dot(h2.astype(jnp.bfloat16), w1_ref[...],
                preferred_element_type=jnp.float32) + bm1_ref[0]
    m = jnp.maximum(m, 0.0)
    m = jnp.dot(m.astype(jnp.bfloat16), w2_ref[...],
                preferred_element_type=jnp.float32) + bm2_ref[0]

    o_ref[...] = (x2 + m).reshape(bb, T, D).astype(o_ref.dtype)  # residual 2


def _pick_block_batch(B, T):
    """Largest divisor of B with block_batch*T <= 256 MXU rows, preferring to
    keep >= 2 grid steps so both v7x TensorCores get work."""
    divisors = [d for d in range(1, B + 1) if B % d == 0]
    fits = [d for d in divisors if d * T <= 256] or [1]
    pref = [d for d in fits if B // d >= 2]
    return max(pref) if pref else max(fits)


def transformer_block(x, fp, block_batch=None):
    B, T, D = x.shape
    assert D == N_EMBED
    assert T <= BLOCK_SIZE

    if block_batch is None:
        block_batch = _pick_block_batch(B, T)
    assert B % block_batch == 0
    n_steps = B // block_batch

    def full_spec(shape):
        return pl.BlockSpec(shape, lambda b: (0,) * len(shape))

    in_specs = [
        pl.BlockSpec((block_batch, T, D), lambda b: (b, 0, 0)),   # x
        full_spec((D, QKV_COLS)),                       # fused padded Wqkv (bf16)
        full_spec((PROJ_ROWS, D)),                      # padded Wproj (bf16)
        full_spec((1, D)),                              # bproj
        full_spec((1, D)),                              # ln1 gamma
        full_spec((1, D)),                              # ln1 beta
        full_spec((1, D)),                              # ln2 gamma
        full_spec((1, D)),                              # ln2 beta
        full_spec((D, HIDDEN)),                         # mlp W1 (bf16)
        full_spec((1, HIDDEN)),                         # mlp b1
        full_spec((HIDDEN, D)),                         # mlp W2 (bf16)
        full_spec((1, D)),                              # mlp b2
    ]

    return pl.pallas_call(
        block_kernel,
        out_shape=jax.ShapeDtypeStruct((B, T, D), jnp.float32),
        grid=(n_steps,),
        in_specs=in_specs,
        out_specs=pl.BlockSpec((block_batch, T, D), lambda b: (b, 0, 0)),
        scratch_shapes=[pltpu.VMEM((block_batch, T, PROJ_ROWS), jnp.float32)],
        compiler_params=pltpu.CompilerParams(
            dimension_semantics=("parallel",),
            # real footprint is a few MiB; 32 MiB is valid on v5e/v6e/v7x.
            vmem_limit_bytes=32 * 1024 * 1024,
        ),
    )(x, fp["wqkv"], fp["wproj"], fp["bproj"],
      fp["g1"], fp["b1"], fp["g2"], fp["b2"],
      fp["w1"], fp["bm1"], fp["w2"], fp["bm2"])


def init_params(key):
    """Raw parameters in the same layout as the PyTorch module (x @ W form)."""
    ks = jax.random.split(key, 8)
    scale = 0.02

    def rnd(k, shape):
        return (scale * jax.random.normal(k, shape)).astype(jnp.float32)

    return {
        "wq":    rnd(ks[0], (N_EMBED, N_EMBED)),
        "wk":    rnd(ks[1], (N_EMBED, N_EMBED)),
        "wv":    rnd(ks[2], (N_EMBED, N_EMBED)),
        "wproj": rnd(ks[3], (N_EMBED, N_EMBED)),
        "bproj": rnd(ks[4], (1, N_EMBED)),
        # LayerNorm default init: weight=1, bias=0
        "g1": jnp.ones((1, N_EMBED), jnp.float32),
        "b1": jnp.zeros((1, N_EMBED), jnp.float32),
        "g2": jnp.ones((1, N_EMBED), jnp.float32),
        "b2": jnp.zeros((1, N_EMBED), jnp.float32),
        "w1":  rnd(ks[5], (N_EMBED, HIDDEN)),
        "bm1": rnd(ks[6], (1, HIDDEN)),
        "w2":  rnd(ks[7], (HIDDEN, N_EMBED)),
        "bm2": jnp.zeros((1, N_EMBED), jnp.float32),
    }


def prepare_params(p):
    """One-time host-side prep: fuse QKV, fold attention scale into Wq,
    zero-pad heads 66->128 lanes, cast matmul weights to bf16."""
    attn_scale = HEAD_SIZE ** -0.5        # k.shape[-1]**-0.5 in the reference

    def pad_head_cols(w):                 # (D, D) -> (D, N_HEAD*HP)
        w = w.reshape(N_EMBED, N_HEAD, HEAD_SIZE)
        w = jnp.pad(w, ((0, 0), (0, 0), (0, HP - HEAD_SIZE)))
        return w.reshape(N_EMBED, N_HEAD * HP)

    wqkv = jnp.concatenate(
        [pad_head_cols(p["wq"] * attn_scale),   # scale folded in (f32, then bf16)
         pad_head_cols(p["wk"]),
         pad_head_cols(p["wv"])],
        axis=1).astype(jnp.bfloat16)            # (D, 1536)

    wproj = p["wproj"].reshape(N_HEAD, HEAD_SIZE, N_EMBED)
    wproj = jnp.pad(wproj, ((0, 0), (0, HP - HEAD_SIZE), (0, 0)))
    wproj = wproj.reshape(N_HEAD * HP, N_EMBED).astype(jnp.bfloat16)   # (512, D)

    return {
        "wqkv": wqkv, "wproj": wproj, "bproj": p["bproj"],
        "g1": p["g1"], "b1": p["b1"], "g2": p["g2"], "b2": p["b2"],
        "w1": p["w1"].astype(jnp.bfloat16), "bm1": p["bm1"],
        "w2": p["w2"].astype(jnp.bfloat16), "bm2": p["bm2"],
    }


if __name__ == "__main__":
    key = jax.random.PRNGKey(0)
    k_param, k_x = jax.random.split(key)

    B, T = 2, 16                              # T <= BLOCK_SIZE (128)
    raw_params = init_params(k_param)
    fused_params = jax.tree_util.tree_map(jax.block_until_ready,
                                          prepare_params(raw_params))
    x = jax.random.normal(k_x, (B, T, N_EMBED), dtype=jnp.float32)

    out = transformer_block(x, fused_params)
    out = jax.block_until_ready(out)
    assert out.shape == (B, T, N_EMBED)
    assert bool(jnp.all(jnp.isfinite(out)))
    print("KERNEL_OK")
</pallas_src>

<mosaic_0001>
module attributes {stable_mosaic.version = 11 : i64} {
  func.func @block_kernel(%arg0: i32, %arg1: memref<1x16x264xf32, #tpu.memory_space<vmem>>, %arg2: memref<264x1536xbf16, #tpu.memory_space<vmem>>, %arg3: memref<512x264xbf16, #tpu.memory_space<vmem>>, %arg4: memref<1x264xf32, #tpu.memory_space<vmem>>, %arg5: memref<1x264xf32, #tpu.memory_space<vmem>>, %arg6: memref<1x264xf32, #tpu.memory_space<vmem>>, %arg7: memref<1x264xf32, #tpu.memory_space<vmem>>, %arg8: memref<1x264xf32, #tpu.memory_space<vmem>>, %arg9: memref<264x1056xbf16, #tpu.memory_space<vmem>>, %arg10: memref<1x1056xf32, #tpu.memory_space<vmem>>, %arg11: memref<1056x264xbf16, #tpu.memory_space<vmem>>, %arg12: memref<1x264xf32, #tpu.memory_space<vmem>>, %arg13: memref<1x16x264xf32, #tpu.memory_space<vmem>>, %arg14: memref<1x16x512xf32, #tpu.memory_space<vmem>>) attributes {dimension_semantics = [#tpu.dimension_semantics<parallel>], iteration_bounds = array<i64: 2>, scalar_prefetch = 0 : i64, scratch_operands = 1 : i64, tpu.core_type = #tpu.core_type<tc>, window_params = [{transform_indices = @transform_0, window_bounds = array<i64: 1, 16, 264>}, {pipeline_mode = #tpu.pipeline_mode<synchronous>, transform_indices = @transform_1, window_bounds = array<i64: 264, 1536>}, {pipeline_mode = #tpu.pipeline_mode<synchronous>, transform_indices = @transform_2, window_bounds = array<i64: 512, 264>}, {pipeline_mode = #tpu.pipeline_mode<synchronous>, transform_indices = @transform_3, window_bounds = array<i64: 1, 264>}, {pipeline_mode = #tpu.pipeline_mode<synchronous>, transform_indices = @transform_4, window_bounds = array<i64: 1, 264>}, {pipeline_mode = #tpu.pipeline_mode<synchronous>, transform_indices = @transform_5, window_bounds = array<i64: 1, 264>}, {pipeline_mode = #tpu.pipeline_mode<synchronous>, transform_indices = @transform_6, window_bounds = array<i64: 1, 264>}, {pipeline_mode = #tpu.pipeline_mode<synchronous>, transform_indices = @transform_7, window_bounds = array<i64: 1, 264>}, {pipeline_mode = #tpu.pipeline_mode<synchronous>, transform_indices = @transform_8, window_bounds = array<i64: 264, 1056>}, {pipeline_mode = #tpu.pipeline_mode<synchronous>, transform_indices = @transform_9, window_bounds = array<i64: 1, 1056>}, {pipeline_mode = #tpu.pipeline_mode<synchronous>, transform_indices = @transform_10, window_bounds = array<i64: 1056, 264>}, {pipeline_mode = #tpu.pipeline_mode<synchronous>, transform_indices = @transform_11, window_bounds = array<i64: 1, 264>}, {transform_indices = @transform_12, window_bounds = array<i64: 1, 16, 264>}]} {
    %c0 = arith.constant 0 : index
    %c0_0 = arith.constant 0 : index
    %c0_1 = arith.constant 0 : index
    %0 = vector.load %arg1[%c0, %c0_0, %c0_1] : memref<1x16x264xf32, #tpu.memory_space<vmem>>, vector<1x16x264xf32>
    %1 = vector.shape_cast %0 : vector<1x16x264xf32> to vector<16x264xf32>
    %c0_2 = arith.constant 0 : index
    %c0_3 = arith.constant 0 : index
    %2 = vector.load %arg5[%c0_2, %c0_3] : memref<1x264xf32, #tpu.memory_space<vmem>>, vector<1x264xf32>
    %3 = vector.shape_cast %2 : vector<1x264xf32> to vector<264xf32>
    %c0_4 = arith.constant 0 : index
    %c0_5 = arith.constant 0 : index
    %4 = vector.load %arg6[%c0_4, %c0_5] : memref<1x264xf32, #tpu.memory_space<vmem>>, vector<1x264xf32>
    %5 = vector.shape_cast %4 : vector<1x264xf32> to vector<264xf32>
    %cst = arith.constant dense<0.000000e+00> : vector<16xf32>
    %6 = vector.multi_reduction <add>, %1, %cst [1] : vector<16x264xf32> to vector<16xf32>
    %7 = vector.shape_cast %6 : vector<16xf32> to vector<16x1xf32>
    %cst_6 = arith.constant 2.640000e+02 : f32
    %8 = vector.broadcast %cst_6 : f32 to vector<16x1xf32>
    %9 = arith.divf %7, %8 : vector<16x1xf32>
    %10 = vector.broadcast %9 : vector<16x1xf32> to vector<16x264xf32>
    %11 = arith.subf %1, %10 : vector<16x264xf32>
    %12 = arith.mulf %11, %11 : vector<16x264xf32>
    %cst_7 = arith.constant dense<0.000000e+00> : vector<16xf32>
    %13 = vector.multi_reduction <add>, %12, %cst_7 [1] : vector<16x264xf32> to vector<16xf32>
    %14 = vector.shape_cast %13 : vector<16xf32> to vector<16x1xf32>
    %cst_8 = arith.constant 2.640000e+02 : f32
    %15 = vector.broadcast %cst_8 : f32 to vector<16x1xf32>
    %16 = arith.divf %14, %15 : vector<16x1xf32>
    %17 = vector.broadcast %9 : vector<16x1xf32> to vector<16x264xf32>
    %18 = arith.subf %1, %17 : vector<16x264xf32>
    %cst_9 = arith.constant 9.99999974E-6 : f32
    %19 = vector.broadcast %cst_9 : f32 to vector<16x1xf32>
    %20 = arith.addf %16, %19 : vector<16x1xf32>
    %21 = math.rsqrt %20 : vector<16x1xf32>
    %22 = vector.broadcast %21 : vector<16x1xf32> to vector<16x264xf32>
    %23 = arith.mulf %18, %22 : vector<16x264xf32>
    %24 = vector.shape_cast %3 : vector<264xf32> to vector<1x264xf32>
    %25 = vector.broadcast %24 : vector<1x264xf32> to vector<16x264xf32>
    %26 = arith.mulf %23, %25 : vector<16x264xf32>
    %27 = vector.shape_cast %5 : vector<264xf32> to vector<1x264xf32>
    %28 = vector.broadcast %27 : vector<1x264xf32> to vector<16x264xf32>
    %29 = arith.addf %26, %28 : vector<16x264xf32>
    %30 = arith.truncf %29 : vector<16x264xf32> to vector<16x264xbf16>
    %c0_10 = arith.constant 0 : index
    %c0_11 = arith.constant 0 : index
    %31 = vector.load %arg2[%c0_10, %c0_11] : memref<264x1536xbf16, #tpu.memory_space<vmem>>, vector<264x1536xbf16>
    %cst_12 = arith.constant dense<0.000000e+00> : vector<16x1536xf32>
    %32 = tpu.matmul %30, %31, %cst_12 {dimension_numbers = #tpu.dot_dimension_numbers<[1], [0], [0], [1], [0, 0, 1, 1], [], []>} : vector<16x264xbf16>, vector<264x1536xbf16>, vector<16x1536xf32> -> vector<16x1536xf32>
    %33 = vector.extract_strided_slice %32 {offsets = [0, 0], sizes = [16, 512], strides = [1, 1]} : vector<16x1536xf32> to vector<16x512xf32>
    %34 = arith.truncf %33 : vector<16x512xf32> to vector<16x512xbf16>
    %35 = vector.shape_cast %34 : vector<16x512xbf16> to vector<1x16x512xbf16>
    %36 = vector.extract_strided_slice %32 {offsets = [0, 512], sizes = [16, 512], strides = [1, 1]} : vector<16x1536xf32> to vector<16x512xf32>
    %37 = arith.truncf %36 : vector<16x512xf32> to vector<16x512xbf16>
    %38 = vector.shape_cast %37 : vector<16x512xbf16> to vector<1x16x512xbf16>
    %39 = vector.extract_strided_slice %32 {offsets = [0, 1024], sizes = [16, 512], strides = [1, 1]} : vector<16x1536xf32> to vector<16x512xf32>
    %40 = arith.truncf %39 : vector<16x512xf32> to vector<16x512xbf16>
    %41 = vector.shape_cast %40 : vector<16x512xbf16> to vector<1x16x512xbf16>
    %42 = tpu.iota {dimensions = array<i32: 0>} : vector<16x16xi32>
    %43 = tpu.iota {dimensions = array<i32: 1>} : vector<16x16xi32>
    %44 = arith.cmpi sle, %43, %42 : vector<16x16xi32>
    %cst_13 = arith.constant 0.000000e+00 : f32
    %cst_14 = arith.constant -1.000000e+30 : f32
    %45 = vector.broadcast %cst_13 : f32 to vector<16x16xf32>
    %46 = vector.broadcast %cst_14 : f32 to vector<16x16xf32>
    %47 = arith.select %44, %45, %46 : vector<16x16xi1>, vector<16x16xf32>
    %48 = vector.extract_strided_slice %35 {offsets = [0, 0, 0], sizes = [1, 16, 128], strides = [1, 1, 1]} : vector<1x16x512xbf16> to vector<1x16x128xbf16>
    %49 = vector.extract_strided_slice %38 {offsets = [0, 0, 0], sizes = [1, 16, 128], strides = [1, 1, 1]} : vector<1x16x512xbf16> to vector<1x16x128xbf16>
    %50 = vector.extract_strided_slice %41 {offsets = [0, 0, 0], sizes = [1, 16, 128], strides = [1, 1, 1]} : vector<1x16x512xbf16> to vector<1x16x128xbf16>
    %cst_15 = arith.constant dense<0.000000e+00> : vector<1x16x16xf32>
    %51 = tpu.matmul %48, %49, %cst_15 {dimension_numbers = #tpu.dot_dimension_numbers<[2], [2], [1], [1], [0, 0, 0, 1, 1, 1], [0], [0]>} : vector<1x16x128xbf16>, vector<1x16x128xbf16>, vector<1x16x16xf32> -> vector<1x16x16xf32>
    %52 = vector.shape_cast %47 : vector<16x16xf32> to vector<1x16x16xf32>
    %53 = arith.addf %51, %52 : vector<1x16x16xf32>
    %cst_16 = arith.constant dense<0xFF800000> : vector<1x16xf32>
    %54 = vector.multi_reduction <maximumf>, %53, %cst_16 [2] : vector<1x16x16xf32> to vector<1x16xf32>
    %55 = vector.shape_cast %54 : vector<1x16xf32> to vector<1x16x1xf32>
    %56 = vector.broadcast %55 : vector<1x16x1xf32> to vector<1x16x16xf32>
    %57 = arith.subf %53, %56 : vector<1x16x16xf32>
    %58 = math.exp %57 : vector<1x16x16xf32>
    %cst_17 = arith.constant dense<0.000000e+00> : vector<1x16xf32>
    %59 = vector.multi_reduction <add>, %58, %cst_17 [2] : vector<1x16x16xf32> to vector<1x16xf32>
    %60 = vector.shape_cast %59 : vector<1x16xf32> to vector<1x16x1xf32>
    %61 = tpu.reciprocal %60 {approx = true} : vector<1x16x1xf32> -> vector<1x16x1xf32>
    %62 = vector.broadcast %61 : vector<1x16x1xf32> to vector<1x16x16xf32>
    %63 = arith.mulf %58, %62 : vector<1x16x16xf32>
    %64 = arith.truncf %63 : vector<1x16x16xf32> to vector<1x16x16xbf16>
    %cst_18 = arith.constant dense<0.000000e+00> : vector<1x16x128xf32>
    %65 = tpu.matmul %64, %50, %cst_18 {dimension_numbers = #tpu.dot_dimension_numbers<[2], [1], [1], [2], [0, 0, 0, 1, 1, 2], [0], [0]>} : vector<1x16x16xbf16>, vector<1x16x128xbf16>, vector<1x16x128xf32> -> vector<1x16x128xf32>
    %c0_19 = arith.constant 0 : index
    %c0_20 = arith.constant 0 : index
    %c0_21 = arith.constant 0 : index
    %66 = vector.load %arg14[%c0_19, %c0_20, %c0_21] : memref<1x16x512xf32, #tpu.memory_space<vmem>>, vector<1x16x128xf32>
    tpu.vector_store %arg14[%c0_19, %c0_20, %c0_21], %65 {strides = array<i32>} : memref<1x16x512xf32, #tpu.memory_space<vmem>>, vector<1x16x128xf32>,
    %67 = vector.extract_strided_slice %35 {offsets = [0, 0, 128], sizes = [1, 16, 128], strides = [1, 1, 1]} : vector<1x16x512xbf16> to vector<1x16x128xbf16>
    %68 = vector.extract_strided_slice %38 {offsets = [0, 0, 128], sizes = [1, 16, 128], strides = [1, 1, 1]} : vector<1x16x512xbf16> to vector<1x16x128xbf16>
    %69 = vector.extract_strided_slice %41 {offsets = [0, 0, 128], sizes = [1, 16, 128], strides = [1, 1, 1]} : vector<1x16x512xbf16> to vector<1x16x128xbf16>
    %cst_22 = arith.constant dense<0.000000e+00> : vector<1x16x16xf32>
    %70 = tpu.matmul %67, %68, %cst_22 {dimension_numbers = #tpu.dot_dimension_numbers<[2], [2], [1], [1], [0, 0, 0, 1, 1, 1], [0], [0]>} : vector<1x16x128xbf16>, vector<1x16x128xbf16>, vector<1x16x16xf32> -> vector<1x16x16xf32>
    %71 = vector.shape_cast %47 : vector<16x16xf32> to vector<1x16x16xf32>
    %72 = arith.addf %70, %71 : vector<1x16x16xf32>
    %cst_23 = arith.constant dense<0xFF800000> : vector<1x16xf32>
    %73 = vector.multi_reduction <maximumf>, %72, %cst_23 [2] : vector<1x16x16xf32> to vector<1x16xf32>
    %74 = vector.shape_cast %73 : vector<1x16xf32> to vector<1x16x1xf32>
    %75 = vector.broadcast %74 : vector<1x16x1xf32> to vector<1x16x16xf32>
    %76 = arith.subf %72, %75 : vector<1x16x16xf32>
    %77 = math.exp %76 : vector<1x16x16xf32>
    %cst_24 = arith.constant dense<0.000000e+00> : vector<1x16xf32>
    %78 = vector.multi_reduction <add>, %77, %cst_24 [2] : vector<1x16x16xf32> to vector<1x16xf32>
    %79 = vector.shape_cast %78 : vector<1x16xf32> to vector<1x16x1xf32>
    %80 = tpu.reciprocal %79 {approx = true} : vector<1x16x1xf32> -> vector<1x16x1xf32>
    %81 = vector.broadcast %80 : vector<1x16x1xf32> to vector<1x16x16xf32>
    %82 = arith.mulf %77, %81 : vector<1x16x16xf32>
    %83 = arith.truncf %82 : vector<1x16x16xf32> to vector<1x16x16xbf16>
    %cst_25 = arith.constant dense<0.000000e+00> : vector<1x16x128xf32>
    %84 = tpu.matmul %83, %69, %cst_25 {dimension_numbers = #tpu.dot_dimension_numbers<[2], [1], [1], [2], [0, 0, 0, 1, 1, 2], [0], [0]>} : vector<1x16x16xbf16>, vector<1x16x128xbf16>, vector<1x16x128xf32> -> vector<1x16x128xf32>
    %c0_26 = arith.constant 0 : index
    %c0_27 = arith.constant 0 : index
    %c128 = arith.constant 128 : index
    %85 = vector.load %arg14[%c0_26, %c0_27, %c128] : memref<1x16x512xf32, #tpu.memory_space<vmem>>, vector<1x16x128xf32>
    tpu.vector_store %arg14[%c0_26, %c0_27, %c128], %84 {strides = array<i32>} : memref<1x16x512xf32, #tpu.memory_space<vmem>>, vector<1x16x128xf32>,
    %86 = vector.extract_strided_slice %35 {offsets = [0, 0, 256], sizes = [1, 16, 128], strides = [1, 1, 1]} : vector<1x16x512xbf16> to vector<1x16x128xbf16>
    %87 = vector.extract_strided_slice %38 {offsets = [0, 0, 256], sizes = [1, 16, 128], strides = [1, 1, 1]} : vector<1x16x512xbf16> to vector<1x16x128xbf16>
    %88 = vector.extract_strided_slice %41 {offsets = [0, 0, 256], sizes = [1, 16, 128], strides = [1, 1, 1]} : vector<1x16x512xbf16> to vector<1x16x128xbf16>
    %cst_28 = arith.constant dense<0.000000e+00> : vector<1x16x16xf32>
    %89 = tpu.matmul %86, %87, %cst_28 {dimension_numbers = #tpu.dot_dimension_numbers<[2], [2], [1], [1], [0, 0, 0, 1, 1, 1], [0], [0]>} : vector<1x16x128xbf16>, vector<1x16x128xbf16>, vector<1x16x16xf32> -> vector<1x16x16xf32>
    %90 = vector.shape_cast %47 : vector<16x16xf32> to vector<1x16x16xf32>
    %91 = arith.addf %89, %90 : vector<1x16x16xf32>
    %cst_29 = arith.constant dense<0xFF800000> : vector<1x16xf32>
    %92 = vector.multi_reduction <maximumf>, %91, %cst_29 [2] : vector<1x16x16xf32> to vector<1x16xf32>
    %93 = vector.shape_cast %92 : vector<1x16xf32> to vector<1x16x1xf32>
    %94 = vector.broadcast %93 : vector<1x16x1xf32> to vector<1x16x16xf32>
    %95 = arith.subf %91, %94 : vector<1x16x16xf32>
    %96 = math.exp %95 : vector<1x16x16xf32>
    %cst_30 = arith.constant dense<0.000000e+00> : vector<1x16xf32>
    %97 = vector.multi_reduction <add>, %96, %cst_30 [2] : vector<1x16x16xf32> to vector<1x16xf32>
    %98 = vector.shape_cast %97 : vector<1x16xf32> to vector<1x16x1xf32>
    %99 = tpu.reciprocal %98 {approx = true} : vector<1x16x1xf32> -> vector<1x16x1xf32>
    %100 = vector.broadcast %99 : vector<1x16x1xf32> to vector<1x16x16xf32>
    %101 = arith.mulf %96, %100 : vector<1x16x16xf32>
    %102 = arith.truncf %101 : vector<1x16x16xf32> to vector<1x16x16xbf16>
    %cst_31 = arith.constant dense<0.000000e+00> : vector<1x16x128xf32>
    %103 = tpu.matmul %102, %88, %cst_31 {dimension_numbers = #tpu.dot_dimension_numbers<[2], [1], [1], [2], [0, 0, 0, 1, 1, 2], [0], [0]>} : vector<1x16x16xbf16>, vector<1x16x128xbf16>, vector<1x16x128xf32> -> vector<1x16x128xf32>
    %c0_32 = arith.constant 0 : index
    %c0_33 = arith.constant 0 : index
    %c256 = arith.constant 256 : index
    %104 = vector.load %arg14[%c0_32, %c0_33, %c256] : memref<1x16x512xf32, #tpu.memory_space<vmem>>, vector<1x16x128xf32>
    tpu.vector_store %arg14[%c0_32, %c0_33, %c256], %103 {strides = array<i32>} : memref<1x16x512xf32, #tpu.memory_space<vmem>>, vector<1x16x128xf32>,
    %105 = vector.extract_strided_slice %35 {offsets = [0, 0, 384], sizes = [1, 16, 128], strides = [1, 1, 1]} : vector<1x16x512xbf16> to vector<1x16x128xbf16>
    %106 = vector.extract_strided_slice %38 {offsets = [0, 0, 384], sizes = [1, 16, 128], strides = [1, 1, 1]} : vector<1x16x512xbf16> to vector<1x16x128xbf16>
    %107 = vector.extract_strided_slice %41 {offsets = [0, 0, 384], sizes = [1, 16, 128], strides = [1, 1, 1]} : vector<1x16x512xbf16> to vector<1x16x128xbf16>
    %cst_34 = arith.constant dense<0.000000e+00> : vector<1x16x16xf32>
    %108 = tpu.matmul %105, %106, %cst_34 {dimension_numbers = #tpu.dot_dimension_numbers<[2], [2], [1], [1], [0, 0, 0, 1, 1, 1], [0], [0]>} : vector<1x16x128xbf16>, vector<1x16x128xbf16>, vector<1x16x16xf32> -> vector<1x16x16xf32>
    %109 = vector.shape_cast %47 : vector<16x16xf32> to vector<1x16x16xf32>
    %110 = arith.addf %108, %109 : vector<1x16x16xf32>
    %cst_35 = arith.constant dense<0xFF800000> : vector<1x16xf32>
    %111 = vector.multi_reduction <maximumf>, %110, %cst_35 [2] : vector<1x16x16xf32> to vector<1x16xf32>
    %112 = vector.shape_cast %111 : vector<1x16xf32> to vector<1x16x1xf32>
    %113 = vector.broadcast %112 : vector<1x16x1xf32> to vector<1x16x16xf32>
    %114 = arith.subf %110, %113 : vector<1x16x16xf32>
    %115 = math.exp %114 : vector<1x16x16xf32>
    %cst_36 = arith.constant dense<0.000000e+00> : vector<1x16xf32>
    %116 = vector.multi_reduction <add>, %115, %cst_36 [2] : vector<1x16x16xf32> to vector<1x16xf32>
    %117 = vector.shape_cast %116 : vector<1x16xf32> to vector<1x16x1xf32>
    %118 = tpu.reciprocal %117 {approx = true} : vector<1x16x1xf32> -> vector<1x16x1xf32>
    %119 = vector.broadcast %118 : vector<1x16x1xf32> to vector<1x16x16xf32>
    %120 = arith.mulf %115, %119 : vector<1x16x16xf32>
    %121 = arith.truncf %120 : vector<1x16x16xf32> to vector<1x16x16xbf16>
    %cst_37 = arith.constant dense<0.000000e+00> : vector<1x16x128xf32>
    %122 = tpu.matmul %121, %107, %cst_37 {dimension_numbers = #tpu.dot_dimension_numbers<[2], [1], [1], [2], [0, 0, 0, 1, 1, 2], [0], [0]>} : vector<1x16x16xbf16>, vector<1x16x128xbf16>, vector<1x16x128xf32> -> vector<1x16x128xf32>
    %c0_38 = arith.constant 0 : index
    %c0_39 = arith.constant 0 : index
    %c384 = arith.constant 384 : index
    %123 = vector.load %arg14[%c0_38, %c0_39, %c384] : memref<1x16x512xf32, #tpu.memory_space<vmem>>, vector<1x16x128xf32>
    tpu.vector_store %arg14[%c0_38, %c0_39, %c384], %122 {strides = array<i32>} : memref<1x16x512xf32, #tpu.memory_space<vmem>>, vector<1x16x128xf32>,
    %c0_40 = arith.constant 0 : index
    %c0_41 = arith.constant 0 : index
    %c0_42 = arith.constant 0 : index
    %124 = vector.load %arg14[%c0_40, %c0_41, %c0_42] : memref<1x16x512xf32, #tpu.memory_space<vmem>>, vector<1x16x512xf32>
    %125 = vector.shape_cast %124 : vector<1x16x512xf32> to vector<16x512xf32>
    %126 = arith.truncf %125 : vector<16x512xf32> to vector<16x512xbf16>
    %c0_43 = arith.constant 0 : index
    %c0_44 = arith.constant 0 : index
    %127 = vector.load %arg3[%c0_43, %c0_44] : memref<512x264xbf16, #tpu.memory_space<vmem>>, vector<512x264xbf16>
    %cst_45 = arith.constant dense<0.000000e+00> : vector<16x264xf32>
    %128 = tpu.matmul %126, %127, %cst_45 {dimension_numbers = #tpu.dot_dimension_numbers<[1], [0], [0], [1], [0, 0, 1, 1], [], []>} : vector<16x512xbf16>, vector<512x264xbf16>, vector<16x264xf32> -> vector<16x264xf32>
    %c0_46 = arith.constant 0 : index
    %c0_47 = arith.constant 0 : index
    %129 = vector.load %arg4[%c0_46, %c0_47] : memref<1x264xf32, #tpu.memory_space<vmem>>, vector<1x264xf32>
    %130 = vector.shape_cast %129 : vector<1x264xf32> to vector<264xf32>
    %131 = vector.shape_cast %130 : vector<264xf32> to vector<1x264xf32>
    %132 = vector.broadcast %131 : vector<1x264xf32> to vector<16x264xf32>
    %133 = arith.addf %128, %132 : vector<16x264xf32>
    %134 = arith.addf %1, %133 : vector<16x264xf32>
    %c0_48 = arith.constant 0 : index
    %c0_49 = arith.constant 0 : index
    %135 = vector.load %arg7[%c0_48, %c0_49] : memref<1x264xf32, #tpu.memory_space<vmem>>, vector<1x264xf32>
    %136 = vector.shape_cast %135 : vector<1x264xf32> to vector<264xf32>
    %c0_50 = arith.constant 0 : index
    %c0_51 = arith.constant 0 : index
    %137 = vector.load %arg8[%c0_50, %c0_51] : memref<1x264xf32, #tpu.memory_space<vmem>>, vector<1x264xf32>
    %138 = vector.shape_cast %137 : vector<1x264xf32> to vector<264xf32>
    %cst_52 = arith.constant dense<0.000000e+00> : vector<16xf32>
    %139 = vector.multi_reduction <add>, %134, %cst_52 [1] : vector<16x264xf32> to vector<16xf32>
    %140 = vector.shape_cast %139 : vector<16xf32> to vector<16x1xf32>
    %cst_53 = arith.constant 2.640000e+02 : f32
    %141 = vector.broadcast %cst_53 : f32 to vector<16x1xf32>
    %142 = arith.divf %140, %141 : vector<16x1xf32>
    %143 = vector.broadcast %142 : vector<16x1xf32> to vector<16x264xf32>
    %144 = arith.subf %134, %143 : vector<16x264xf32>
    %145 = arith.mulf %144, %144 : vector<16x264xf32>
    %cst_54 = arith.constant dense<0.000000e+00> : vector<16xf32>
    %146 = vector.multi_reduction <add>, %145, %cst_54 [1] : vector<16x264xf32> to vector<16xf32>
    %147 = vector.shape_cast %146 : vector<16xf32> to vector<16x1xf32>
    %cst_55 = arith.constant 2.640000e+02 : f32
    %148 = vector.broadcast %cst_55 : f32 to vector<16x1xf32>
    %149 = arith.divf %147, %148 : vector<16x1xf32>
    %150 = vector.broadcast %142 : vector<16x1xf32> to vector<16x264xf32>
    %151 = arith.subf %134, %150 : vector<16x264xf32>
    %cst_56 = arith.constant 9.99999974E-6 : f32
    %152 = vector.broadcast %cst_56 : f32 to vector<16x1xf32>
    %153 = arith.addf %149, %152 : vector<16x1xf32>
    %154 = math.rsqrt %153 : vector<16x1xf32>
    %155 = vector.broadcast %154 : vector<16x1xf32> to vector<16x264xf32>
    %156 = arith.mulf %151, %155 : vector<16x264xf32>
    %157 = vector.shape_cast %136 : vector<264xf32> to vector<1x264xf32>
    %158 = vector.broadcast %157 : vector<1x264xf32> to vector<16x264xf32>
    %159 = arith.mulf %156, %158 : vector<16x264xf32>
    %160 = vector.shape_cast %138 : vector<264xf32> to vector<1x264xf32>
    %161 = vector.broadcast %160 : vector<1x264xf32> to vector<16x264xf32>
    %162 = arith.addf %159, %161 : vector<16x264xf32>
    %163 = arith.truncf %162 : vector<16x264xf32> to vector<16x264xbf16>
    %c0_57 = arith.constant 0 : index
    %c0_58 = arith.constant 0 : index
    %164 = vector.load %arg9[%c0_57, %c0_58] : memref<264x1056xbf16, #tpu.memory_space<vmem>>, vector<264x1056xbf16>
    %cst_59 = arith.constant dense<0.000000e+00> : vector<16x1056xf32>
    %165 = tpu.matmul %163, %164, %cst_59 {dimension_numbers = #tpu.dot_dimension_numbers<[1], [0], [0], [1], [0, 0, 1, 1], [], []>} : vector<16x264xbf16>, vector<264x1056xbf16>, vector<16x1056xf32> -> vector<16x1056xf32>
    %c0_60 = arith.constant 0 : index
    %c0_61 = arith.constant 0 : index
    %166 = vector.load %arg10[%c0_60, %c0_61] : memref<1x1056xf32, #tpu.memory_space<vmem>>, vector<1x1056xf32>
    %167 = vector.shape_cast %166 : vector<1x1056xf32> to vector<1056xf32>
    %168 = vector.shape_cast %167 : vector<1056xf32> to vector<1x1056xf32>
    %169 = vector.broadcast %168 : vector<1x1056xf32> to vector<16x1056xf32>
    %170 = arith.addf %165, %169 : vector<16x1056xf32>
    %cst_62 = arith.constant 0.000000e+00 : f32
    %171 = vector.broadcast %cst_62 : f32 to vector<16x1056xf32>
    %172 = arith.maximumf %170, %171 : vector<16x1056xf32>
    %173 = arith.truncf %172 : vector<16x1056xf32> to vector<16x1056xbf16>
    %c0_63 = arith.constant 0 : index
    %c0_64 = arith.constant 0 : index
    %174 = vector.load %arg11[%c0_63, %c0_64] : memref<1056x264xbf16, #tpu.memory_space<vmem>>, vector<1056x264xbf16>
    %cst_65 = arith.constant dense<0.000000e+00> : vector<16x264xf32>
    %175 = tpu.matmul %173, %174, %cst_65 {dimension_numbers = #tpu.dot_dimension_numbers<[1], [0], [0], [1], [0, 0, 1, 1], [], []>} : vector<16x1056xbf16>, vector<1056x264xbf16>, vector<16x264xf32> -> vector<16x264xf32>
    %c0_66 = arith.constant 0 : index
    %c0_67 = arith.constant 0 : index
    %176 = vector.load %arg12[%c0_66, %c0_67] : memref<1x264xf32, #tpu.memory_space<vmem>>, vector<1x264xf32>
    %177 = vector.shape_cast %176 : vector<1x264xf32> to vector<264xf32>
    %178 = vector.shape_cast %177 : vector<264xf32> to vector<1x264xf32>
    %179 = vector.broadcast %178 : vector<1x264xf32> to vector<16x264xf32>
    %180 = arith.addf %175, %179 : vector<16x264xf32>
    %181 = arith.addf %134, %180 : vector<16x264xf32>
    %182 = vector.shape_cast %181 : vector<16x264xf32> to vector<1x16x264xf32>
    %c0_68 = arith.constant 0 : index
    %c0_69 = arith.constant 0 : index
    %c0_70 = arith.constant 0 : index
    %183 = vector.load %arg13[%c0_68, %c0_69, %c0_70] : memref<1x16x264xf32, #tpu.memory_space<vmem>>, vector<1x16x264xf32>
    tpu.vector_store %arg13[%c0_68, %c0_69, %c0_70], %182 {strides = array<i32>} : memref<1x16x264xf32, #tpu.memory_space<vmem>>, vector<1x16x264xf32>,
    return
  }
  func.func @transform_0(%arg0: i32) -> (i32, i32, i32) {
    %c0_i32 = arith.constant 0 : i32
    %c0_i32_0 = arith.constant 0 : i32
    %c0_i32_1 = arith.constant 0 : i32
    return %arg0, %c0_i32, %c0_i32_0 : i32, i32, i32
  }
  func.func @transform_1(%arg0: i32) -> (i32, i32) {
    %c0_i32 = arith.constant 0 : i32
    %c0_i32_0 = arith.constant 0 : i32
    %c0_i32_1 = arith.constant 0 : i32
    return %c0_i32, %c0_i32_0 : i32, i32
  }
  func.func @transform_2(%arg0: i32) -> (i32, i32) {
    %c0_i32 = arith.constant 0 : i32
    %c0_i32_0 = arith.constant 0 : i32
    %c0_i32_1 = arith.constant 0 : i32
    return %c0_i32, %c0_i32_0 : i32, i32
  }
  func.func @transform_3(%arg0: i32) -> (i32, i32) {
    %c0_i32 = arith.constant 0 : i32
    %c0_i32_0 = arith.constant 0 : i32
    %c0_i32_1 = arith.constant 0 : i32
    return %c0_i32, %c0_i32_0 : i32, i32
  }
  func.func @transform_4(%arg0: i32) -> (i32, i32) {
    %c0_i32 = arith.constant 0 : i32
    %c0_i32_0 = arith.constant 0 : i32
    %c0_i32_1 = arith.constant 0 : i32
    return %c0_i32, %c0_i32_0 : i32, i32
  }
  func.func @transform_5(%arg0: i32) -> (i32, i32) {
    %c0_i32 = arith.constant 0 : i32
    %c0_i32_0 = arith.constant 0 : i32
    %c0_i32_1 = arith.constant 0 : i32
    return %c0_i32, %c0_i32_0 : i32, i32
  }
  func.func @transform_6(%arg0: i32) -> (i32, i32) {
    %c0_i32 = arith.constant 0 : i32
    %c0_i32_0 = arith.constant 0 : i32
    %c0_i32_1 = arith.constant 0 : i32
    return %c0_i32, %c0_i32_0 : i32, i32
  }
  func.func @transform_7(%arg0: i32) -> (i32, i32) {
    %c0_i32 = arith.constant 0 : i32
    %c0_i32_0 = arith.constant 0 : i32
    %c0_i32_1 = arith.constant 0 : i32
    return %c0_i32, %c0_i32_0 : i32, i32
  }
  func.func @transform_8(%arg0: i32) -> (i32, i32) {
    %c0_i32 = arith.constant 0 : i32
    %c0_i32_0 = arith.constant 0 : i32
    %c0_i32_1 = arith.constant 0 : i32
    return %c0_i32, %c0_i32_0 : i32, i32
  }
  func.func @transform_9(%arg0: i32) -> (i32, i32) {
    %c0_i32 = arith.constant 0 : i32
    %c0_i32_0 = arith.constant 0 : i32
    %c0_i32_1 = arith.constant 0 : i32
    return %c0_i32, %c0_i32_0 : i32, i32
  }
  func.func @transform_10(%arg0: i32) -> (i32, i32) {
    %c0_i32 = arith.constant 0 : i32
    %c0_i32_0 = arith.constant 0 : i32
    %c0_i32_1 = arith.constant 0 : i32
    return %c0_i32, %c0_i32_0 : i32, i32
  }
  func.func @transform_11(%arg0: i32) -> (i32, i32) {
    %c0_i32 = arith.constant 0 : i32
    %c0_i32_0 = arith.constant 0 : i32
    %c0_i32_1 = arith.constant 0 : i32
    return %c0_i32, %c0_i32_0 : i32, i32
  }
  func.func @transform_12(%arg0: i32) -> (i32, i32, i32) {
    %c0_i32 = arith.constant 0 : i32
    %c0_i32_0 = arith.constant 0 : i32
    %c0_i32_1 = arith.constant 0 : i32
    return %arg0, %c0_i32, %c0_i32_0 : i32, i32, i32
  }
}

</mosaic_0001>

<bundles_post_ra>
// kernel: tpu_custom_call.1
= control target key start
LH: loop header
LB: loop body
LE: loop exit
PB: predicated region body
PF: predicated region fallthrough
CT: control target
= control target key end

     0   :  { %s11555_s0 = inlined_call_operand.vmem [shape: f32[2,16,264], index: 0, kind: input, shape index: {}]   ;;  %s11556_s1 = inlined_call_operand.vmem [shape: bf16[264,1536], index: 1, kind: input, shape index: {}]   ;;  %s11557_s2 = inlined_call_operand.vmem [shape: bf16[512,264], index: 2, kind: input, shape index: {}]   ;;  %s11558_s3 = inlined_call_operand.vmem [shape: f32[1,264], index: 3, kind: input, shape index: {}]   ;;  %s11559_s4 = inlined_call_operand.vmem [shape: f32[1,264], index: 4, kind: input, shape index: {}]   ;;  %s11560_s5 = inlined_call_operand.vmem [shape: f32[1,264], index: 5, kind: input, shape index: {}]   ;;  %s11561_s6 = inlined_call_operand.vmem [shape: f32[1,264], index: 6, kind: input, shape index: {}]   ;;  %s11562_s7 = inlined_call_operand.vmem [shape: f32[1,264], index: 7, kind: input, shape index: {}]   ;;  %s11563_s8 = inlined_call_operand.vmem [shape: bf16[264,1056], index: 8, kind: input, shape index: {}]   ;;  %s11564_s9 = inlined_call_operand.vmem [shape: f32[1,1056], index: 9, kind: input, shape index: {}]   ;;  %s11565_s10 = inlined_call_operand.vmem [shape: bf16[1056,264], index: 10, kind: input, shape index: {}]   ;;  %s11566_s11 = inlined_call_operand.vmem [shape: f32[1,264], index: 11, kind: input, shape index: {}]   ;;  %s11567_s12 = inlined_call_operand.hbm [shape: f32[2,16,264], index: 12, kind: output, shape index: {}]  }
   0x1   :  { %11568 = sst [smem:[#allocation7_spill]] %s11555_s0 }
   0x2   :  { %17 = vsyncpa [#allocation4], 0 }
   0x3   :  { %19 = vsyncpa [#allocation4 + $0x1], 0  ;;  %s9112_s21 = smov 0   ;;  %s9114_s22 = smov 0  }
   0x4   :  { %s9116_s23 = smov 0   ;;  %s9118_s24 = smov 0  }
   0x5 LB: > { %s9133_s25 = sadd.s32 4294967295, %s9038_s24   ;;  %s6965_s26 = sadd.s32 4294967294, %s9038_s24   ;;  %s9038_s24 = sphi %s9118_s24, %s11577_s24   ;;  %s9034_s23 = sphi %s9116_s23, %s11576_s23   ;;  %s9030_s22 = sphi %s9114_s22, %s11575_s22   ;;  %s9026_s21 = sphi %s9112_s21, %s11574_s21  }
   0x6   : > { %s9137_s27 = sadd.s32 1, %s9038_s24   ;;  %s289_s28 = sadd.s32 1, %s9034_s23 }
   0x7   : > { %s286_s29 = ssub.s32 %s9038_s24, %s9137_s27  ;;  %p299_p0 = scmp.ne.s32.totalorder %s9034_s23, %s9030_s22 }
   0x8   : > { %p287_p1 = scmp.eq.s32.totalorder %s286_s29, 0  ;;  %p300_p2 = scmp.eq.s32.totalorder %s9133_s25, 1 }
   0x9   : > { %p305_p3 = scmp.ne.s32.totalorder %s9030_s22, %s9026_s21  ;;  %p306_p4 = scmp.eq.s32.totalorder %s6965_s26, 1 }
   0xa   : > { %s9148_s30 = scalar_select %p287_p1, %s9034_s23, %s289_s28  }
   0xb   : > { %p9150_p5 = por %p300_p2, %p299_p0  ;;  %p9154_p6 = por %p306_p4, %p305_p3 }
   0xc   : > { %11569 = sst [smem:[#allocation6_spill]] %s9148_s30  ;;  %p6968_p7 = scmp.ge.s32.totalorder %s9038_s24, 1 }
   0xd   : > { %p365_p8 = scmp.lt.s32.totalorder %s9038_s24, 3 }
   0xf   : > { %p366_p9 = pnand %p6968_p7, %p365_p8 }
  0x10   : > { %p407_p10 = scmp.lt.s32.totalorder (!%p366_p9), %s9133_s25, 1  ;;  %vm422_vm0 = vcmask (!%p366_p9), 64512   ;;  %s11572_s0 = sld [smem:[#allocation7_spill]] (!%p366_p9)  ;;  %v8021_v12 = vld [vmem:[%s11556_s1 + $0x4] ss:$48 sps:$4 sm:$0xff] (!%p366_p9)   ;;  %vm1707_vm1 = vcmask (!%p366_p9), 1043456  }
  0x11   : > { %369 = sbr.rel (%p366_p9) target bundleno = 2743 (0xab7), region = 68  ;;  %v8023_v13 = vld [vmem:[%s11556_s1] ss:$48 sps:$4 sm:$0xff] (!%p366_p9)   ;;  %v8024_v14 = vld [vmem:[%s11556_s1 + $0x64] ss:$48 sps:$4 sm:$0xff] (!%p366_p9)   ;;  %1744 = vmatprep.subr.bf16.mxu0 (!%p366_p9), %v8021_v12  ;;  %vm9042_vm2 = vmmov (!%p366_p9), 0  }
  0x12   : > { %1745 = vmatpush1.bf16.msra.mxu0 (!%p366_p9), %v8023_v13  ;;  %v8026_v15 = vld [vmem:[%s11556_s1 + $0x60] ss:$48 sps:$4 sm:$0xff] (!%p366_p9)   ;;  %v8027_v16 = vld [vmem:[%s11556_s1 + $0xc4] ss:$48 sps:$4 sm:$0xff] (!%p366_p9)   ;;  %vm2322_vm5 = vcmask (!%p366_p9), 130048   ;;  %vm6453_vm6 = vcmask (!%p366_p9), 261120  }
  0x13   : > { %1746 = vmatprep.subr.bf16.mxu0 (!%p366_p9), %v8024_v14  ;;  %v8029_v17 = vld [vmem:[%s11556_s1 + $0xc0] ss:$48 sps:$4 sm:$0xff] (!%p366_p9)   ;;  %v8030_v18 = vld [vmem:[%s11556_s1 + $0x124] ss:$48 sps:$4 sm:$0xff] (!%p366_p9)   ;;  %v470_v14 = vlaneseq (!%p366_p9)  ;;  %s7975_s17 = smul.u32 (!%p366_p9), 768, %s9133_s25  ;;  %s9044_s28 = smov (!%p366_p9), [#allocation3]  }
  0x14   : > { %v8032_v19 = vld [vmem:[%s11556_s1 + $0x120] ss:$48 sps:$4 sm:$0xff] (!%p366_p9)   ;;  %v8033_v20 = vld [vmem:[%s11556_s1 + $0x184] ss:$48 sps:$4 sm:$0xff] (!%p366_p9)   ;;  %s8980_s29 = sshll.u32 (!%p366_p9), %s9044_s28, 4  ;;  %s8981_s29 = int_to_ptr.vmem [resolvable:$false] %s8980_s29 }
  0x15   : > { %v8035_v21 = vld [vmem:[%s11556_s1 + $0x180] ss:$48 sps:$4 sm:$0xff] (!%p366_p9)   ;;  %v8036_v22 = vld [vmem:[%s11556_s1 + $0x1e4] ss:$48 sps:$4 sm:$0xff] (!%p366_p9)   ;;  %s11507_s20 = scalar_lea.hbm (!%p366_p9), %s11567_s12, %s7975_s17 }
  0x16   : > { %1747 = vmatpush1.bf16.msra.mxu0 (!%p366_p9), %v8026_v15  ;;  %v8038_v23 = vld [vmem:[%s11556_s1 + $0x1e0] ss:$48 sps:$4 sm:$0xff] (!%p366_p9)   ;;  %v8039_v24 = vld [vmem:[%s11556_s1 + $0x244] ss:$48 sps:$4 sm:$0xff] (!%p366_p9)  }
  0x17   : > { %1748 = vmatprep.subr.bf16.mxu0 (!%p366_p9), %v8027_v16  ;;  %v8041_v25 = vld [vmem:[%s11556_s1 + $0x240] ss:$48 sps:$4 sm:$0xff] (!%p366_p9)   ;;  %v8042_v26 = vld [vmem:[%s11556_s1 + $0x2a4] ss:$48 sps:$4 sm:$0xff] (!%p366_p9)  }
  0x18   : > { %s408_s15 = scalar_select %p407_p10, %s9133_s25, 1  ;;  %v8044_v27 = vld [vmem:[%s11556_s1 + $0x2a0] ss:$48 sps:$4 sm:$0xff]   ;;  %v8045_v28 = vld [vmem:[%s11556_s1 + $0x304] ss:$48 sps:$4 sm:$0xff]  }
  0x19   : > { %v8047_v29 = vld [vmem:[%s11556_s1 + $0x300] ss:$48 sps:$4 sm:$0xff]   ;;  %v8048_v30 = vld [vmem:[%s11556_s1 + $0x364] ss:$48 sps:$4 sm:$0xff]  }
  0x1a   : > { %s7974_s16 = smul.u32 48, %s408_s15  ;;  %1749 = vmatpush1.bf16.msra.mxu0 %v8029_v17  ;;  %v8050_v53 = vld [vmem:[%s11556_s1 + $0x360] ss:$48 sps:$4 sm:$0xff]   ;;  %v8051_v54 = vld [vmem:[%s11556_s1 + $0x3c4] ss:$48 sps:$4 sm:$0xff]   ;;  %v9311_v17 = vshrl.u32 %v470_v14, 7 }
  0x1b   : > { %1750 = vmatprep.subr.bf16.mxu0 %v8030_v18  ;;  %v8053_v55 = vld [vmem:[%s11556_s1 + $0x3c0] ss:$48 sps:$4 sm:$0xff]   ;;  %v8054_v56 = vld [vmem:[%s11556_s1 + $0x424] ss:$48 sps:$4 sm:$0xff]   ;;  %s404_s15 = sand.u32 1, %s9030_s22  }
  0x1c   : > { %s9165_s19 = scalar_lea.vmem %s11572_s0, %s7974_s16  ;;  %v8056_v57 = vld [vmem:[%s11556_s1 + $0x420] ss:$48 sps:$4 sm:$0xff]   ;;  %v8057_v58 = vld [vmem:[%s11556_s1 + $0x484] ss:$48 sps:$4 sm:$0xff]   ;;  %v9314_v18 = vsub.s32 1, %v9311_v17  ;;  %s11514_s25 = scalar_lea.sflag [#allocation4], %s404_s15 }
  0x1d   : > { %v413_v0 = vld [vmem:[%s9165_s19] sm:$0xff]  ;;  %v414_v1 = vld [vmem:[%s9165_s19 + $0x8] sm:$0xff]  ;;  %v415_v2 = vld [vmem:[%s9165_s19 + $0x10] sm:$0xff] }
  0x1e   : > { %v421_v3 = vadd.f32 %v414_v1, %v413_v0  ;;  %v423_v4 = vsel %vm422_vm0, %v415_v2, 0.0  ;;  %v416_v5 = vld [vmem:[%s9165_s19 + $0x18] sm:$0xff]  ;;  %v417_v6 = vld [vmem:[%s9165_s19 + $0x20] sm:$0xff]  ;;  %v418_v7 = vld [vmem:[%s9165_s19 + $0x28] sm:$0xff]  ;;  %1751 = vmatpush1.bf16.msra.mxu0 %v8032_v19  ;;  %v9317_v19 = vsub.s32 2, %v9311_v17 }
  0x1f   : > { %v427_v8 = vadd.f32 %v417_v6, %v416_v5  ;;  %v428_v9 = vsel %vm422_vm0, %v418_v7, 0.0  ;;  %1752 = vmatprep.subr.bf16.mxu0 %v8033_v20  ;;  %v8059_v59 = vld [vmem:[%s11556_s1 + $0x480] ss:$48 sps:$4 sm:$0xff]   ;;  %v8060_v60 = vld [vmem:[%s11556_s1 + $0x4e4] ss:$48 sps:$4 sm:$0xff]  }
  0x20   : > { %v424_v10 = vadd.f32 %v423_v4, %v421_v3  ;;  %v708_v61 = vld [vmem:[%s11556_s1 + $0x600] sm:$0xff] }
  0x21   : > { %v429_v11 = vadd.f32 %v428_v9, %v427_v8  ;;  %v8062_v62 = vld [vmem:[%s11556_s1 + $0x4e0] ss:$48 sps:$4 sm:$0xff]   ;;  %v7163_v63 = vcombine.high %v708_v61, %v708_v61  ;;  %v8063_v3 = vld [vmem:[%s11556_s1 + $0x544] ss:$48 sps:$4 sm:$0xff]   ;;  %v709_v8 = vld [vmem:[%s11556_s1 + $0x608] sm:$0xff] }
  0x22   : > { %425 = vadd.xlane.f32.xlu0 %v424_v10  ;;  %1753 = vmatpush1.bf16.msra.mxu0 %v8035_v21  ;;  %v8065_v4 = vld [vmem:[%s11556_s1 + $0x540] ss:$48 sps:$4 sm:$0xff]   ;;  %v7165_v9 = vcombine.high %v709_v8, %v709_v8  ;;  %v9323_v21 = vsub.s32 0, %v9311_v17 }
  0x23   : > { %1754 = vmatprep.subr.bf16.mxu0 %v8036_v22  ;;  %7174 = vmatprep.subr.msk.bf16.mxu1 %vm1707_vm1, %v7163_v63  ;;  %v419_v20 = vld [vmem:[%s11559_s4] sm:$0x7]  ;;  %v8089_v63 = vld [vmem:[%s11556_s1 + $0x1c] ss:$48 sps:$4 sm:$0xff]  }
  0x26   : > { %430 = vadd.xlane.f32.xlu0 %v429_v11  ;;  %1755 = vmatpush1.bf16.msra.mxu0 %v8038_v23  ;;  %v420_v23 = vld [vmem:[%s11560_s5] sm:$0x7] }
  0x27   : > { %1756 = vmatprep.subr.bf16.mxu0 %v8039_v24 }
  0x2a   : > { %1757 = vmatpush1.bf16.msra.mxu0 %v8041_v25  ;;  %v477_v25 = vrot.slane %v419_v20, %v9314_v18 }
  0x2b   : > { %1758 = vmatprep.subr.bf16.mxu0 %v8042_v26 }
  0x2e   : > { %1759 = vmatpush1.bf16.msra.mxu0 %v8044_v27  ;;  %v481_v27 = vrot.slane %v419_v20, %v9317_v19 }
  0x2f   : > { %1760 = vmatprep.subr.bf16.mxu0 %v8045_v28 }
  0x32   : > { %1761 = vmatpush1.bf16.msra.mxu0 %v8047_v29  ;;  %v473_v29 = vrot.slane %v419_v20, %v9323_v21  ;;  %v8105_v20 = vld [vmem:[%s11556_s1 + $0x138] ss:$48 sps:$4 sm:$0xff]  }
  0x33   : > { %1762 = vmatprep.subr.bf16.mxu0 %v8048_v30 }
  0x36   : > { %1763 = vmatpush1.bf16.msra.mxu0 %v8050_v53  ;;  %v8071_v53 = vld [vmem:[%s11556_s1 + $0x8] ss:$48 sps:$4 sm:$0xff]  }
  0x37   : > { %1764 = vmatprep.subr.bf16.mxu0 %v8051_v54 }
  0x3a   : > { %1765 = vmatpush1.bf16.msra.mxu0 %v8053_v55 }
  0x3b   : > { %1766 = vmatprep.subr.bf16.mxu0 %v8054_v56  ;;  %v8076_v56 = vld [vmem:[%s11556_s1 + $0x6c] ss:$48 sps:$4 sm:$0xff]  }
  0x3e   : > { %1767 = vmatpush1.bf16.msra.mxu0 %v8056_v57 }
  0x3f   : > { %1768 = vmatprep.subr.bf16.mxu0 %v8057_v58  ;;  %v8074_v58 = vld [vmem:[%s11556_s1 + $0x68] ss:$48 sps:$4 sm:$0xff]  }
  0x42   : > { %1769 = vmatpush1.bf16.msra.mxu0 %v8059_v59 }
  0x43   : > { %1770 = vmatprep.subr.bf16.mxu0 %v8060_v60  ;;  %v8081_v60 = vld [vmem:[%s11556_s1 + $0xcc] ss:$48 sps:$4 sm:$0xff]  }
  0x46   : > { %1771 = vmatpush1.bf16.msra.mxu0 %v8062_v62 }
  0x47   : > { %1772 = vmatprep.subr.bf16.mxu0 %v8063_v3  ;;  %v8092_v3 = vld [vmem:[%s11556_s1 + $0x18c] ss:$48 sps:$4 sm:$0xff]  }
  0x4a   : > { %1773 = vmatpush1.bf16.msra.mxu0 %v8065_v4  ;;  %v8087_v4 = vld [vmem:[%s11556_s1 + $0x18] ss:$48 sps:$4 sm:$0xff]  }
  0xaf   : > { %v426_v31 = vpop.xlane.xlu0 %425 }
  0xb0   : > { %v433_v32 = vmul.f32 0.003787879, %v426_v31  ;;  %v499_v31 = vrot.slane %v420_v23, %v9314_v18 }
  0xb2   : > { %v9232_v33 = vsub.f32 %v413_v0, %v433_v32  ;;  %v9234_v34 = vsub.f32 %v414_v1, %v433_v32  ;;  %v9236_v35 = vsub.f32 %v415_v2, %v433_v32  ;;  %v7162_v0 = vcombine.low %v708_v61, %v708_v61  ;;  %v8079_v61 = vld [vmem:[%s11556_s1 + $0xc8] ss:$48 sps:$4 sm:$0xff]  }
  0xb3   : > { %v431_v36 = vpop.xlane.xlu0 %430  ;;  %v9040_v1 = vmov 0   ;;  %v503_v32 = vrot.slane %v420_v23, %v9317_v19 }
  0xb4   : > { %v434_v37 = vmul.f32 0.003787879, %v431_v36  ;;  %v441_v38 = vmul.f32 %v9232_v33, %v9232_v33  ;;  %v442_v39 = vmul.f32 %v9234_v34, %v9234_v34  ;;  %v443_v40 = vmul.f32 %v9236_v35, %v9236_v35  ;;  %1819 = vmatprep.mubr.bf16.mxu1 %v9040_v1 }
  0xb5   : > { %v1709_v2 = vsel %vm1707_vm1, %v7162_v0, 0  ;;  %v8085_v0 = vld [vmem:[%s11556_s1 + $0x12c] ss:$48 sps:$4 sm:$0xff]  }
  0xb6   : > { %v9244_v41 = vsub.f32 %v416_v5, %v434_v37  ;;  %v9246_v42 = vsub.f32 %v417_v6, %v434_v37  ;;  %v9248_v43 = vsub.f32 %v418_v7, %v434_v37  ;;  %v447_v44 = vadd.f32 %v442_v39, %v441_v38  ;;  %1788 = vmatpush1.bf16.msra.mxu1 %v1709_v2  ;;  %v8066_v5 = vld [vmem:[%s11556_s1 + $0x5a4] ss:$48 sps:$4 sm:$0xff]   ;;  %v8069_v6 = vld [vmem:[%s11556_s1 + $0x5a0] ss:$48 sps:$4 sm:$0xff]   ;;  %v8073_v7 = vld [vmem:[%s11556_s1 + $0xc] ss:$48 sps:$4 sm:$0xff]  }
  0xb7   : > { %v448_v45 = vsel %vm422_vm0, %v443_v40, 0.0  ;;  %1774 = vmatprep.subr.bf16.mxu0 %v8066_v5  ;;  %7176 = vmatprep.subr.msk.bf16.mxu1 %vm1707_vm1, %v7165_v9  ;;  %v495_v40 = vrot.slane %v420_v23, %v9323_v21  ;;  %v8083_v2 = vld [vmem:[%s11556_s1 + $0x128] ss:$48 sps:$4 sm:$0xff]   ;;  %v8113_v23 = vld [vmem:[%s11556_s1 + $0x19c] ss:$48 sps:$4 sm:$0xff]  }
  0xb8   : > { %v449_v46 = vadd.f32 %v448_v45, %v447_v44  ;;  %v444_v47 = vmul.f32 %v9244_v41, %v9244_v41  ;;  %v445_v48 = vmul.f32 %v9246_v42, %v9246_v42  ;;  %v446_v49 = vmul.f32 %v9248_v43, %v9248_v43  ;;  %1775 = vmatpush1.bf16.msra.mxu0 %v8069_v6  ;;  %v8090_v5 = vld [vmem:[%s11556_s1 + $0x188] ss:$48 sps:$4 sm:$0xff]   ;;  %v8095_v6 = vld [vmem:[%s11556_s1 + $0x7c] ss:$48 sps:$4 sm:$0xff]  }
  0xb9   : > { %1830 = vmatprep.subr.bf16.mxu0 %v8073_v7  ;;  %v7164_v45 = vcombine.low %v709_v8, %v709_v8  ;;  %v8098_v7 = vld [vmem:[%s11556_s1 + $0x1ec] ss:$48 sps:$4 sm:$0xff]   ;;  %v8093_v8 = vld [vmem:[%s11556_s1 + $0x78] ss:$48 sps:$4 sm:$0xff]  }
  0xba   : > { %450 = vadd.xlane.f32.xlu1 %v449_v46  ;;  %v452_v50 = vadd.f32 %v445_v48, %v444_v47  ;;  %v453_v51 = vsel %vm422_vm0, %v446_v49, 0.0  ;;  %v8096_v9 = vld [vmem:[%s11556_s1 + $0x1e8] ss:$48 sps:$4 sm:$0xff]  }
  0xbb   : > { %v1715_v54 = vsel %vm1707_vm1, %v7164_v45, 0  ;;  %v8138_v45 = vld [vmem:[%s11556_s1 + $0x488] ss:$48 sps:$4 sm:$0xff]  }
  0xbc   : > { %v454_v52 = vadd.f32 %v453_v51, %v452_v50 }
  0xbe   : > { %455 = vadd.xlane.f32.xlu1 %v454_v52 }
 0x147   : > { %v451_v10 = vpop.xlane.xlu1 %450 }
 0x148   : > { %v457_v11 = vmul.f32 0.003787879, %v451_v10  ;;  %v8101_v10 = vld [vmem:[%s11556_s1 + $0xdc] ss:$48 sps:$4 sm:$0xff]  }
 0x14a   : > { %v459_v12 = vadd.f32 1e-05, %v457_v11  ;;  %v8104_v11 = vld [vmem:[%s11556_s1 + $0x24c] ss:$48 sps:$4 sm:$0xff]  }
 0x14b   : > { %v456_v13 = vpop.xlane.xlu1 %455 }
 0x14c   : > { %8930 = vrsqrt.f32 %v459_v12  ;;  %v458_v15 = vmul.f32 0.003787879, %v456_v13  ;;  %v8099_v12 = vld [vmem:[%s11556_s1 + $0xd8] ss:$48 sps:$4 sm:$0xff]  }
 0x14d   : > { %v8102_v13 = vld [vmem:[%s11556_s1 + $0x248] ss:$48 sps:$4 sm:$0xff]  }
 0x14e   : > { %v460_v16 = vadd.f32 1e-05, %v458_v15  ;;  %v8107_v15 = vld [vmem:[%s11556_s1 + $0x13c] ss:$48 sps:$4 sm:$0xff]  }
 0x150   : > { %8932 = vrsqrt.f32 %v460_v16  ;;  %v8110_v16 = vld [vmem:[%s11556_s1 + $0x2ac] ss:$48 sps:$4 sm:$0xff]  }
 0x156   : > { %v8931_v22 = vpop.eup %8930 }
 0x157   : > { %v464_v24 = vmul.f32 %v8931_v22, %v9234_v34  ;;  %v465_v26 = vmul.f32 %v8931_v22, %v9236_v35  ;;  %v463_v28 = vmul.f32 %v8931_v22, %v9232_v33  ;;  %v8108_v22 = vld [vmem:[%s11556_s1 + $0x2a8] ss:$48 sps:$4 sm:$0xff]  }
 0x159   : > { %v486_v37 = vmul.f32 %v477_v25, %v464_v24  ;;  %v487_v38 = vmul.f32 %v481_v27, %v465_v26  ;;  %v485_v35 = vmul.f32 %v473_v29, %v463_v28  ;;  %v8116_v24 = vld [vmem:[%s11556_s1 + $0x30c] ss:$48 sps:$4 sm:$0xff]   ;;  %v8114_v26 = vld [vmem:[%s11556_s1 + $0x308] ss:$48 sps:$4 sm:$0xff]  }
 0x15a   : > { %v8933_v30 = vpop.eup %8932  ;;  %v8122_v28 = vld [vmem:[%s11556_s1 + $0x36c] ss:$48 sps:$4 sm:$0xff]  }
 0x15b   : > { %v467_v36 = vmul.f32 %v8933_v30, %v9246_v42  ;;  %v468_v34 = vmul.f32 %v8933_v30, %v9248_v43  ;;  %v466_v39 = vmul.f32 %v8933_v30, %v9244_v41  ;;  %v508_v47 = vadd.f32 %v499_v31, %v486_v37  ;;  %v710_v42 = vld [vmem:[%s11556_s1 + $0x610] sm:$0xff]  ;;  %v8120_v30 = vld [vmem:[%s11556_s1 + $0x368] ss:$48 sps:$4 sm:$0xff]  }
 0x15c   : > { %v509_v49 = vadd.f32 %v503_v32, %v487_v38  ;;  %v507_v51 = vadd.f32 %v495_v40, %v485_v35  ;;  %v7167_v57 = vcombine.high %v710_v42, %v710_v42  ;;  %v7166_v59 = vcombine.low %v710_v42, %v710_v42  ;;  %v8126_v37 = vld [vmem:[%s11556_s1 + $0x3c8] ss:$48 sps:$4 sm:$0xff]   ;;  %v8134_v38 = vld [vmem:[%s11556_s1 + $0x42c] ss:$48 sps:$4 sm:$0xff]  }
 0x15d   : > { %v489_v44 = vmul.f32 %v477_v25, %v467_v36  ;;  %v490_v33 = vmul.f32 %v481_v27, %v468_v34  ;;  %v488_v46 = vmul.f32 %v473_v29, %v466_v39  ;;  %v8111_v25 = vld [vmem:[%s11556_s1 + $0x198] ss:$48 sps:$4 sm:$0xff]   ;;  %v8119_v27 = vld [vmem:[%s11556_s1 + $0x1fc] ss:$48 sps:$4 sm:$0xff]  }
 0x15e   : > { %v1721_v62 = vsel %vm1707_vm1, %v7166_v59, 0  ;;  %v8117_v29 = vld [vmem:[%s11556_s1 + $0x1f8] ss:$48 sps:$4 sm:$0xff]   ;;  %v8131_v34 = vld [vmem:[%s11556_s1 + $0x2bc] ss:$48 sps:$4 sm:$0xff]  }
 0x15f   : > { %v511_v48 = vadd.f32 %v499_v31, %v489_v44  ;;  %v512_v50 = vadd.f32 %v503_v32, %v490_v33  ;;  %v510_v52 = vadd.f32 %v495_v40, %v488_v46  ;;  %v8125_v31 = vld [vmem:[%s11556_s1 + $0x25c] ss:$48 sps:$4 sm:$0xff]   ;;  %v8123_v36 = vld [vmem:[%s11556_s1 + $0x258] ss:$48 sps:$4 sm:$0xff]   ;;  %v8164_v59 = vld [vmem:[%s11556_s1 + $0x14] ss:$48 sps:$4 sm:$0xff]  }
 0x160   : > { %v8128_v32 = vld [vmem:[%s11556_s1 + $0x3cc] ss:$48 sps:$4 sm:$0xff]   ;;  %v8129_v39 = vld [vmem:[%s11556_s1 + $0x2b8] ss:$48 sps:$4 sm:$0xff]  }
 0x161   : > { %v9343_v43 = vpack.c.bf16 %v511_v48, %v508_v47  ;;  %v9345_v41 = vpack.c.bf16 %v512_v50, %v509_v49  ;;  %v9351_v55 = vpack.c.bf16 %v510_v52, %v507_v51  ;;  %v8132_v35 = vld [vmem:[%s11556_s1 + $0x428] ss:$48 sps:$4 sm:$0xff]   ;;  %v8137_v40 = vld [vmem:[%s11556_s1 + $0x31c] ss:$48 sps:$4 sm:$0xff]  }
 0x162   : > { %v8140_v44 = vld [vmem:[%s11556_s1 + $0x48c] ss:$48 sps:$4 sm:$0xff]   ;;  %v8135_v33 = vld [vmem:[%s11556_s1 + $0x318] ss:$48 sps:$4 sm:$0xff]  }
 0x163   : > { %1776 = vmatprep.mubr.bf16.mxu0 %v9343_v43  ;;  %7175 = vmatmul.mubr.msk.bf16.vlgmr.msra.gmra.mrb[0].mxu1 %vm422_vm0, %v9345_v41  ;;  %v8143_v46 = vld [vmem:[%s11556_s1 + $0x37c] ss:$48 sps:$4 sm:$0xff]   ;;  %v8141_v48 = vld [vmem:[%s11556_s1 + $0x378] ss:$48 sps:$4 sm:$0xff]  }
 0x164   : > { %1777 = vmatmul.mubr.bf16.vlgmr.msra.gmra.mrb[0].mxu0 %v9351_v55  ;;  %1874 = vmatpush1.bf16.msra.mxu1 %v1715_v54  ;;  %v8146_v47 = vld [vmem:[%s11556_s1 + $0x4ec] ss:$48 sps:$4 sm:$0xff]   ;;  %v8144_v49 = vld [vmem:[%s11556_s1 + $0x4e8] ss:$48 sps:$4 sm:$0xff]  }
 0x165   : > { %1831 = vmatpush1.bf16.msra.mxu0 %v8071_v53  ;;  %1862 = vmatprep.mubr.bf16.mxu0 %v9343_v43  ;;  %v8149_v50 = vld [vmem:[%s11556_s1 + $0x3dc] ss:$48 sps:$4 sm:$0xff]   ;;  %v8147_v52 = vld [vmem:[%s11556_s1 + $0x3d8] ss:$48 sps:$4 sm:$0xff]  }
 0x166   : > { %1832 = vmatprep.subr.bf16.mxu0 %v8076_v56  ;;  %1905 = vmatprep.mubr.bf16.mxu1 %v9040_v1  ;;  %v8152_v51 = vld [vmem:[%s11556_s1 + $0x54c] ss:$48 sps:$4 sm:$0xff]   ;;  %v8150_v42 = vld [vmem:[%s11556_s1 + $0x548] ss:$48 sps:$4 sm:$0xff]  }
 0x167   : > { %7178 = vmatprep.subr.msk.bf16.mxu1 %vm1707_vm1, %v7167_v57  ;;  %v8155_v53 = vld [vmem:[%s11556_s1 + $0x43c] ss:$48 sps:$4 sm:$0xff]   ;;  %v8153_v56 = vld [vmem:[%s11556_s1 + $0x438] ss:$48 sps:$4 sm:$0xff]  }
 0x168   : > { %v8158_v54 = vld [vmem:[%s11556_s1 + $0x5ac] ss:$48 sps:$4 sm:$0xff]   ;;  %v8156_v57 = vld [vmem:[%s11556_s1 + $0x5a8] ss:$48 sps:$4 sm:$0xff]  }
 0x169   : > { %1833 = vmatpush1.bf16.msra.mxu0 %v8074_v58  ;;  %v8161_v58 = vld [vmem:[%s11556_s1 + $0x49c] ss:$48 sps:$4 sm:$0xff]  }
 0x16a   : > { %1834 = vmatprep.subr.bf16.mxu0 %v8081_v60  ;;  %v8159_v60 = vld [vmem:[%s11556_s1 + $0x498] ss:$48 sps:$4 sm:$0xff]  }
 0x16b   : > { %7177 = vmatmul.mubr.msk.bf16.vlgmr.msra.gmra.mrb[4].mxu1 %vm422_vm0, %v9345_v41 }
 0x16c   : > { %1960 = vmatpush1.bf16.msra.mxu1 %v1721_v62  ;;  %1991 = vmatprep.mubr.bf16.mxu1 %v9040_v1  ;;  %v8167_v62 = vld [vmem:[%s11556_s1 + $0x4fc] ss:$48 sps:$4 sm:$0xff]  }
 0x16d   : > { %1835 = vmatpush1.bf16.msra.mxu0 %v8079_v61  ;;  %2002 = vmatprep.subr.bf16.mxu1 %v8089_v63  ;;  %v8162_v61 = vld [vmem:[%s11556_s1 + $0x10] ss:$48 sps:$4 sm:$0xff]   ;;  %v8170_v63 = vld [vmem:[%s11556_s1 + $0x74] ss:$48 sps:$4 sm:$0xff]  }
 0x16e   : > { %1836 = vmatprep.subr.bf16.mxu0 %v8085_v0  ;;  %v8165_v0 = vld [vmem:[%s11556_s1 + $0x4f8] ss:$48 sps:$4 sm:$0xff]  }
 0x171   : > { %1837 = vmatpush1.bf16.msra.mxu0 %v8083_v2  ;;  %v8168_v2 = vld [vmem:[%s11556_s1 + $0x70] ss:$48 sps:$4 sm:$0xff]  }
 0x172   : > { %1838 = vmatprep.subr.bf16.mxu0 %v8092_v3  ;;  %v8173_v3 = vld [vmem:[%s11556_s1 + $0x55c] ss:$48 sps:$4 sm:$0xff]  }
 0x173   : > { %7179 = vmatmul.mubr.msk.bf16.vlgmr.msra.gmra.mrb[8].mxu1 %vm422_vm0, %v9345_v41 }
 0x174   : > { %2003 = vmatpush1.bf16.msra.mxu1 %v8087_v4  ;;  %2034 = vmatprep.mubr.bf16.mxu1 %v9343_v43  ;;  %v8176_v4 = vld [vmem:[%s11556_s1 + $0xd4] ss:$48 sps:$4 sm:$0xff]  }
 0x175   : > { %1839 = vmatpush1.bf16.msra.mxu0 %v8090_v5  ;;  %2004 = vmatprep.subr.bf16.mxu1 %v8095_v6  ;;  %v8171_v5 = vld [vmem:[%s11556_s1 + $0x558] ss:$48 sps:$4 sm:$0xff]   ;;  %v8174_v6 = vld [vmem:[%s11556_s1 + $0xd0] ss:$48 sps:$4 sm:$0xff]  }
 0x176   : > { %1840 = vmatprep.subr.bf16.mxu0 %v8098_v7  ;;  %v8179_v7 = vld [vmem:[%s11556_s1 + $0x5bc] ss:$48 sps:$4 sm:$0xff]  }
 0x178   : > { %2005 = vmatpush1.bf16.msra.mxu1 %v8093_v8  ;;  %v8182_v8 = vld [vmem:[%s11556_s1 + $0x134] ss:$48 sps:$4 sm:$0xff]  }
 0x179   : > { %1841 = vmatpush1.bf16.msra.mxu0 %v8096_v9  ;;  %2006 = vmatprep.subr.bf16.mxu1 %v8101_v10  ;;  %v711_v9 = vld [vmem:[%s11556_s1 + $0x618] sm:$0xff] }
 0x17a   : > { %1842 = vmatprep.subr.bf16.mxu0 %v8104_v11  ;;  %v8177_v10 = vld [vmem:[%s11556_s1 + $0x5b8] ss:$48 sps:$4 sm:$0xff]   ;;  %v8180_v11 = vld [vmem:[%s11556_s1 + $0x130] ss:$48 sps:$4 sm:$0xff]  }
 0x17c   : > { %2007 = vmatpush1.bf16.msra.mxu1 %v8099_v12  ;;  %v7169_v12 = vcombine.high %v711_v9, %v711_v9 }
 0x17d   : > { %1843 = vmatpush1.bf16.msra.mxu0 %v8102_v13  ;;  %2008 = vmatprep.subr.bf16.mxu1 %v8107_v15  ;;  %v7168_v13 = vcombine.low %v711_v9, %v711_v9  ;;  %v8185_v15 = vld [vmem:[%s11556_s1 + $0x194] ss:$48 sps:$4 sm:$0xff]   ;;  %v8257_v9 = vld [vmem:[%s11556_s1 + $0x80] ss:$48 sps:$4 sm:$0xff]  }
 0x17e   : > { %1844 = vmatprep.subr.bf16.mxu0 %v8110_v16  ;;  %v8183_v16 = vld [vmem:[%s11556_s1 + $0x190] ss:$48 sps:$4 sm:$0xff]  }
 0x180   : > { %2009 = vmatpush1.bf16.msra.mxu1 %v8105_v20  ;;  %v1727_v20 = vsel %vm1707_vm1, %v7168_v13, 0  ;;  %v8268_v13 = vld [vmem:[%s11556_s1 + $0x4ac] ss:$48 sps:$4 sm:$0xff]  }
 0x181   : > { %1845 = vmatpush1.bf16.msra.mxu0 %v8108_v22  ;;  %2010 = vmatprep.subr.bf16.mxu1 %v8113_v23  ;;  %v8196_v22 = vld [vmem:[%s11556_s1 + $0x2c] ss:$48 sps:$4 sm:$0xff]   ;;  %v8188_v23 = vld [vmem:[%s11556_s1 + $0x1f4] ss:$48 sps:$4 sm:$0xff]  }
 0x182   : > { %1846 = vmatprep.subr.bf16.mxu0 %v8116_v24  ;;  %v8186_v24 = vld [vmem:[%s11556_s1 + $0x1f0] ss:$48 sps:$4 sm:$0xff]  }
 0x184   : > { %2011 = vmatpush1.bf16.msra.mxu1 %v8111_v25  ;;  %v8193_v25 = vld [vmem:[%s11556_s1 + $0x254] ss:$48 sps:$4 sm:$0xff]  }
 0x185   : > { %1847 = vmatpush1.bf16.msra.mxu0 %v8114_v26  ;;  %2012 = vmatprep.subr.bf16.mxu1 %v8119_v27  ;;  %v8191_v26 = vld [vmem:[%s11556_s1 + $0x250] ss:$48 sps:$4 sm:$0xff]   ;;  %v8199_v27 = vld [vmem:[%s11556_s1 + $0x2b4] ss:$48 sps:$4 sm:$0xff]  }
 0x186   : > { %1848 = vmatprep.subr.bf16.mxu0 %v8122_v28  ;;  %v8194_v28 = vld [vmem:[%s11556_s1 + $0x28] ss:$48 sps:$4 sm:$0xff]  }
 0x188   : > { %2013 = vmatpush1.bf16.msra.mxu1 %v8117_v29  ;;  %v8197_v29 = vld [vmem:[%s11556_s1 + $0x2b0] ss:$48 sps:$4 sm:$0xff]  }
 0x189   : > { %1849 = vmatpush1.bf16.msra.mxu0 %v8120_v30  ;;  %2014 = vmatprep.subr.bf16.mxu1 %v8125_v31  ;;  %v8202_v30 = vld [vmem:[%s11556_s1 + $0x8c] ss:$48 sps:$4 sm:$0xff]   ;;  %v8205_v31 = vld [vmem:[%s11556_s1 + $0x314] ss:$48 sps:$4 sm:$0xff]  }
 0x18a   : > { %1850 = vmatprep.subr.bf16.mxu0 %v8128_v32  ;;  %v8200_v32 = vld [vmem:[%s11556_s1 + $0x88] ss:$48 sps:$4 sm:$0xff]  }
 0x18c   : > { %2015 = vmatpush1.bf16.msra.mxu1 %v8123_v36  ;;  %v8203_v36 = vld [vmem:[%s11556_s1 + $0x310] ss:$48 sps:$4 sm:$0xff]  }
 0x18d   : > { %1851 = vmatpush1.bf16.msra.mxu0 %v8126_v37  ;;  %2016 = vmatprep.subr.bf16.mxu1 %v8131_v34  ;;  %v8208_v37 = vld [vmem:[%s11556_s1 + $0xec] ss:$48 sps:$4 sm:$0xff]   ;;  %v8211_v34 = vld [vmem:[%s11556_s1 + $0x374] ss:$48 sps:$4 sm:$0xff]  }
 0x18e   : > { %1852 = vmatprep.subr.bf16.mxu0 %v8134_v38  ;;  %v8206_v38 = vld [vmem:[%s11556_s1 + $0xe8] ss:$48 sps:$4 sm:$0xff]  }
 0x190   : > { %2017 = vmatpush1.bf16.msra.mxu1 %v8129_v39  ;;  %v8209_v39 = vld [vmem:[%s11556_s1 + $0x370] ss:$48 sps:$4 sm:$0xff]  }
 0x191   : > { %1853 = vmatpush1.bf16.msra.mxu0 %v8132_v35  ;;  %2018 = vmatprep.subr.bf16.mxu1 %v8137_v40  ;;  %v8214_v35 = vld [vmem:[%s11556_s1 + $0x14c] ss:$48 sps:$4 sm:$0xff]   ;;  %v8217_v40 = vld [vmem:[%s11556_s1 + $0x3d4] ss:$48 sps:$4 sm:$0xff]  }
 0x192   : > { %1854 = vmatprep.subr.bf16.mxu0 %v8140_v44  ;;  %v8212_v44 = vld [vmem:[%s11556_s1 + $0x148] ss:$48 sps:$4 sm:$0xff]  }
 0x194   : > { %2019 = vmatpush1.bf16.msra.mxu1 %v8135_v33  ;;  %v8215_v33 = vld [vmem:[%s11556_s1 + $0x3d0] ss:$48 sps:$4 sm:$0xff]  }
 0x195   : > { %1855 = vmatpush1.bf16.msra.mxu0 %v8138_v45  ;;  %2020 = vmatprep.subr.bf16.mxu1 %v8143_v46  ;;  %v8220_v45 = vld [vmem:[%s11556_s1 + $0x1ac] ss:$48 sps:$4 sm:$0xff]   ;;  %v8223_v46 = vld [vmem:[%s11556_s1 + $0x434] ss:$48 sps:$4 sm:$0xff]  }
 0x196   : > { %1856 = vmatprep.subr.bf16.mxu0 %v8146_v47  ;;  %v8218_v47 = vld [vmem:[%s11556_s1 + $0x1a8] ss:$48 sps:$4 sm:$0xff]  }
 0x198   : > { %2021 = vmatpush1.bf16.msra.mxu1 %v8141_v48  ;;  %v8221_v48 = vld [vmem:[%s11556_s1 + $0x430] ss:$48 sps:$4 sm:$0xff]  }
 0x199   : > { %1857 = vmatpush1.bf16.msra.mxu0 %v8144_v49  ;;  %2022 = vmatprep.subr.bf16.mxu1 %v8149_v50  ;;  %v8226_v49 = vld [vmem:[%s11556_s1 + $0x20c] ss:$48 sps:$4 sm:$0xff]   ;;  %v8229_v50 = vld [vmem:[%s11556_s1 + $0x494] ss:$48 sps:$4 sm:$0xff]  }
 0x19a   : > { %1858 = vmatprep.subr.bf16.mxu0 %v8152_v51  ;;  %v8224_v51 = vld [vmem:[%s11556_s1 + $0x208] ss:$48 sps:$4 sm:$0xff]  }
 0x19c   : > { %2023 = vmatpush1.bf16.msra.mxu1 %v8147_v52  ;;  %v8227_v52 = vld [vmem:[%s11556_s1 + $0x490] ss:$48 sps:$4 sm:$0xff]  }
 0x19d   : > { %1859 = vmatpush1.bf16.msra.mxu0 %v8150_v42  ;;  %2024 = vmatprep.subr.bf16.mxu1 %v8155_v53  ;;  %v8232_v42 = vld [vmem:[%s11556_s1 + $0x26c] ss:$48 sps:$4 sm:$0xff]   ;;  %v8235_v53 = vld [vmem:[%s11556_s1 + $0x4f4] ss:$48 sps:$4 sm:$0xff]  }
 0x19e   : > { %1860 = vmatprep.subr.bf16.mxu0 %v8158_v54  ;;  %v8230_v54 = vld [vmem:[%s11556_s1 + $0x268] ss:$48 sps:$4 sm:$0xff]  }
 0x1a0   : > { %2025 = vmatpush1.bf16.msra.mxu1 %v8153_v56  ;;  %v8233_v56 = vld [vmem:[%s11556_s1 + $0x4f0] ss:$48 sps:$4 sm:$0xff]  }
 0x1a1   : > { %1861 = vmatpush1.bf16.msra.mxu0 %v8156_v57  ;;  %2026 = vmatprep.subr.bf16.mxu1 %v8161_v58  ;;  %v8238_v57 = vld [vmem:[%s11556_s1 + $0x2cc] ss:$48 sps:$4 sm:$0xff]   ;;  %v8241_v58 = vld [vmem:[%s11556_s1 + $0x554] ss:$48 sps:$4 sm:$0xff]  }
 0x1a2   : > { %1916 = vmatprep.subr.bf16.mxu0 %v8164_v59  ;;  %v8236_v59 = vld [vmem:[%s11556_s1 + $0x2c8] ss:$48 sps:$4 sm:$0xff]  }
 0x1a4   : > { %1863 = vmatmul.mubr.bf16.vlgmr.msra.gmra.mrb[4].mxu0 %v9351_v55  ;;  %2027 = vmatpush1.bf16.msra.mxu1 %v8159_v60  ;;  %v8239_v60 = vld [vmem:[%s11556_s1 + $0x550] ss:$48 sps:$4 sm:$0xff]  }
 0x1a5   : > { %1917 = vmatpush1.bf16.msra.mxu0 %v8162_v61  ;;  %1948 = vmatprep.mubr.bf16.mxu0 %v9343_v43  ;;  %v8244_v61 = vld [vmem:[%s11556_s1 + $0x32c] ss:$48 sps:$4 sm:$0xff]  }
 0x1a6   : > { %2028 = vmatprep.subr.bf16.mxu1 %v8167_v62  ;;  %1918 = vmatprep.subr.bf16.mxu0 %v8170_v63  ;;  %v8247_v62 = vld [vmem:[%s11556_s1 + $0x5b4] ss:$48 sps:$4 sm:$0xff]   ;;  %v8242_v63 = vld [vmem:[%s11556_s1 + $0x328] ss:$48 sps:$4 sm:$0xff]  }
 0x1a8   : > { %2029 = vmatpush1.bf16.msra.mxu1 %v8165_v0  ;;  %v8245_v0 = vld [vmem:[%s11556_s1 + $0x5b0] ss:$48 sps:$4 sm:$0xff]  }
 0x1a9   : > { %1919 = vmatpush1.bf16.msra.mxu0 %v8168_v2  ;;  %2030 = vmatprep.subr.bf16.mxu1 %v8173_v3  ;;  %v8250_v2 = vld [vmem:[%s11556_s1 + $0x38c] ss:$48 sps:$4 sm:$0xff]   ;;  %v8253_v3 = vld [vmem:[%s11556_s1 + $0x24] ss:$48 sps:$4 sm:$0xff]  }
 0x1aa   : > { %1920 = vmatprep.subr.bf16.mxu0 %v8176_v4  ;;  %v8248_v4 = vld [vmem:[%s11556_s1 + $0x388] ss:$48 sps:$4 sm:$0xff]  }
 0x1ac   : > { %2031 = vmatpush1.bf16.msra.mxu1 %v8171_v5  ;;  %v8251_v5 = vld [vmem:[%s11556_s1 + $0x20] ss:$48 sps:$4 sm:$0xff]  }
 0x1ad   : > { %1921 = vmatpush1.bf16.msra.mxu0 %v8174_v6  ;;  %2032 = vmatprep.subr.bf16.mxu1 %v8179_v7  ;;  %v8256_v6 = vld [vmem:[%s11556_s1 + $0x3ec] ss:$48 sps:$4 sm:$0xff]   ;;  %v8259_v7 = vld [vmem:[%s11556_s1 + $0x84] ss:$48 sps:$4 sm:$0xff]  }
 0x1ae   : > { %1922 = vmatprep.subr.bf16.mxu0 %v8182_v8  ;;  %v8254_v8 = vld [vmem:[%s11556_s1 + $0x3e8] ss:$48 sps:$4 sm:$0xff]  }
 0x1b0   : > { %2033 = vmatpush1.bf16.msra.mxu1 %v8177_v10  ;;  %v8262_v10 = vld [vmem:[%s11556_s1 + $0x44c] ss:$48 sps:$4 sm:$0xff]  }
 0x1b1   : > { %1923 = vmatpush1.bf16.msra.mxu0 %v8180_v11  ;;  %7180 = vmatprep.subr.msk.bf16.mxu1 %vm1707_vm1, %v7169_v12  ;;  %v8265_v11 = vld [vmem:[%s11556_s1 + $0xe4] ss:$48 sps:$4 sm:$0xff]   ;;  %v8260_v12 = vld [vmem:[%s11556_s1 + $0x448] ss:$48 sps:$4 sm:$0xff]  }
 0x1b2   : > { %1924 = vmatprep.subr.bf16.mxu0 %v8185_v15  ;;  %v8271_v15 = vld [vmem:[%s11556_s1 + $0x144] ss:$48 sps:$4 sm:$0xff]  }
 0x1b3   : > { %2035 = vmatmul.mubr.bf16.vlgmr.msra.gmra.mrb[12].mxu1 %v9351_v55 }
 0x1b4   : > { %2046 = vmatpush1.bf16.msra.mxu1 %v1727_v20  ;;  %2077 = vmatprep.mubr.bf16.mxu1 %v9040_v1  ;;  %v8269_v20 = vld [vmem:[%s11556_s1 + $0x140] ss:$48 sps:$4 sm:$0xff]  }
 0x1b5   : > { %1925 = vmatpush1.bf16.msra.mxu0 %v8183_v16  ;;  %2174 = vmatprep.subr.bf16.mxu1 %v8196_v22  ;;  %v8266_v16 = vld [vmem:[%s11556_s1 + $0x4a8] ss:$48 sps:$4 sm:$0xff]   ;;  %v8274_v22 = vld [vmem:[%s11556_s1 + $0x50c] ss:$48 sps:$4 sm:$0xff]  }
 0x1b6   : > { %1926 = vmatprep.subr.bf16.mxu0 %v8188_v23  ;;  %v8277_v23 = vld [vmem:[%s11556_s1 + $0x1a4] ss:$48 sps:$4 sm:$0xff]  }
 0x1b9   : > { %1927 = vmatpush1.bf16.msra.mxu0 %v8186_v24  ;;  %v8272_v24 = vld [vmem:[%s11556_s1 + $0x508] ss:$48 sps:$4 sm:$0xff]  }
 0x1ba   : > { %1928 = vmatprep.subr.bf16.mxu0 %v8193_v25  ;;  %v8275_v25 = vld [vmem:[%s11556_s1 + $0x1a0] ss:$48 sps:$4 sm:$0xff]  }
 0x1bd   : > { %1929 = vmatpush1.bf16.msra.mxu0 %v8191_v26  ;;  %v8280_v26 = vld [vmem:[%s11556_s1 + $0x56c] ss:$48 sps:$4 sm:$0xff]  }
 0x1be   : > { %1930 = vmatprep.subr.bf16.mxu0 %v8199_v27  ;;  %v8283_v27 = vld [vmem:[%s11556_s1 + $0x204] ss:$48 sps:$4 sm:$0xff]  }
 0x1bf   : > { %7181 = vmatmul.mubr.msk.bf16.vlgmr.msra.gmra.mrb[12].mxu1 %vm422_vm0, %v9345_v41 }
 0x1c0   : > { %2175 = vmatpush1.bf16.msra.mxu1 %v8194_v28  ;;  %2206 = vmatprep.mubr.bf16.mxu1 %v9343_v43  ;;  %v8278_v28 = vld [vmem:[%s11556_s1 + $0x568] ss:$48 sps:$4 sm:$0xff]  }
 0x1c1   : > { %1931 = vmatpush1.bf16.msra.mxu0 %v8197_v29  ;;  %2176 = vmatprep.subr.bf16.mxu1 %v8202_v30  ;;  %v8281_v29 = vld [vmem:[%s11556_s1 + $0x200] ss:$48 sps:$4 sm:$0xff]   ;;  %v8286_v30 = vld [vmem:[%s11556_s1 + $0x5cc] ss:$48 sps:$4 sm:$0xff]  }
 0x1c2   : > { %1932 = vmatprep.subr.bf16.mxu0 %v8205_v31  ;;  %v8289_v31 = vld [vmem:[%s11556_s1 + $0x264] ss:$48 sps:$4 sm:$0xff]  }
 0x1c4   : > { %2177 = vmatpush1.bf16.msra.mxu1 %v8200_v32  ;;  %v713_v32 = vld [vmem:[%s11556_s1 + $0x628] sm:$0xff] }
 0x1c5   : > { %1933 = vmatpush1.bf16.msra.mxu0 %v8203_v36  ;;  %2178 = vmatprep.subr.bf16.mxu1 %v8208_v37  ;;  %v8284_v36 = vld [vmem:[%s11556_s1 + $0x5c8] ss:$48 sps:$4 sm:$0xff]   ;;  %v8287_v37 = vld [vmem:[%s11556_s1 + $0x260] ss:$48 sps:$4 sm:$0xff]  }
 0x1c6   : > { %1934 = vmatprep.subr.bf16.mxu0 %v8211_v34  ;;  %v7173_v34 = vcombine.high %v713_v32, %v713_v32 }
 0x1c8   : > { %2179 = vmatpush1.bf16.msra.mxu1 %v8206_v38  ;;  %v7172_v38 = vcombine.low %v713_v32, %v713_v32 }
 0x1c9   : > { %1935 = vmatpush1.bf16.msra.mxu0 %v8209_v39  ;;  %2180 = vmatprep.subr.bf16.mxu1 %v8214_v35  ;;  %v8292_v39 = vld [vmem:[%s11556_s1 + $0x2c4] ss:$48 sps:$4 sm:$0xff]   ;;  %v8290_v35 = vld [vmem:[%s11556_s1 + $0x2c0] ss:$48 sps:$4 sm:$0xff]  }
 0x1ca   : > { %1936 = vmatprep.subr.bf16.mxu0 %v8217_v40  ;;  %v1739_v40 = vsel %vm1707_vm1, %v7172_v38, 0 }
 0x1cc   : > { %2181 = vmatpush1.bf16.msra.mxu1 %v8212_v44  ;;  %v8295_v44 = vld [vmem:[%s11556_s1 + $0x324] ss:$48 sps:$4 sm:$0xff]  }
 0x1cd   : > { %1937 = vmatpush1.bf16.msra.mxu0 %v8215_v33  ;;  %2182 = vmatprep.subr.bf16.mxu1 %v8220_v45  ;;  %v8293_v33 = vld [vmem:[%s11556_s1 + $0x320] ss:$48 sps:$4 sm:$0xff]   ;;  %v8300_v45 = vld [vmem:[%s11556_s1 + $0x384] ss:$48 sps:$4 sm:$0xff]  }
 0x1ce   : > { %1938 = vmatprep.subr.bf16.mxu0 %v8223_v46  ;;  %v8298_v46 = vld [vmem:[%s11556_s1 + $0x380] ss:$48 sps:$4 sm:$0xff]  }
 0x1d0   : > { %2183 = vmatpush1.bf16.msra.mxu1 %v8218_v47  ;;  %v8303_v47 = vld [vmem:[%s11556_s1 + $0x3e4] ss:$48 sps:$4 sm:$0xff]  }
 0x1d1   : > { %1939 = vmatpush1.bf16.msra.mxu0 %v8221_v48  ;;  %2184 = vmatprep.subr.bf16.mxu1 %v8226_v49  ;;  %v8301_v48 = vld [vmem:[%s11556_s1 + $0x3e0] ss:$48 sps:$4 sm:$0xff]   ;;  %v8306_v49 = vld [vmem:[%s11556_s1 + $0x444] ss:$48 sps:$4 sm:$0xff]  }
 0x1d2   : > { %1940 = vmatprep.subr.bf16.mxu0 %v8229_v50  ;;  %v8304_v50 = vld [vmem:[%s11556_s1 + $0x440] ss:$48 sps:$4 sm:$0xff]  }
 0x1d4   : > { %2185 = vmatpush1.bf16.msra.mxu1 %v8224_v51  ;;  %v8309_v51 = vld [vmem:[%s11556_s1 + $0x4a4] ss:$48 sps:$4 sm:$0xff]  }
 0x1d5   : > { %1941 = vmatpush1.bf16.msra.mxu0 %v8227_v52  ;;  %2186 = vmatprep.subr.bf16.mxu1 %v8232_v42  ;;  %v8307_v52 = vld [vmem:[%s11556_s1 + $0x4a0] ss:$48 sps:$4 sm:$0xff]   ;;  %v8312_v42 = vld [vmem:[%s11556_s1 + $0x504] ss:$48 sps:$4 sm:$0xff]  }
 0x1d6   : > { %1942 = vmatprep.subr.bf16.mxu0 %v8235_v53  ;;  %v8310_v53 = vld [vmem:[%s11556_s1 + $0x500] ss:$48 sps:$4 sm:$0xff]  }
 0x1d8   : > { %2187 = vmatpush1.bf16.msra.mxu1 %v8230_v54  ;;  %v8315_v54 = vld [vmem:[%s11556_s1 + $0x564] ss:$48 sps:$4 sm:$0xff]  }
 0x1d9   : > { %1943 = vmatpush1.bf16.msra.mxu0 %v8233_v56  ;;  %2188 = vmatprep.subr.bf16.mxu1 %v8238_v57  ;;  %v8313_v56 = vld [vmem:[%s11556_s1 + $0x560] ss:$48 sps:$4 sm:$0xff]   ;;  %v8318_v57 = vld [vmem:[%s11556_s1 + $0x5c4] ss:$48 sps:$4 sm:$0xff]  }
 0x1da   : > { %1944 = vmatprep.subr.bf16.mxu0 %v8241_v58  ;;  %v712_v58 = vld [vmem:[%s11556_s1 + $0x620] sm:$0xff] }
 0x1dc   : > { %2189 = vmatpush1.bf16.msra.mxu1 %v8236_v59  ;;  %v8316_v59 = vld [vmem:[%s11556_s1 + $0x5c0] ss:$48 sps:$4 sm:$0xff]  }
 0x1dd   : > { %1945 = vmatpush1.bf16.msra.mxu0 %v8239_v60  ;;  %2190 = vmatprep.subr.bf16.mxu1 %v8244_v61  ;;  %v7171_v60 = vcombine.high %v712_v58, %v712_v58  ;;  %v7170_v61 = vcombine.low %v712_v58, %v712_v58 }
 0x1de   : > { %1946 = vmatprep.subr.bf16.mxu0 %v8247_v62 }
 0x1df   : > { %v1733_v62 = vsel %vm1707_vm1, %v7170_v61, 0 }
 0x1e0   : > { %2191 = vmatpush1.bf16.msra.mxu1 %v8242_v63 }
 0x1e1   : > { %1947 = vmatpush1.bf16.msra.mxu0 %v8245_v0  ;;  %2192 = vmatprep.subr.bf16.mxu1 %v8250_v2 }
 0x1e2   : > { %2088 = vmatprep.subr.bf16.mxu0 %v8253_v3 }
 0x1e4   : > { %2193 = vmatpush1.bf16.msra.mxu1 %v8248_v4  ;;  %1949 = vmatmul.mubr.bf16.vlgmr.msra.gmra.mrb[8].mxu0 %v9351_v55 }
 0x1e5   : > { %2089 = vmatpush1.bf16.msra.mxu0 %v8251_v5  ;;  %2120 = vmatprep.mubr.bf16.mxu0 %v9343_v43  ;;  %v8263_v43 = vld [vmem:[%s11556_s1 + $0xe0] ss:$48 sps:$4 sm:$0xff]  }
 0x1e6   : > { %2194 = vmatprep.subr.bf16.mxu1 %v8256_v6  ;;  %2090 = vmatprep.subr.bf16.mxu0 %v8259_v7 }
 0x1e8   : > { %2195 = vmatpush1.bf16.msra.mxu1 %v8254_v8 }
 0x1e9   : > { %2091 = vmatpush1.bf16.msra.mxu0 %v8257_v9  ;;  %2196 = vmatprep.subr.bf16.mxu1 %v8262_v10 }
 0x1ea   : > { %2092 = vmatprep.subr.bf16.mxu0 %v8265_v11 }
 0x1ec   : > { %2197 = vmatpush1.bf16.msra.mxu1 %v8260_v12 }
 0x1ed   : > { %2093 = vmatpush1.bf16.msra.mxu0 %v8263_v43  ;;  %2198 = vmatprep.subr.bf16.mxu1 %v8268_v13  ;;  %v9041_v13 = vmov 0.0  }
 0x1ee   : > { %2094 = vmatprep.subr.bf16.mxu0 %v8271_v15 }
 0x1f0   : > { %2199 = vmatpush1.bf16.msra.mxu1 %v8266_v16 }
 0x1f1   : > { %2095 = vmatpush1.bf16.msra.mxu0 %v8269_v20  ;;  %2200 = vmatprep.subr.bf16.mxu1 %v8274_v22 }
 0x1f2   : > { %2096 = vmatprep.subr.bf16.mxu0 %v8277_v23 }
 0x1f4   : > { %2201 = vmatpush1.bf16.msra.mxu1 %v8272_v24 }
 0x1f5   : > { %2097 = vmatpush1.bf16.msra.mxu0 %v8275_v25  ;;  %2202 = vmatprep.subr.bf16.mxu1 %v8280_v26 }
 0x1f6   : > { %2098 = vmatprep.subr.bf16.mxu0 %v8283_v27 }
 0x1f8   : > { %2203 = vmatpush1.bf16.msra.mxu1 %v8278_v28 }
 0x1f9   : > { %2099 = vmatpush1.bf16.msra.mxu0 %v8281_v29  ;;  %2204 = vmatprep.subr.bf16.mxu1 %v8286_v30 }
 0x1fa   : > { %2100 = vmatprep.subr.bf16.mxu0 %v8289_v31 }
 0x1fc   : > { %2205 = vmatpush1.bf16.msra.mxu1 %v8284_v36 }
 0x1fd   : > { %2101 = vmatpush1.bf16.msra.mxu0 %v8287_v37  ;;  %7184 = vmatprep.subr.msk.bf16.mxu1 %vm1707_vm1, %v7173_v34 }
 0x1fe   : > { %2102 = vmatprep.subr.bf16.mxu0 %v8292_v39 }
 0x1ff   : > { %2207 = vmatmul.mubr.bf16.vlgmr.msra.gmra.mrb[16].mxu1 %v9351_v55 }
 0x200   : > { %2218 = vmatpush1.bf16.msra.mxu1 %v1739_v40  ;;  %2249 = vmatprep.mubr.bf16.mxu1 %v9040_v1 }
 0x201   : > { %2103 = vmatpush1.bf16.msra.mxu0 %v8290_v35  ;;  %7833 = vmatprep.subr.bf16.mxu1 %v9041_v13 }
 0x202   : > { %2104 = vmatprep.subr.bf16.mxu0 %v8295_v44 }
 0x205   : > { %2105 = vmatpush1.bf16.msra.mxu0 %v8293_v33 }
 0x206   : > { %2106 = vmatprep.subr.bf16.mxu0 %v8300_v45 }
 0x209   : > { %2107 = vmatpush1.bf16.msra.mxu0 %v8298_v46 }
 0x20a   : > { %2108 = vmatprep.subr.bf16.mxu0 %v8303_v47 }
 0x20b   : > { %7185 = vmatmul.mubr.msk.bf16.vlgmr.msra.gmra.mrb[16].mxu1 %vm422_vm0, %v9345_v41 }
 0x20c   : > { %7835 = vmatprep.mubr.msk.bf16.mxu1 %vm9042_vm2, %v9041_v13 }
 0x20d   : > { %2109 = vmatpush1.bf16.msra.mxu0 %v8301_v48 }
 0x20e   : > { %2110 = vmatprep.subr.bf16.mxu0 %v8306_v49 }
 0x211   : > { %2111 = vmatpush1.bf16.msra.mxu0 %v8304_v50 }
 0x212   : > { %2112 = vmatprep.subr.bf16.mxu0 %v8309_v51 }
 0x215   : > { %2113 = vmatpush1.bf16.msra.mxu0 %v8307_v52 }
 0x216   : > { %2114 = vmatprep.subr.bf16.mxu0 %v8312_v42 }
 0x219   : > { %2115 = vmatpush1.bf16.msra.mxu0 %v8310_v53 }
 0x21a   : > { %2116 = vmatprep.subr.bf16.mxu0 %v8315_v54 }
 0x21d   : > { %2117 = vmatpush1.bf16.msra.mxu0 %v8313_v56 }
 0x21e   : > { %2118 = vmatprep.subr.bf16.mxu0 %v8318_v57 }
 0x221   : > { %2119 = vmatpush1.bf16.msra.mxu0 %v8316_v59 }
 0x222   : > { %7182 = vmatprep.subr.msk.bf16.mxu0 %vm1707_vm1, %v7171_v60 }
 0x224   : > { %2121 = vmatmul.mubr.bf16.vlgmr.msra.gmra.mrb[12].mxu0 %v9351_v55 }
 0x225   : > { %2132 = vmatpush1.bf16.msra.mxu0 %v1733_v62  ;;  %2163 = vmatprep.mubr.bf16.mxu0 %v9040_v1 }
 0x226   : > { %7827 = vmatprep.subr.bf16.mxu0 %v9041_v13 }
 0x230   : > { %7183 = vmatmul.mubr.msk.bf16.vlgmr.msra.gmra.mrb[12].mxu0 %vm422_vm0, %v9345_v41 }
 0x231   : > { %7829 = vmatprep.mubr.msk.bf16.mxu0 %vm9042_vm2, %v9041_v13 }
 0x236   : > { %v1821_v63 = vpop.f32.mrb[0].mxu1 }
 0x237   : > { %v1778_v0 = vpop.f32.mrb[0].mxu0  ;;  %v1823_v2 = vpop.f32.mrb[1].mxu1 }
 0x238   : > { %v1822_v3 = vadd.f32 %v1821_v63, %v1778_v0  ;;  %v1780_v4 = vpop.f32.mrb[1].mxu0  ;;  %v1825_v5 = vpop.f32.mrb[2].mxu1 }
 0x239   : > { %v1824_v6 = vadd.f32 %v1823_v2, %v1780_v4  ;;  %v1782_v7 = vpop.f32.mrb[2].mxu0  ;;  %v1827_v8 = vpop.f32.mrb[3].mxu1  ;;  %v2274_v4 = vadd.s32 8, %v9311_v17 }
 0x23a   : > { %v1826_v9 = vadd.f32 %v1825_v5, %v1782_v7  ;;  %v1784_v10 = vpop.f32.mrb[3].mxu0  ;;  %v9043_v5 = vmov -1e+30  }
 0x23b   : > { %v1828_v11 = vadd.f32 %v1827_v8, %v1784_v10 }
 0x23c   : > { %v2260_v12 = vpack.c.bf16 %v1826_v9, %v1822_v3  ;;  %v2276_v3 = vand.u32 127, %v470_v14 }
 0x23d   : > { %v2261_v55 = vpack.c.bf16 %v1828_v11, %v1824_v6 }
 0x23e   : > { %v1907_v43 = vpop.f32.mrb[4].mxu1  ;;  %vm2277_vm3 = vcmp.le.s32.totalorder %v2276_v3, %v9311_v17  ;;  %vm2278_vm4 = vcmp.le.s32.totalorder %v2276_v3, %v2274_v4 }
 0x23f   : > { %v1909_v41 = vpop.f32.mrb[5].mxu1  ;;  %v2279_v6 = vsel %vm2277_vm3, 0.0, %v9043_v5  ;;  %v2280_v8 = vsel %vm2278_vm4, 0.0, %v9043_v5 }
 0x240   : > { %v1911_v15 = vpop.f32.mrb[6].mxu1 }
 0x241   : > { %v1913_v16 = vpop.f32.mrb[7].mxu1 }
 0x246   : > { %v1993_v20 = vpop.f32.mrb[8].mxu1 }
 0x247   : > { %v1995_v22 = vpop.f32.mrb[9].mxu1 }
 0x248   : > { %v1997_v23 = vpop.f32.mrb[10].mxu1 }
 0x249   : > { %v1999_v24 = vpop.f32.mrb[11].mxu1 }
 0x277   : > { %v1864_v25 = vpop.f32.mrb[4].mxu0 }
 0x278   : > { %v1908_v26 = vadd.f32 %v1907_v43, %v1864_v25  ;;  %v1866_v27 = vpop.f32.mrb[5].mxu0 }
 0x279   : > { %v1910_v28 = vadd.f32 %v1909_v41, %v1866_v27  ;;  %v1868_v29 = vpop.f32.mrb[6].mxu0 }
 0x27a   : > { %v1912_v30 = vadd.f32 %v1911_v15, %v1868_v29  ;;  %v1870_v31 = vpop.f32.mrb[7].mxu0 }
 0x27b   : > { %v1914_v32 = vadd.f32 %v1913_v16, %v1870_v31 }
 0x27c   : > { %v2262_v36 = vpack.c.bf16 %v1912_v30, %v1908_v26 }
 0x27d   : > { %v2263_v37 = vpack.c.bf16 %v1914_v32, %v1910_v28 }
 0x292   : > { %v2079_v34 = vpop.f32.mrb[12].mxu1 }
 0x293   : > { %v2081_v38 = vpop.f32.mrb[13].mxu1 }
 0x294   : > { %v2083_v39 = vpop.f32.mrb[14].mxu1 }
 0x295   : > { %v2266_v35 = vpack.c.bf16 %v2083_v39, %v2079_v34  ;;  %v2085_v40 = vpop.f32.mrb[15].mxu1 }
 0x296   : > { %v2267_v44 = vpack.c.bf16 %v2085_v40, %v2081_v38 }
 0x2b7   : > { %v1950_v33 = vpop.f32.mrb[8].mxu0 }
 0x2b8   : > { %v1994_v45 = vadd.f32 %v1993_v20, %v1950_v33  ;;  %v1952_v46 = vpop.f32.mrb[9].mxu0 }
 0x2b9   : > { %v1996_v47 = vadd.f32 %v1995_v22, %v1952_v46  ;;  %v1954_v48 = vpop.f32.mrb[10].mxu0 }
 0x2ba   : > { %v1998_v49 = vadd.f32 %v1997_v23, %v1954_v48  ;;  %v1956_v50 = vpop.f32.mrb[11].mxu0 }
 0x2bb   : > { %v2000_v51 = vadd.f32 %v1999_v24, %v1956_v50 }
 0x2bc   : > { %v2264_v52 = vpack.c.bf16 %v1998_v49, %v1994_v45 }
 0x2bd   : > { %v2265_v42 = vpack.c.bf16 %v2000_v51, %v1996_v47 }
 0x2be   : > { %7828 = vmatpush3.bf16.xpose.msra.mxu0 %v2264_v52 }
 0x2bf   : > { %7839 = vmatprep.subr.bf16.mxu0 %v9041_v13 }
 0x2c5   : > { %7830 = vmatmul.mubr.bf16.vlgmr.msra.gmra.mrb[16].mxu0 %v2260_v12 }
 0x2c6   : > { %7840 = vmatpush3.bf16.xpose.msra.mxu0 %v2265_v42  ;;  %7841 = vmatprep.mubr.msk.bf16.mxu0 %vm9042_vm2, %v9041_v13 }
 0x2c7   : > { %7851 = vmatprep.subr.bf16.mxu0 %v9041_v13 }
 0x2cd   : > { %7842 = vmatmul.mubr.bf16.vlgmr.msra.gmra.mrb[20].mxu0 %v2261_v55 }
 0x2ce   : > { %7852 = vmatpush3.bf16.xpose.msra.mxu0 %v2266_v35  ;;  %7853 = vmatprep.mubr.msk.bf16.mxu0 %vm9042_vm2, %v9041_v13 }
 0x2cf   : > { %7863 = vmatprep.subr.bf16.mxu0 %v9041_v13 }
 0x2d5   : > { %7854 = vmatmul.mubr.bf16.vlgmr.msra.gmra.mrb[24].mxu0 %v2262_v36 }
 0x2d6   : > { %7864 = vmatpush3.bf16.xpose.msra.mxu0 %v2267_v44  ;;  %7865 = vmatprep.mubr.msk.bf16.mxu0 %vm9042_vm2, %v9041_v13 }
 0x2dd   : > { %7866 = vmatmul.mubr.bf16.vlgmr.msra.gmra.mrb[28].mxu0 %v2263_v37 }
 0x2de   : > { %v9888_v53 = vpop.f32.mrb[16].mxu1 }
 0x2df   : > { %v9890_v54 = vpop.f32.mrb[17].mxu1 }
 0x2e0   : > { %v9892_v56 = vpop.f32.mrb[18].mxu1 }
 0x2e1   : > { %v2270_v57 = vpack.c.bf16 %v9892_v56, %v9888_v53  ;;  %v9896_v58 = vpop.f32.mrb[19].mxu1 }
 0x2e2   : > { %v2271_v59 = vpack.c.bf16 %v9896_v58, %v9890_v54  ;;  %v8354_v54 = vld [vmem:[%s11557_s2 + $0x20] ss:$12 sps:$4 sm:$0xff]   ;;  %v8358_v58 = vld [vmem:[%s11557_s2 + $0xf8] ss:$12 sps:$4 sm:$0xff]  }
 0x303   : > { %v2165_v60 = vpop.f32.mrb[12].mxu0 }
 0x304   : > { %v9900_v61 = vpop.f32.mrb[13].mxu0 }
 0x305   : > { %v2169_v62 = vpop.f32.mrb[14].mxu0 }
 0x306   : > { %v2268_v63 = vpack.c.bf16 %v2169_v62, %v2165_v60  ;;  %v9902_v0 = vpop.f32.mrb[15].mxu0 }
 0x307   : > { %v2269_v2 = vpack.c.bf16 %v9902_v0, %v9900_v61 }
 0x308   : > { %7834 = vmatpush3.bf16.msra.mxu1 %v2268_v63 }
 0x309   : > { %7845 = vmatprep.subr.bf16.mxu1 %v9041_v13 }
 0x398   : > { %v2315_v7 = vpop.f32.mrb[16].mxu0 }
 0x399   : > { %v2316_v9 = vadd.f32 %v2315_v7, %v2279_v6  ;;  %v7831_v10 = vpop.f32.mrb[17].mxu0 }
 0x39a   : > { %v2318_v11 = vpop.f32.mrb[18].mxu0 }
 0x39b   : > { %v2319_v12 = vadd.f32 %v2318_v11, %v2280_v8  ;;  %v7832_v55 = vpop.f32.mrb[19].mxu0  ;;  %v2323_v43 = vsel %vm2322_vm5, %v2316_v9, -inf }
 0x39c   : > { %2324 = vmax.xlane.f32.xlu0 %v2323_v43 }
 0x39d   : > { %v2326_v14 = vsel %vm2322_vm5, %v2319_v12, -inf }
 0x39e   : > { %2327 = vmax.xlane.f32.xlu1 %v2326_v14 }
 0x3a0   : > { %v2426_v41 = vpop.f32.mrb[20].mxu0 }
 0x3a1   : > { %v2427_v15 = vadd.f32 %v2426_v41, %v2279_v6  ;;  %v7843_v16 = vpop.f32.mrb[21].mxu0 }
 0x3a2   : > { %v2429_v20 = vpop.f32.mrb[22].mxu0 }
 0x3a3   : > { %v2430_v22 = vadd.f32 %v2429_v20, %v2280_v8  ;;  %v7844_v23 = vpop.f32.mrb[23].mxu0  ;;  %v2433_v24 = vsel %vm2322_vm5, %v2427_v15, -inf }
 0x3a4   : > { %2434 = vmax.xlane.f32.xlu0 %v2433_v24 }
 0x3a5   : > { %v2436_v25 = vsel %vm2322_vm5, %v2430_v22, -inf }
 0x3a6   : > { %2437 = vmax.xlane.f32.xlu1 %v2436_v25 }
 0x3a8   : > { %v2536_v26 = vpop.f32.mrb[24].mxu0 }
 0x3a9   : > { %v2537_v27 = vadd.f32 %v2536_v26, %v2279_v6  ;;  %v7855_v28 = vpop.f32.mrb[25].mxu0 }
 0x3aa   : > { %v2539_v29 = vpop.f32.mrb[26].mxu0 }
 0x3ab   : > { %v2540_v30 = vadd.f32 %v2539_v29, %v2280_v8  ;;  %v7856_v31 = vpop.f32.mrb[27].mxu0  ;;  %v2543_v32 = vsel %vm2322_vm5, %v2537_v27, -inf }
 0x3ac   : > { %2544 = vmax.xlane.f32.xlu0 %v2543_v32 }
 0x3ad   : > { %v2546_v36 = vsel %vm2322_vm5, %v2540_v30, -inf }
 0x3ae   : > { %2547 = vmax.xlane.f32.xlu1 %v2546_v36  ;;  %v8321_v36 = vld [vmem:[%s11557_s2] ss:$12 sps:$4 sm:$0xff]  }
 0x3b0   : > { %v2646_v37 = vpop.f32.mrb[28].mxu0 }
 0x3b1   : > { %v2647_v34 = vadd.f32 %v2646_v37, %v2279_v6  ;;  %v7867_v38 = vpop.f32.mrb[29].mxu0  ;;  %v8323_v37 = vld [vmem:[%s11557_s2 + $0x4] ss:$12 sps:$4 sm:$0xff]  }
 0x3b2   : > { %v2649_v39 = vpop.f32.mrb[30].mxu0  ;;  %3391 = vmatprep.subr.bf16.mxu0 %v8323_v37  ;;  %v8324_v38 = vld [vmem:[%s11557_s2 + $0x18] ss:$12 sps:$4 sm:$0xff]  }
 0x3b3   : > { %v2650_v35 = vadd.f32 %v2649_v39, %v2280_v8  ;;  %v7868_v40 = vpop.f32.mrb[31].mxu0  ;;  %v2653_v44 = vsel %vm2322_vm5, %v2647_v34, -inf  ;;  %3392 = vmatpush1.bf16.msra.mxu0 %v8321_v36  ;;  %v8329_v39 = vld [vmem:[%s11557_s2 + $0x34] ss:$12 sps:$4 sm:$0xff]  }
 0x3b4   : > { %2654 = vmax.xlane.f32.xlu0 %v2653_v44  ;;  %v8332_v40 = vld [vmem:[%s11557_s2 + $0x4c] ss:$12 sps:$4 sm:$0xff]   ;;  %v8330_v44 = vld [vmem:[%s11557_s2 + $0x48] ss:$12 sps:$4 sm:$0xff]  }
 0x3b5   : > { %v2656_v33 = vsel %vm2322_vm5, %v2650_v35, -inf }
 0x3b6   : > { %2657 = vmax.xlane.f32.xlu1 %v2656_v33  ;;  %v8335_v33 = vld [vmem:[%s11557_s2 + $0x64] ss:$12 sps:$4 sm:$0xff]  }
 0x429   : > { %v2325_v45 = vpop.xlane.xlu0 %2324 }
 0x42a   : > { %v2329_v46 = vsub.f32 %v2316_v9, %v2325_v45  ;;  %v8333_v45 = vld [vmem:[%s11557_s2 + $0x60] ss:$12 sps:$4 sm:$0xff]  }
 0x42b   : > { %v2328_v47 = vpop.xlane.xlu1 %2327 }
 0x42c   : > { %v2331_v48 = vmul.f32 1.442695, %v2329_v46  ;;  %v2330_v49 = vsub.f32 %v2319_v12, %v2328_v47  ;;  %v8338_v46 = vld [vmem:[%s11557_s2 + $0x7c] ss:$12 sps:$4 sm:$0xff]   ;;  %v8336_v47 = vld [vmem:[%s11557_s2 + $0x78] ss:$12 sps:$4 sm:$0xff]  }
 0x42e   : > { %8934 = vpow2.f32 %v2331_v48  ;;  %v2333_v50 = vmul.f32 1.442695, %v2330_v49  ;;  %v8341_v48 = vld [vmem:[%s11557_s2 + $0x94] ss:$12 sps:$4 sm:$0xff]   ;;  %v8339_v49 = vld [vmem:[%s11557_s2 + $0x90] ss:$12 sps:$4 sm:$0xff]  }
 0x430   : > { %8936 = vpow2.f32 %v2333_v50  ;;  %v8344_v50 = vld [vmem:[%s11557_s2 + $0xac] ss:$12 sps:$4 sm:$0xff]  }
 0x431   : > { %v2435_v51 = vpop.xlane.xlu0 %2434 }
 0x432   : > { %v2439_v52 = vsub.f32 %v2427_v15, %v2435_v51  ;;  %v8342_v51 = vld [vmem:[%s11557_s2 + $0xa8] ss:$12 sps:$4 sm:$0xff]  }
 0x433   : > { %v2438_v42 = vpop.xlane.xlu1 %2437 }
 0x434   : > { %v2441_v60 = vmul.f32 1.442695, %v2439_v52  ;;  %v2440_v62 = vsub.f32 %v2430_v22, %v2438_v42  ;;  %v8347_v52 = vld [vmem:[%s11557_s2 + $0xc4] ss:$12 sps:$4 sm:$0xff]   ;;  %v8345_v42 = vld [vmem:[%s11557_s2 + $0xc0] ss:$12 sps:$4 sm:$0xff]  }
 0x436   : > { %8938 = vpow2.f32 %v2441_v60  ;;  %v2443_v63 = vmul.f32 1.442695, %v2440_v62  ;;  %v8352_v60 = vld [vmem:[%s11557_s2 + $0xdc] ss:$12 sps:$4 sm:$0xff]   ;;  %v8350_v62 = vld [vmem:[%s11557_s2 + $0xd8] ss:$12 sps:$4 sm:$0xff]  }
 0x438   : > { %v9918_v3 = vpop.eup %8934  ;;  %8940 = vpow2.f32 %v2443_v63  ;;  %v8357_v63 = vld [vmem:[%s11557_s2 + $0xf4] ss:$12 sps:$4 sm:$0xff]  }
 0x439   : > { %v2545_v4 = vpop.xlane.xlu0 %2544  ;;  %v2335_v5 = vsel %vm2322_vm5, %v9918_v3, 0.0 }
 0x43a   : > { %v9922_v6 = vpop.eup %8936  ;;  %v2549_v7 = vsub.f32 %v2537_v27, %v2545_v4  ;;  %2336 = vadd.xlane.f32.xlu0 %v2335_v5  ;;  %v8355_v4 = vld [vmem:[%s11557_s2 + $0xf0] ss:$12 sps:$4 sm:$0xff]   ;;  %v8362_v5 = vld [vmem:[%s11557_s2 + $0x10c] ss:$12 sps:$4 sm:$0xff]  }
 0x43b   : > { %v2548_v8 = vpop.xlane.xlu1 %2547  ;;  %v2338_v9 = vsel %vm2322_vm5, %v9922_v6, 0.0 }
 0x43c   : > { %v2551_v10 = vmul.f32 1.442695, %v2549_v7  ;;  %v2550_v11 = vsub.f32 %v2540_v30, %v2548_v8  ;;  %2339 = vadd.xlane.f32.xlu1 %v2338_v9  ;;  %v8360_v7 = vld [vmem:[%s11557_s2 + $0x108] ss:$12 sps:$4 sm:$0xff]   ;;  %v8367_v8 = vld [vmem:[%s11557_s2 + $0x124] ss:$12 sps:$4 sm:$0xff]  }
 0x43d   : > { %v8365_v9 = vld [vmem:[%s11557_s2 + $0x120] ss:$12 sps:$4 sm:$0xff]  }
 0x43e   : > { %8942 = vpow2.f32 %v2551_v10  ;;  %v2553_v12 = vmul.f32 1.442695, %v2550_v11 }
 0x440   : > { %v9926_v55 = vpop.eup %8938  ;;  %8944 = vpow2.f32 %v2553_v12 }
 0x441   : > { %v2655_v43 = vpop.xlane.xlu0 %2654  ;;  %v2445_v14 = vsel %vm2322_vm5, %v9926_v55, 0.0 }
 0x442   : > { %v9930_v41 = vpop.eup %8940  ;;  %v2659_v15 = vsub.f32 %v2647_v34, %v2655_v43  ;;  %2446 = vadd.xlane.f32.xlu0 %v2445_v14  ;;  %v8326_v34 = vld [vmem:[%s11557_s2 + $0x1c] ss:$12 sps:$4 sm:$0xff]  }
 0x443   : > { %v2658_v16 = vpop.xlane.xlu1 %2657  ;;  %v2448_v20 = vsel %vm2322_vm5, %v9930_v41, 0.0  ;;  %3393 = vmatprep.subr.bf16.mxu0 %v8326_v34 }
 0x444   : > { %v2661_v22 = vmul.f32 1.442695, %v2659_v15  ;;  %v2660_v23 = vsub.f32 %v2650_v35, %v2658_v16  ;;  %2449 = vadd.xlane.f32.xlu1 %v2448_v20  ;;  %3394 = vmatpush1.bf16.msra.mxu0 %v8324_v38  ;;  %v8327_v35 = vld [vmem:[%s11557_s2 + $0x30] ss:$12 sps:$4 sm:$0xff]   ;;  %v8353_v38 = vld [vmem:[%s11557_s2 + $0xe0] ss:$12 sps:$4 sm:$0xff]  }
 0x445   : > { %3395 = vmatprep.subr.bf16.mxu0 %v8329_v39  ;;  %v8368_v39 = vld [vmem:[%s11557_s2 + $0x128] ss:$12 sps:$4 sm:$0xff]  }
 0x446   : > { %8946 = vpow2.f32 %v2661_v22  ;;  %v2663_v24 = vmul.f32 1.442695, %v2660_v23 }
 0x448   : > { %v9934_v25 = vpop.eup %8942  ;;  %8948 = vpow2.f32 %v2663_v24  ;;  %3396 = vmatpush1.bf16.msra.mxu0 %v8327_v35  ;;  %v8369_v35 = vld [vmem:[%s11557_s2 + $0x68] ss:$12 sps:$4 sm:$0xff]  }
 0x449   : > { %v2555_v26 = vsel %vm2322_vm5, %v9934_v25, 0.0  ;;  %3397 = vmatprep.subr.bf16.mxu0 %v8332_v40  ;;  %v8372_v40 = vld [vmem:[%s11557_s2 + $0x13c] ss:$12 sps:$4 sm:$0xff]  }
 0x44a   : > { %v9938_v27 = vpop.eup %8944  ;;  %2556 = vadd.xlane.f32.xlu0 %v2555_v26 }
 0x44b   : > { %v2558_v28 = vsel %vm2322_vm5, %v9938_v27, 0.0 }
 0x44c   : > { %2559 = vadd.xlane.f32.xlu1 %v2558_v28  ;;  %3398 = vmatpush1.bf16.msra.mxu0 %v8330_v44  ;;  %v8373_v44 = vld [vmem:[%s11557_s2 + $0x140] ss:$12 sps:$4 sm:$0xff]  }
 0x44d   : > { %3399 = vmatprep.subr.bf16.mxu0 %v8335_v33  ;;  %v8370_v33 = vld [vmem:[%s11557_s2 + $0x138] ss:$12 sps:$4 sm:$0xff]  }
 0x450   : > { %v9942_v29 = vpop.eup %8946  ;;  %3400 = vmatpush1.bf16.msra.mxu0 %v8333_v45  ;;  %v8374_v45 = vld [vmem:[%s11557_s2 + $0x80] ss:$12 sps:$4 sm:$0xff]  }
 0x451   : > { %v2665_v30 = vsel %vm2322_vm5, %v9942_v29, 0.0  ;;  %3401 = vmatprep.subr.bf16.mxu0 %v8338_v46  ;;  %v8375_v46 = vld [vmem:[%s11557_s2 + $0x150] ss:$12 sps:$4 sm:$0xff]  }
 0x452   : > { %v9946_v31 = vpop.eup %8948  ;;  %2666 = vadd.xlane.f32.xlu0 %v2665_v30 }
 0x453   : > { %v2668_v32 = vsel %vm2322_vm5, %v9946_v31, 0.0 }
 0x454   : > { %2669 = vadd.xlane.f32.xlu1 %v2668_v32  ;;  %3402 = vmatpush1.bf16.msra.mxu0 %v8336_v47  ;;  %v8377_v47 = vld [vmem:[%s11557_s2 + $0x154] ss:$12 sps:$4 sm:$0xff]  }
 0x455   : > { %3403 = vmatprep.subr.bf16.mxu0 %v8341_v48  ;;  %v8378_v48 = vld [vmem:[%s11557_s2 + $0x158] ss:$12 sps:$4 sm:$0xff]  }
 0x458   : > { %3404 = vmatpush1.bf16.msra.mxu0 %v8339_v49  ;;  %v8379_v49 = vld [vmem:[%s11557_s2 + $0x98] ss:$12 sps:$4 sm:$0xff]  }
 0x459   : > { %3405 = vmatprep.subr.bf16.mxu0 %v8344_v50  ;;  %v8382_v50 = vld [vmem:[%s11557_s2 + $0x16c] ss:$12 sps:$4 sm:$0xff]  }
 0x45c   : > { %3406 = vmatpush1.bf16.msra.mxu0 %v8342_v51  ;;  %v8383_v51 = vld [vmem:[%s11557_s2 + $0x170] ss:$12 sps:$4 sm:$0xff]  }
 0x45d   : > { %3407 = vmatprep.subr.bf16.mxu0 %v8347_v52  ;;  %v8380_v52 = vld [vmem:[%s11557_s2 + $0x168] ss:$12 sps:$4 sm:$0xff]  }
 0x460   : > { %3408 = vmatpush1.bf16.msra.mxu0 %v8345_v42  ;;  %v8384_v42 = vld [vmem:[%s11557_s2 + $0xb0] ss:$12 sps:$4 sm:$0xff]  }
 0x461   : > { %3409 = vmatprep.subr.bf16.mxu0 %v8352_v60  ;;  %v8387_v60 = vld [vmem:[%s11557_s2 + $0x184] ss:$12 sps:$4 sm:$0xff]  }
 0x464   : > { %3410 = vmatpush1.bf16.msra.mxu0 %v8350_v62  ;;  %v8388_v62 = vld [vmem:[%s11557_s2 + $0x248] ss:$12 sps:$4 sm:$0xff]  }
 0x465   : > { %3411 = vmatprep.subr.bf16.mxu0 %v8357_v63 }
 0x468   : > { %3412 = vmatpush1.bf16.msra.mxu0 %v8355_v4 }
 0x469   : > { %3413 = vmatprep.subr.bf16.mxu0 %v8362_v5 }
 0x46c   : > { %3414 = vmatpush1.bf16.msra.mxu0 %v8360_v7 }
 0x46d   : > { %3415 = vmatprep.subr.bf16.mxu0 %v8367_v8 }
 0x470   : > { %3416 = vmatpush1.bf16.msra.mxu0 %v8365_v9 }
 0x471   : > { %3417 = vmatprep.subr.bf16.mxu0 %v8372_v40  ;;  %v8415_v40 = vld [vmem:[%s11557_s2 + $0x210] ss:$12 sps:$4 sm:$0xff]  }
 0x474   : > { %3418 = vmatpush1.bf16.msra.mxu0 %v8370_v33  ;;  %v8422_v33 = vld [vmem:[%s11557_s2 + $0x22c] ss:$12 sps:$4 sm:$0xff]  }
 0x475   : > { %3419 = vmatprep.subr.bf16.mxu0 %v8377_v47  ;;  %v8424_v47 = vld [vmem:[%s11557_s2 + $0x230] ss:$12 sps:$4 sm:$0xff]  }
 0x478   : > { %3420 = vmatpush1.bf16.msra.mxu0 %v8375_v46  ;;  %v8420_v46 = vld [vmem:[%s11557_s2 + $0x228] ss:$12 sps:$4 sm:$0xff]  }
 0x479   : > { %3421 = vmatprep.subr.bf16.mxu0 %v8382_v50  ;;  %v8430_v50 = vld [vmem:[%s11557_s2 + $0x25c] ss:$12 sps:$4 sm:$0xff]  }
 0x47c   : > { %3422 = vmatpush1.bf16.msra.mxu0 %v8380_v52  ;;  %v8433_v52 = vld [vmem:[%s11557_s2 + $0x274] ss:$12 sps:$4 sm:$0xff]  }
 0x47d   : > { %3434 = vmatprep.subr.bf16.mxu0 %v8387_v60  ;;  %v8436_v60 = vld [vmem:[%s11557_s2 + $0x28c] ss:$12 sps:$4 sm:$0xff]  }
 0x4c7   : > { %v2337_v10 = vpop.xlane.xlu0 %2336 }
 0x4c8   : > { %8950 = vrcp.f32 %v2337_v10 }
 0x4c9   : > { %v2340_v11 = vpop.xlane.xlu1 %2339 }
 0x4ca   : > { %8952 = vrcp.f32 %v2340_v11 }
 0x4cf   : > { %v2447_v12 = vpop.xlane.xlu0 %2446 }
 0x4d0   : > { %8954 = vrcp.f32 %v2447_v12 }
 0x4d1   : > { %v2450_v43 = vpop.xlane.xlu1 %2449 }
 0x4d2   : > { %v8951_v14 = vpop.eup %8950  ;;  %8956 = vrcp.f32 %v2450_v43 }
 0x4d3   : > { %v2343_v16 = vmul.f32 %v8951_v14, %v9918_v3  ;;  %v8385_v14 = vld [vmem:[%s11557_s2 + $0x180] ss:$12 sps:$4 sm:$0xff]  }
 0x4d4   : > { %v8953_v15 = vpop.eup %8952 }
 0x4d5   : > { %v2344_v20 = vmul.f32 %v8953_v15, %v9922_v6  ;;  %v8389_v15 = vld [vmem:[%s11557_s2 + $0x188] ss:$12 sps:$4 sm:$0xff]  }
 0x4d7   : > { %v2557_v22 = vpop.xlane.xlu0 %2556  ;;  %v2345_v23 = vpack.c.bf16 %v2344_v20, %v2343_v16  ;;  %v8392_v16 = vld [vmem:[%s11557_s2 + $0x19c] ss:$12 sps:$4 sm:$0xff]   ;;  %v8393_v20 = vld [vmem:[%s11557_s2 + $0x260] ss:$12 sps:$4 sm:$0xff]  }
 0x4d8   : > { %8958 = vrcp.f32 %v2557_v22  ;;  %v8390_v22 = vld [vmem:[%s11557_s2 + $0x198] ss:$12 sps:$4 sm:$0xff]  }
 0x4d9   : > { %7836 = vmatmul.mubr.msk.bf16.vlgmr.msra.gmra.mrb[20].mxu1 %vm2322_vm5, %v2345_v23  ;;  %v2560_v24 = vpop.xlane.xlu1 %2559  ;;  %v8394_v23 = vld [vmem:[%s11557_s2 + $0x1a0] ss:$12 sps:$4 sm:$0xff]  }
 0x4da   : > { %v8955_v26 = vpop.eup %8954  ;;  %7846 = vmatpush3.bf16.msra.mxu1 %v2269_v2  ;;  %8960 = vrcp.f32 %v2560_v24  ;;  %7847 = vmatprep.mubr.msk.bf16.mxu1 %vm9042_vm2, %v9041_v13 }
 0x4db   : > { %7857 = vmatprep.subr.bf16.mxu1 %v9041_v13  ;;  %v2453_v6 = vmul.f32 %v8955_v26, %v9926_v55  ;;  %v8397_v26 = vld [vmem:[%s11557_s2 + $0x1b4] ss:$12 sps:$4 sm:$0xff]  }
 0x4dc   : > { %v8957_v3 = vpop.eup %8956 }
 0x4dd   : > { %v2454_v28 = vmul.f32 %v8957_v3, %v9930_v41  ;;  %v8348_v41 = vld [vmem:[%s11557_s2 + $0xc8] ss:$12 sps:$4 sm:$0xff]   ;;  %v8398_v3 = vld [vmem:[%s11557_s2 + $0x278] ss:$12 sps:$4 sm:$0xff]  }
 0x4df   : > { %v2667_v30 = vpop.xlane.xlu0 %2666  ;;  %v2455_v32 = vpack.c.bf16 %v2454_v28, %v2453_v6 }
 0x4e0   : > { %8962 = vrcp.f32 %v2667_v30 }
 0x4e1   : > { %7848 = vmatmul.mubr.msk.bf16.vlgmr.msra.gmra.mrb[24].mxu1 %vm2322_vm5, %v2455_v32  ;;  %v2670_v36 = vpop.xlane.xlu1 %2669 }
 0x4e2   : > { %v8959_v37 = vpop.eup %8958  ;;  %7858 = vmatpush3.bf16.msra.mxu1 %v2270_v57  ;;  %8964 = vrcp.f32 %v2670_v36  ;;  %7859 = vmatprep.mubr.msk.bf16.mxu1 %vm9042_vm2, %v9041_v13  ;;  %v8395_v36 = vld [vmem:[%s11557_s2 + $0x1b0] ss:$12 sps:$4 sm:$0xff]  }
 0x4e3   : > { %7869 = vmatprep.subr.bf16.mxu1 %v9041_v13  ;;  %v2563_v0 = vmul.f32 %v8959_v37, %v9934_v25  ;;  %v8399_v37 = vld [vmem:[%s11557_s2 + $0x1b8] ss:$12 sps:$4 sm:$0xff]  }
 0x4e4   : > { %v8961_v61 = vpop.eup %8960 }
 0x4e5   : > { %v2564_v2 = vmul.f32 %v8961_v61, %v9938_v27  ;;  %v8349_v27 = vld [vmem:[%s11557_s2 + $0x8] ss:$12 sps:$4 sm:$0xff]   ;;  %v8402_v61 = vld [vmem:[%s11557_s2 + $0x1cc] ss:$12 sps:$4 sm:$0xff]  }
 0x4e7   : > { %v2565_v55 = vpack.c.bf16 %v2564_v2, %v2563_v0  ;;  %v8403_v0 = vld [vmem:[%s11557_s2 + $0x290] ss:$12 sps:$4 sm:$0xff]   ;;  %v8400_v2 = vld [vmem:[%s11557_s2 + $0x1c8] ss:$12 sps:$4 sm:$0xff]  }
 0x4e9   : > { %7860 = vmatmul.mubr.msk.bf16.vlgmr.msra.gmra.mrb[28].mxu1 %vm2322_vm5, %v2565_v55  ;;  %v8404_v55 = vld [vmem:[%s11557_s2 + $0x1d0] ss:$12 sps:$4 sm:$0xff]  }
 0x4ea   : > { %v8963_v53 = vpop.eup %8962  ;;  %7870 = vmatpush3.bf16.msra.mxu1 %v2271_v59  ;;  %7871 = vmatprep.mubr.msk.bf16.mxu1 %vm9042_vm2, %v9041_v13  ;;  %v8359_v59 = vld [vmem:[%s11557_s2 + $0x38] ss:$12 sps:$4 sm:$0xff]  }
 0x4eb   : > { %7668 = vmatprep.subr.bf16.mxu1 %v8348_v41  ;;  %v2673_v57 = vmul.f32 %v8963_v53, %v9942_v29  ;;  %v8363_v29 = vld [vmem:[%s11557_s2 + $0x110] ss:$12 sps:$4 sm:$0xff]  }
 0x4ec   : > { %v8965_v56 = vpop.eup %8964  ;;  %v8407_v53 = vld [vmem:[%s11557_s2 + $0x1e4] ss:$12 sps:$4 sm:$0xff]  }
 0x4ed   : > { %v2674_v25 = vmul.f32 %v8965_v56, %v9946_v31  ;;  %v8364_v31 = vld [vmem:[%s11557_s2 + $0x50] ss:$12 sps:$4 sm:$0xff]   ;;  %v8408_v56 = vld [vmem:[%s11557_s2 + $0x2a8] ss:$12 sps:$4 sm:$0xff]  }
 0x4ef   : > { %v2675_v34 = vpack.c.bf16 %v2674_v25, %v2673_v57 }
 0x4f1   : > { %7872 = vmatmul.mubr.msk.bf16.vlgmr.msra.gmra.mrb[32].mxu1 %vm2322_vm5, %v2675_v34 }
 0x4f2   : > { %7669 = vmatpush3.bf16.msra.mxu1 %v8349_v27 }
 0x4f3   : > { %7670 = vmatprep.subr.bf16.mxu1 %v8353_v38  ;;  %v8405_v38 = vld [vmem:[%s11557_s2 + $0x1e0] ss:$12 sps:$4 sm:$0xff]  }
 0x4f6   : > { %7671 = vmatpush3.bf16.msra.mxu1 %v8354_v54  ;;  %v8409_v54 = vld [vmem:[%s11557_s2 + $0x1e8] ss:$12 sps:$4 sm:$0xff]  }
 0x4f7   : > { %7672 = vmatprep.subr.bf16.mxu1 %v8358_v58  ;;  %v8412_v58 = vld [vmem:[%s11557_s2 + $0x1fc] ss:$12 sps:$4 sm:$0xff]  }
 0x4fa   : > { %7673 = vmatpush3.bf16.msra.mxu1 %v8359_v59  ;;  %v8413_v59 = vld [vmem:[%s11557_s2 + $0x2c0] ss:$12 sps:$4 sm:$0xff]  }
 0x4fb   : > { %7674 = vmatprep.subr.bf16.mxu1 %v8363_v29  ;;  %v8410_v29 = vld [vmem:[%s11557_s2 + $0x1f8] ss:$12 sps:$4 sm:$0xff]  }
 0x4fe   : > { %7675 = vmatpush3.bf16.msra.mxu1 %v8364_v31  ;;  %v8414_v31 = vld [vmem:[%s11557_s2 + $0x200] ss:$12 sps:$4 sm:$0xff]  }
 0x4ff   : > { %7676 = vmatprep.subr.bf16.mxu1 %v8368_v39  ;;  %v8417_v39 = vld [vmem:[%s11557_s2 + $0x214] ss:$12 sps:$4 sm:$0xff]  }
 0x502   : > { %7677 = vmatpush3.bf16.msra.mxu1 %v8369_v35  ;;  %v8418_v35 = vld [vmem:[%s11557_s2 + $0x2d8] ss:$12 sps:$4 sm:$0xff]  }
 0x503   : > { %7678 = vmatprep.subr.bf16.mxu1 %v8373_v44  ;;  %v8419_v44 = vld [vmem:[%s11557_s2 + $0x218] ss:$12 sps:$4 sm:$0xff]  }
 0x506   : > { %7679 = vmatpush3.bf16.msra.mxu1 %v8374_v45  ;;  %v8423_v45 = vld [vmem:[%s11557_s2 + $0x2f0] ss:$12 sps:$4 sm:$0xff]  }
 0x507   : > { %7680 = vmatprep.subr.bf16.mxu1 %v8378_v48  ;;  %v8427_v48 = vld [vmem:[%s11557_s2 + $0x244] ss:$12 sps:$4 sm:$0xff]  }
 0x50a   : > { %7681 = vmatpush3.bf16.msra.mxu1 %v8379_v49  ;;  %v8425_v49 = vld [vmem:[%s11557_s2 + $0x240] ss:$12 sps:$4 sm:$0xff]  }
 0x50b   : > { %7682 = vmatprep.subr.bf16.mxu1 %v8383_v51  ;;  %v8428_v51 = vld [vmem:[%s11557_s2 + $0x258] ss:$12 sps:$4 sm:$0xff]  }
 0x50e   : > { %7683 = vmatpush3.bf16.msra.mxu1 %v8384_v42  ;;  %v8431_v42 = vld [vmem:[%s11557_s2 + $0x270] ss:$12 sps:$4 sm:$0xff]  }
 0x50f   : > { %7690 = vmatprep.subr.bf16.mxu1 %v8388_v62  ;;  %v8434_v62 = vld [vmem:[%s11557_s2 + $0x288] ss:$12 sps:$4 sm:$0xff]  }
 0x5ac   : > { %v2383_v63 = vpop.f32.mrb[20].mxu1 }
 0x5ad   : > { %v7837_v4 = vpop.f32.mrb[21].mxu1 }
 0x5ae   : > { %v2386_v5 = vpop.f32.mrb[22].mxu1  ;;  %v8437_v4 = vld [vmem:[%s11557_s2 + $0x2a0] ss:$12 sps:$4 sm:$0xff]  }
 0x5af   : > { %v2730_v7 = vpack.c.bf16 %v2386_v5, %v2383_v63  ;;  %v7838_v8 = vpop.f32.mrb[23].mxu1  ;;  %v8439_v63 = vld [vmem:[%s11557_s2 + $0x2a4] ss:$12 sps:$4 sm:$0xff]   ;;  %v8442_v5 = vld [vmem:[%s11557_s2 + $0x2bc] ss:$12 sps:$4 sm:$0xff]  }
 0x5b0   : > { %v8445_v8 = vld [vmem:[%s11557_s2 + $0x2d4] ss:$12 sps:$4 sm:$0xff]  }
 0x5b4   : > { %v2493_v9 = vpop.f32.mrb[24].mxu1 }
 0x5b5   : > { %v7849_v10 = vpop.f32.mrb[25].mxu1 }
 0x5b6   : > { %v2496_v11 = vpop.f32.mrb[26].mxu1  ;;  %v8448_v10 = vld [vmem:[%s11557_s2 + $0x2ec] ss:$12 sps:$4 sm:$0xff]  }
 0x5b7   : > { %v2731_v12 = vpack.c.bf16 %v2496_v11, %v2493_v9  ;;  %v7850_v43 = vpop.f32.mrb[27].mxu1  ;;  %v8443_v9 = vld [vmem:[%s11557_s2 + $0x2d0] ss:$12 sps:$4 sm:$0xff]   ;;  %v8446_v11 = vld [vmem:[%s11557_s2 + $0x2e8] ss:$12 sps:$4 sm:$0xff]  }
 0x5b9   : > { %3423 = vmatprep.mubr.bf16.mxu0 %v2731_v12  ;;  %3509 = vmatprep.mubr.bf16.mxu1 %v2731_v12 }
 0x5ba   : > { %3424 = vmatmul.mubr.bf16.vlgmr.msra.gmra.mrb[32].mxu0 %v2730_v7  ;;  %3510 = vmatmul.mubr.bf16.vlgmr.msra.gmra.mrb[36].mxu1 %v2730_v7  ;;  %v8440_v7 = vld [vmem:[%s11557_s2 + $0x2b8] ss:$12 sps:$4 sm:$0xff]  }
 0x5bb   : > { %3435 = vmatpush1.bf16.msra.mxu0 %v8385_v14  ;;  %7691 = vmatpush3.bf16.msra.mxu1 %v8389_v15 }
 0x5bc   : > { %v2603_v24 = vpop.f32.mrb[28].mxu1  ;;  %3436 = vmatprep.subr.bf16.mxu0 %v8392_v16  ;;  %7692 = vmatprep.subr.bf16.mxu1 %v8393_v20 }
 0x5bd   : > { %v7861_v6 = vpop.f32.mrb[29].mxu1 }
 0x5be   : > { %v2606_v28 = vpop.f32.mrb[30].mxu1 }
 0x5bf   : > { %v10153_v30 = vpack.c.bf16 %v2606_v28, %v2603_v24  ;;  %3437 = vmatpush1.bf16.msra.mxu0 %v8390_v22  ;;  %7693 = vmatpush3.bf16.msra.mxu1 %v8394_v23  ;;  %v7862_v32 = vpop.f32.mrb[31].mxu1  ;;  %v2862_v22 = vld [vmem:[%s11558_s3] sm:$0x7] }
 0x5c0   : > { %3438 = vmatprep.subr.bf16.mxu0 %v8397_v26  ;;  %7694 = vmatprep.subr.bf16.mxu1 %v8398_v3  ;;  %v2875_v23 = vrot.slane %v2862_v22, %v9317_v19 }
 0x5c3   : > { %3439 = vmatpush1.bf16.msra.mxu0 %v8395_v36  ;;  %7695 = vmatpush3.bf16.msra.mxu1 %v8399_v37 }
 0x5c4   : > { %v2713_v41 = vpop.f32.mrb[32].mxu1  ;;  %3440 = vmatprep.subr.bf16.mxu0 %v8402_v61  ;;  %7696 = vmatprep.subr.bf16.mxu1 %v8403_v0  ;;  %v2867_v0 = vrot.slane %v2862_v22, %v9323_v21 }
 0x5c5   : > { %v7873_v57 = vpop.f32.mrb[33].mxu1 }
 0x5c6   : > { %v2716_v25 = vpop.f32.mrb[34].mxu1 }
 0x5c7   : > { %v2733_v27 = vpack.c.bf16 %v2716_v25, %v2713_v41  ;;  %3441 = vmatpush1.bf16.msra.mxu0 %v8400_v2  ;;  %7697 = vmatpush3.bf16.msra.mxu1 %v8404_v55  ;;  %v7874_v34 = vpop.f32.mrb[35].mxu1  ;;  %v2871_v2 = vrot.slane %v2862_v22, %v9314_v18  ;;  %v8970_v25 = vld [vmem:[%s9165_s19 + $0x10] sm:$0xff]  ;;  %v8473_v22 = vld [vmem:[%s11563_s8 + $0x120] ss:$36 sps:$4 sm:$0xff]  }
 0x5c8   : > { %3442 = vmatprep.subr.bf16.mxu0 %v8407_v53  ;;  %7698 = vmatprep.subr.bf16.mxu1 %v8408_v56  ;;  %v8971_v34 = vld [vmem:[%s9165_s19] sm:$0xff] }
 0x5c9   : > { %3466 = vmatprep.mubr.bf16.mxu0 %v2733_v27  ;;  %3550 = vmatprep.mubr.bf16.mxu1 %v2733_v27 }
 0x5cb   : > { %3443 = vmatpush1.bf16.msra.mxu0 %v8405_v38  ;;  %7699 = vmatpush3.bf16.msra.mxu1 %v8409_v54 }
 0x5cc   : > { %3444 = vmatprep.subr.bf16.mxu0 %v8412_v58  ;;  %7700 = vmatprep.subr.bf16.mxu1 %v8413_v59  ;;  %v8972_v59 = vld [vmem:[%s9165_s19 + $0x8] sm:$0xff] }
 0x5cf   : > { %3445 = vmatpush1.bf16.msra.mxu0 %v8410_v29  ;;  %7701 = vmatpush3.bf16.msra.mxu1 %v8414_v31 }
 0x5d0   : > { %3446 = vmatprep.subr.bf16.mxu0 %v8417_v39  ;;  %7702 = vmatprep.subr.bf16.mxu1 %v8418_v35  ;;  %v8973_v39 = vld [vmem:[%s9165_s19 + $0x28] sm:$0xff] }
 0x5d3   : > { %3447 = vmatpush1.bf16.msra.mxu0 %v8415_v40  ;;  %7703 = vmatpush3.bf16.msra.mxu1 %v8419_v44  ;;  %v8974_v40 = vld [vmem:[%s9165_s19 + $0x18] sm:$0xff] }
 0x5d4   : > { %3448 = vmatprep.subr.bf16.mxu0 %v8422_v33  ;;  %7704 = vmatprep.subr.bf16.mxu1 %v8423_v45  ;;  %v8975_v33 = vld [vmem:[%s9165_s19 + $0x20] sm:$0xff]  ;;  %s7973_s19 = smul.u32 48, %s404_s15 }
 0x5d6   : > { %s406_s16 = scalar_lea.vmem [#allocation3], %s7973_s19  ;;  %s8982_s19 = scalar_lea.vmem %s8981_s29, 1536 }
 0x5d7   : > { %3449 = vmatpush1.bf16.msra.mxu0 %v8420_v46  ;;  %7705 = vmatpush3.bf16.msra.mxu1 %v8424_v47  ;;  %s6903_s18 = sshll.u32 %s406_s16, 4  ;;  %s11510_s18 = int_to_ptr.vmem [resolvable:$true] %s6903_s18 }
 0x5d8   : > { %3450 = vmatprep.subr.bf16.mxu0 %v8427_v48  ;;  %s8976_s26 = scalar_lea.vmem %s11510_s18, 768  ;;  %p8983_p0 = scmp.lt.s32.totalorder %s11510_s18, %s8981_s29 }
 0x5d9   : > { %p8977_p11 = scmp.ne.s32.totalorder %s11510_s18, %s8976_s26  ;;  %p8984_p1 = scmp.lt.s32.totalorder %s8982_s19, %s8976_s26 }
 0x5da   : > { %3551 = vmatmul.mubr.bf16.vlgmr.msra.gmra.mrb[40].mxu1 %v10153_v30 }
 0x5db   : > { %3451 = vmatpush1.bf16.msra.mxu0 %v8425_v49  ;;  %p8978_p12 = pnand %p8977_p11, %p9150_p5  ;;  %p8985_p2 = por %p8984_p1, %p8983_p0 }
 0x5dc   : > { %3452 = vmatprep.subr.bf16.mxu0 %v8430_v50 }
 0x5dd   : > { %p8979_p13 = pneg %p8978_p12 }
 0x5df   : > { %3453 = vmatpush1.bf16.msra.mxu0 %v8428_v51  ;;  %p8986_p3 = pnand %p8985_p2, %p8979_p13 }
 0x5e0   : > { %3454 = vmatprep.subr.bf16.mxu0 %v8433_v52  ;;  %v8449_v52 = vld [vmem:[%s11563_s8] ss:$36 sps:$4 sm:$0xff]  }
 0x5e3   : > { %3455 = vmatpush1.bf16.msra.mxu0 %v8431_v42  ;;  %v8451_v42 = vld [vmem:[%s11563_s8 + $0x4] ss:$36 sps:$4 sm:$0xff]  }
 0x5e4   : > { %3456 = vmatprep.subr.bf16.mxu0 %v8436_v60  ;;  %v8452_v60 = vld [vmem:[%s11563_s8 + $0x8] ss:$36 sps:$4 sm:$0xff]   ;;  %4663 = vmatprep.subr.bf16.mxu1 %v8451_v42 }
 0x5e5   : > { %4664 = vmatpush1.bf16.msra.mxu1 %v8449_v52 }
 0x5e7   : > { %3457 = vmatpush1.bf16.msra.mxu0 %v8434_v62  ;;  %v8454_v62 = vld [vmem:[%s11563_s8 + $0xc] ss:$36 sps:$4 sm:$0xff]  }
 0x5e8   : > { %3458 = vmatprep.subr.bf16.mxu0 %v8439_v63  ;;  %v8457_v63 = vld [vmem:[%s11563_s8 + $0x4c] ss:$36 sps:$4 sm:$0xff]  }
 0x5e9   : > { %4665 = vmatprep.subr.bf16.mxu1 %v8457_v63 }
 0x5eb   : > { %3459 = vmatpush1.bf16.msra.mxu0 %v8437_v4  ;;  %v8460_v4 = vld [vmem:[%s11563_s8 + $0x54] ss:$36 sps:$4 sm:$0xff]  }
 0x5ec   : > { %3460 = vmatprep.subr.bf16.mxu0 %v8442_v5  ;;  %v8455_v5 = vld [vmem:[%s11563_s8 + $0x48] ss:$36 sps:$4 sm:$0xff]  }
 0x5ed   : > { %4666 = vmatpush1.bf16.msra.mxu1 %v8455_v5 }
 0x5ef   : > { %3461 = vmatpush1.bf16.msra.mxu0 %v8440_v7  ;;  %v8458_v7 = vld [vmem:[%s11563_s8 + $0x50] ss:$36 sps:$4 sm:$0xff]  }
 0x5f0   : > { %3462 = vmatprep.subr.bf16.mxu0 %v8445_v8  ;;  %v8463_v8 = vld [vmem:[%s11563_s8 + $0x94] ss:$36 sps:$4 sm:$0xff]  }
 0x5f1   : > { %4667 = vmatprep.subr.bf16.mxu1 %v8463_v8 }
 0x5f3   : > { %3463 = vmatpush1.bf16.msra.mxu0 %v8443_v9  ;;  %v8466_v9 = vld [vmem:[%s11563_s8 + $0x9c] ss:$36 sps:$4 sm:$0xff]  }
 0x5f4   : > { %3464 = vmatprep.subr.bf16.mxu0 %v8448_v10  ;;  %v8461_v10 = vld [vmem:[%s11563_s8 + $0x90] ss:$36 sps:$4 sm:$0xff]  }
 0x5f5   : > { %4668 = vmatpush1.bf16.msra.mxu1 %v8461_v10  ;;  %v8511_v10 = vld [vmem:[%s11563_s8 + $0x2d4] ss:$36 sps:$4 sm:$0xff]  }
 0x5f7   : > { %3465 = vmatpush1.bf16.msra.mxu0 %v8446_v11  ;;  %v8464_v11 = vld [vmem:[%s11563_s8 + $0x98] ss:$36 sps:$4 sm:$0xff]  }
 0x5f8   : > { %4749 = vmatprep.subr.bf16.mxu0 %v8454_v62 }
 0x5fa   : > { %3467 = vmatmul.mubr.bf16.vlgmr.msra.gmra.mrb[32].mxu0 %v10153_v30 }
 0x5fb   : > { %4750 = vmatpush1.bf16.msra.mxu0 %v8452_v60 }
 0x5fc   : > { %4751 = vmatprep.subr.bf16.mxu0 %v8460_v4 }
 0x5ff   : > { %4752 = vmatpush1.bf16.msra.mxu0 %v8458_v7 }
 0x600   : > { %4753 = vmatprep.subr.bf16.mxu0 %v8466_v9 }
 0x603   : > { %4754 = vmatpush1.bf16.msra.mxu0 %v8464_v11  ;;  %v8514_v11 = vld [vmem:[%s11563_s8 + $0x2dc] ss:$36 sps:$4 sm:$0xff]  }
 0x68d   : > { %v7684_v12 = vpop.f32.mrb[36].mxu1 }
 0x68e   : > { %v7685_v43 = vpop.f32.mrb[37].mxu1 }
 0x68f   : > { %v7686_v14 = vadd.f32 %v7685_v43, %v7684_v12  ;;  %v7687_v15 = vpop.f32.mrb[38].mxu1  ;;  %v8469_v12 = vld [vmem:[%s11563_s8 + $0xdc] ss:$36 sps:$4 sm:$0xff]   ;;  %v8472_v43 = vld [vmem:[%s11563_s8 + $0xe4] ss:$36 sps:$4 sm:$0xff]  }
 0x690   : > { %v7688_v16 = vpop.f32.mrb[39].mxu1  ;;  %4669 = vmatprep.subr.bf16.mxu1 %v8469_v12  ;;  %4755 = vmatprep.subr.bf16.mxu0 %v8472_v43  ;;  %v8509_v12 = vld [vmem:[%s11563_s8 + $0x2d0] ss:$36 sps:$4 sm:$0xff]   ;;  %v8512_v43 = vld [vmem:[%s11563_s8 + $0x2d8] ss:$36 sps:$4 sm:$0xff]  }
 0x691   : > { %v7689_v20 = vadd.f32 %v7688_v16, %v7687_v15  ;;  %v3512_v3 = vadd.f32 %v7686_v14, %v2875_v23  ;;  %v8467_v14 = vld [vmem:[%s11563_s8 + $0xd8] ss:$36 sps:$4 sm:$0xff]   ;;  %v8470_v15 = vld [vmem:[%s11563_s8 + $0xe0] ss:$36 sps:$4 sm:$0xff]  }
 0x692   : > { %v8475_v16 = vld [vmem:[%s11563_s8 + $0x124] ss:$36 sps:$4 sm:$0xff]   ;;  %4670 = vmatpush1.bf16.msra.mxu1 %v8467_v14  ;;  %4756 = vmatpush1.bf16.msra.mxu0 %v8470_v15  ;;  %v8517_v14 = vld [vmem:[%s11563_s8 + $0x31c] ss:$36 sps:$4 sm:$0xff]  }
 0x693   : > { %v3515_v32 = vadd.f32 %v7689_v20, %v2875_v23  ;;  %v8478_v20 = vld [vmem:[%s11563_s8 + $0x12c] ss:$36 sps:$4 sm:$0xff]   ;;  %4671 = vmatprep.subr.bf16.mxu1 %v8475_v16  ;;  %v8520_v15 = vld [vmem:[%s11563_s8 + $0x324] ss:$36 sps:$4 sm:$0xff]   ;;  %v8515_v16 = vld [vmem:[%s11563_s8 + $0x318] ss:$36 sps:$4 sm:$0xff]  }
 0x694   : > { %v8476_v23 = vld [vmem:[%s11563_s8 + $0x128] ss:$36 sps:$4 sm:$0xff]   ;;  %4757 = vmatprep.subr.bf16.mxu0 %v8478_v20  ;;  %v8518_v20 = vld [vmem:[%s11563_s8 + $0x320] ss:$36 sps:$4 sm:$0xff]  }
 0x696   : > { %4672 = vmatpush1.bf16.msra.mxu1 %v8473_v22  ;;  %4758 = vmatpush1.bf16.msra.mxu0 %v8476_v23  ;;  %v8523_v22 = vld [vmem:[%s11563_s8 + $0x364] ss:$36 sps:$4 sm:$0xff]   ;;  %v8526_v23 = vld [vmem:[%s11563_s8 + $0x36c] ss:$36 sps:$4 sm:$0xff]  }
 0x6ad   : > { %v7706_v24 = vpop.f32.mrb[40].mxu1 }
 0x6ae   : > { %v7707_v26 = vpop.f32.mrb[41].mxu1 }
 0x6af   : > { %v7708_v6 = vadd.f32 %v7707_v26, %v7706_v24  ;;  %v7709_v28 = vpop.f32.mrb[42].mxu1  ;;  %v8481_v24 = vld [vmem:[%s11563_s8 + $0x16c] ss:$36 sps:$4 sm:$0xff]   ;;  %v8484_v26 = vld [vmem:[%s11563_s8 + $0x174] ss:$36 sps:$4 sm:$0xff]  }
 0x6b0   : > { %v7710_v30 = vpop.f32.mrb[43].mxu1  ;;  %4673 = vmatprep.subr.bf16.mxu1 %v8481_v24  ;;  %4759 = vmatprep.subr.bf16.mxu0 %v8484_v26  ;;  %v8521_v24 = vld [vmem:[%s11563_s8 + $0x360] ss:$36 sps:$4 sm:$0xff]   ;;  %v8524_v26 = vld [vmem:[%s11563_s8 + $0x368] ss:$36 sps:$4 sm:$0xff]  }
 0x6b1   : > { %v3553_v36 = vadd.f32 %v7708_v6, %v3512_v3  ;;  %v7711_v37 = vadd.f32 %v7710_v30, %v7709_v28  ;;  %v8479_v3 = vld [vmem:[%s11563_s8 + $0x168] ss:$36 sps:$4 sm:$0xff]   ;;  %v8482_v6 = vld [vmem:[%s11563_s8 + $0x170] ss:$36 sps:$4 sm:$0xff]   ;;  %v8490_v30 = vld [vmem:[%s11563_s8 + $0x1bc] ss:$36 sps:$4 sm:$0xff]  }
 0x6b2   : > { %v8487_v28 = vld [vmem:[%s11563_s8 + $0x1b4] ss:$36 sps:$4 sm:$0xff]   ;;  %4674 = vmatpush1.bf16.msra.mxu1 %v8479_v3  ;;  %4760 = vmatpush1.bf16.msra.mxu0 %v8482_v6  ;;  %v8529_v3 = vld [vmem:[%s11563_s8 + $0x3ac] ss:$36 sps:$4 sm:$0xff]  }
 0x6b3   : > { %v3556_v61 = vadd.f32 %v7711_v37, %v3515_v32  ;;  %v10278_v27 = vadd.f32 %v8970_v25, %v3553_v36  ;;  %v8485_v32 = vld [vmem:[%s11563_s8 + $0x1b0] ss:$36 sps:$4 sm:$0xff]   ;;  %4675 = vmatprep.subr.bf16.mxu1 %v8487_v28  ;;  %v8488_v36 = vld [vmem:[%s11563_s8 + $0x1b8] ss:$36 sps:$4 sm:$0xff]   ;;  %4761 = vmatprep.subr.bf16.mxu0 %v8490_v30  ;;  %v8527_v28 = vld [vmem:[%s11563_s8 + $0x3a8] ss:$36 sps:$4 sm:$0xff]  }
 0x6b4   : > { %v8493_v37 = vld [vmem:[%s11563_s8 + $0x1fc] ss:$36 sps:$4 sm:$0xff]   ;;  %v8508_v25 = vld [vmem:[%s11563_s8 + $0x294] ss:$36 sps:$4 sm:$0xff]  }
 0x6b5   : > { %v10287_v35 = vadd.f32 %v8973_v39, %v3556_v61  ;;  %v3568_v47 = vsel %vm422_vm0, %v10278_v27, 0.0  ;;  %v8496_v61 = vld [vmem:[%s11563_s8 + $0x204] ss:$36 sps:$4 sm:$0xff]   ;;  %v8532_v6 = vld [vmem:[%s11563_s8 + $0x3b4] ss:$36 sps:$4 sm:$0xff]  }
 0x6b6   : > { %4676 = vmatpush1.bf16.msra.mxu1 %v8485_v32  ;;  %4762 = vmatpush1.bf16.msra.mxu0 %v8488_v36  ;;  %v8530_v30 = vld [vmem:[%s11563_s8 + $0x3b0] ss:$36 sps:$4 sm:$0xff]   ;;  %v8538_v36 = vld [vmem:[%s11563_s8 + $0x3fc] ss:$36 sps:$4 sm:$0xff]  }
 0x6b7   : > { %v3573_v50 = vsel %vm422_vm0, %v10287_v35, 0.0  ;;  %4677 = vmatprep.subr.bf16.mxu1 %v8493_v37  ;;  %4763 = vmatprep.subr.bf16.mxu0 %v8496_v61  ;;  %v8535_v32 = vld [vmem:[%s11563_s8 + $0x3f4] ss:$36 sps:$4 sm:$0xff]  }
 0x6b8   : > { %v8533_v37 = vld [vmem:[%s11563_s8 + $0x3f0] ss:$36 sps:$4 sm:$0xff]   ;;  %v8536_v61 = vld [vmem:[%s11563_s8 + $0x3f8] ss:$36 sps:$4 sm:$0xff]  }
 0x6cd   : > { %v3468_v55 = vpop.f32.mrb[32].mxu0 }
 0x6ce   : > { %v7901_v41 = vadd.f32 %v3468_v55, %v2867_v0  ;;  %v3470_v53 = vpop.f32.mrb[33].mxu0  ;;  %v8499_v55 = vld [vmem:[%s11563_s8 + $0x244] ss:$36 sps:$4 sm:$0xff]  }
 0x6cf   : > { %v7902_v56 = vadd.f32 %v3470_v53, %v2871_v2  ;;  %v3472_v57 = vpop.f32.mrb[34].mxu0  ;;  %v8497_v53 = vld [vmem:[%s11563_s8 + $0x240] ss:$36 sps:$4 sm:$0xff]  }
 0x6d0   : > { %v10281_v38 = vadd.f32 %v8971_v34, %v7901_v41  ;;  %v7903_v54 = vadd.f32 %v3472_v57, %v2867_v0  ;;  %v3474_v58 = vpop.f32.mrb[35].mxu0  ;;  %v8491_v0 = vld [vmem:[%s11563_s8 + $0x1f8] ss:$36 sps:$4 sm:$0xff]   ;;  %v8502_v41 = vld [vmem:[%s11563_s8 + $0x24c] ss:$36 sps:$4 sm:$0xff]  }
 0x6d1   : > { %v10284_v29 = vadd.f32 %v8972_v59, %v7902_v56  ;;  %v7904_v31 = vadd.f32 %v3474_v58, %v2871_v2  ;;  %v8494_v2 = vld [vmem:[%s11563_s8 + $0x200] ss:$36 sps:$4 sm:$0xff]   ;;  %4678 = vmatpush1.bf16.msra.mxu1 %v8491_v0  ;;  %v8500_v56 = vld [vmem:[%s11563_s8 + $0x248] ss:$36 sps:$4 sm:$0xff]  }
 0x6d2   : > { %v10290_v44 = vadd.f32 %v8974_v40, %v7903_v54  ;;  %4764 = vmatpush1.bf16.msra.mxu0 %v8494_v2  ;;  %4679 = vmatprep.subr.bf16.mxu1 %v8499_v55  ;;  %v8505_v57 = vld [vmem:[%s11563_s8 + $0x28c] ss:$36 sps:$4 sm:$0xff]   ;;  %v8541_v0 = vld [vmem:[%s11563_s8 + $0x43c] ss:$36 sps:$4 sm:$0xff]   ;;  %v8544_v2 = vld [vmem:[%s11563_s8 + $0x444] ss:$36 sps:$4 sm:$0xff]  }
 0x6d3   : > { %v10293_v45 = vadd.f32 %v8975_v33, %v7904_v31  ;;  %v3567_v46 = vadd.f32 %v10284_v29, %v10281_v38  ;;  %4765 = vmatprep.subr.bf16.mxu0 %v8502_v41  ;;  %v8503_v34 = vld [vmem:[%s11563_s8 + $0x288] ss:$36 sps:$4 sm:$0xff]   ;;  %v8506_v54 = vld [vmem:[%s11563_s8 + $0x290] ss:$36 sps:$4 sm:$0xff]   ;;  %v8539_v55 = vld [vmem:[%s11563_s8 + $0x438] ss:$36 sps:$4 sm:$0xff]  }
 0x6d4   : > { %v8542_v41 = vld [vmem:[%s11563_s8 + $0x440] ss:$36 sps:$4 sm:$0xff]  }
 0x6d5   : > { %v3569_v48 = vadd.f32 %v3568_v47, %v3567_v46  ;;  %v3572_v49 = vadd.f32 %v10293_v45, %v10290_v44  ;;  %4680 = vmatpush1.bf16.msra.mxu1 %v8497_v53  ;;  %v3820_v53 = vld [vmem:[%s11563_s8 + $0x480] sm:$0xff] }
 0x6d6   : > { %4766 = vmatpush1.bf16.msra.mxu0 %v8500_v56  ;;  %4681 = vmatprep.subr.bf16.mxu1 %v8505_v57  ;;  %v7432_v56 = vcombine.high %v3820_v53, %v3820_v53  ;;  %v3821_v57 = vld [vmem:[%s11563_s8 + $0x488] sm:$0xff] }
 0x6d7   : > { %3570 = vadd.xlane.f32.xlu0 %v3569_v48  ;;  %v3574_v51 = vadd.f32 %v3573_v50, %v3572_v49  ;;  %4767 = vmatprep.subr.bf16.mxu0 %v8508_v25  ;;  %v7434_v25 = vcombine.high %v3821_v57, %v3821_v57 }
 0x6d9   : > { %3575 = vadd.xlane.f32.xlu1 %v3574_v51  ;;  %4682 = vmatpush1.bf16.msra.mxu1 %v8503_v34 }
 0x6da   : > { %4768 = vmatpush1.bf16.msra.mxu0 %v8506_v54  ;;  %4683 = vmatprep.subr.bf16.mxu1 %v8511_v10 }
 0x6db   : > { %4769 = vmatprep.subr.bf16.mxu0 %v8514_v11 }
 0x6dd   : > { %4684 = vmatpush1.bf16.msra.mxu1 %v8509_v12 }
 0x6de   : > { %4770 = vmatpush1.bf16.msra.mxu0 %v8512_v43  ;;  %4685 = vmatprep.subr.bf16.mxu1 %v8517_v14  ;;  %v7431_v14 = vcombine.low %v3820_v53, %v3820_v53  ;;  %v8558_v53 = vld [vmem:[%s11563_s8 + $0x60] ss:$36 sps:$4 sm:$0xff]  }
 0x6df   : > { %4771 = vmatprep.subr.bf16.mxu0 %v8520_v15  ;;  %v7433_v15 = vcombine.low %v3821_v57, %v3821_v57  ;;  %v8566_v57 = vld [vmem:[%s11563_s8 + $0xac] ss:$36 sps:$4 sm:$0xff]  }
 0x6e1   : > { %4686 = vmatpush1.bf16.msra.mxu1 %v8515_v16 }
 0x6e2   : > { %4772 = vmatpush1.bf16.msra.mxu0 %v8518_v20  ;;  %4687 = vmatprep.subr.bf16.mxu1 %v8523_v22 }
 0x6e3   : > { %4773 = vmatprep.subr.bf16.mxu0 %v8526_v23 }
 0x6e5   : > { %4688 = vmatpush1.bf16.msra.mxu1 %v8521_v24 }
 0x6e6   : > { %4774 = vmatpush1.bf16.msra.mxu0 %v8524_v26  ;;  %4689 = vmatprep.subr.bf16.mxu1 %v8529_v3  ;;  %v8551_v26 = vld [vmem:[%s11563_s8 + $0x14] ss:$36 sps:$4 sm:$0xff]   ;;  %v8554_v3 = vld [vmem:[%s11563_s8 + $0x1c] ss:$36 sps:$4 sm:$0xff]  }
 0x6e7   : > { %4775 = vmatprep.subr.bf16.mxu0 %v8532_v6 }
 0x6e9   : > { %4690 = vmatpush1.bf16.msra.mxu1 %v8527_v28 }
 0x6ea   : > { %4776 = vmatpush1.bf16.msra.mxu0 %v8530_v30  ;;  %4691 = vmatprep.subr.bf16.mxu1 %v8535_v32 }
 0x6eb   : > { %4777 = vmatprep.subr.bf16.mxu0 %v8538_v36 }
 0x6ed   : > { %4692 = vmatpush1.bf16.msra.mxu1 %v8533_v37 }
 0x6ee   : > { %4778 = vmatpush1.bf16.msra.mxu0 %v8536_v61  ;;  %4693 = vmatprep.subr.bf16.mxu1 %v8541_v0  ;;  %v8552_v61 = vld [vmem:[%s11563_s8 + $0x18] ss:$36 sps:$4 sm:$0xff]  }
 0x6ef   : > { %4779 = vmatprep.subr.bf16.mxu0 %v8544_v2  ;;  %v8557_v2 = vld [vmem:[%s11563_s8 + $0x5c] ss:$36 sps:$4 sm:$0xff]  }
 0x6f1   : > { %4694 = vmatpush1.bf16.msra.mxu1 %v8539_v55  ;;  %v8560_v55 = vld [vmem:[%s11563_s8 + $0x64] ss:$36 sps:$4 sm:$0xff]  }
 0x6f2   : > { %4780 = vmatpush1.bf16.msra.mxu0 %v8542_v41  ;;  %7440 = vmatprep.subr.msk.bf16.mxu1 %vm1707_vm1, %v7432_v56  ;;  %v8555_v41 = vld [vmem:[%s11563_s8 + $0x58] ss:$36 sps:$4 sm:$0xff]   ;;  %v8563_v56 = vld [vmem:[%s11563_s8 + $0xa4] ss:$36 sps:$4 sm:$0xff]  }
 0x6f3   : > { %7442 = vmatprep.subr.msk.bf16.mxu0 %vm1707_vm1, %v7434_v25  ;;  %v8561_v25 = vld [vmem:[%s11563_s8 + $0xa0] ss:$36 sps:$4 sm:$0xff]  }
 0x764   : > { %v3571_v58 = vpop.xlane.xlu0 %3570 }
 0x765   : > { %v3577_v59 = vmul.f32 0.003787879, %v3571_v58 }
 0x766   : > { %v3576_v31 = vpop.xlane.xlu1 %3575 }
 0x767   : > { %v10424_v39 = vsub.f32 %v10281_v38, %v3577_v59  ;;  %v10427_v40 = vsub.f32 %v10284_v29, %v3577_v59  ;;  %v10430_v33 = vsub.f32 %v10278_v27, %v3577_v59  ;;  %v3578_v46 = vmul.f32 0.003787879, %v3576_v31 }
 0x769   : > { %v10433_v47 = vsub.f32 %v10290_v44, %v3578_v46  ;;  %v10436_v48 = vsub.f32 %v10293_v45, %v3578_v46  ;;  %v10439_v49 = vsub.f32 %v10287_v35, %v3578_v46  ;;  %v3585_v50 = vmul.f32 %v10424_v39, %v10424_v39 }
 0x76a   : > { %v3586_v51 = vmul.f32 %v10427_v40, %v10427_v40  ;;  %v3587_v52 = vmul.f32 %v10430_v33, %v10430_v33 }
 0x76b   : > { %v3588_v42 = vmul.f32 %v10433_v47, %v10433_v47  ;;  %v3589_v60 = vmul.f32 %v10436_v48, %v10436_v48  ;;  %v3590_v62 = vmul.f32 %v10439_v49, %v10439_v49 }
 0x76c   : > { %v3591_v63 = vadd.f32 %v3586_v51, %v3585_v50  ;;  %v3592_v4 = vsel %vm422_vm0, %v3587_v52, 0.0  ;;  %v3565_v50 = vld [vmem:[%s11561_s6] sm:$0x7] }
 0x76d   : > { %v3596_v5 = vadd.f32 %v3589_v60, %v3588_v42  ;;  %v3597_v7 = vsel %vm422_vm0, %v3590_v62, 0.0  ;;  %v3566_v51 = vld [vmem:[%s11562_s7] sm:$0x7]  ;;  %v3621_v52 = vrot.slane %v3565_v50, %v9314_v18  ;;  %v3617_v42 = vrot.slane %v3565_v50, %v9323_v21 }
 0x76e   : > { %v3593_v8 = vadd.f32 %v3592_v4, %v3591_v63  ;;  %v3647_v32 = vrot.slane %v3566_v51, %v9317_v19 }
 0x76f   : > { %v3598_v9 = vadd.f32 %v3597_v7, %v3596_v5  ;;  %v3643_v7 = vrot.slane %v3566_v51, %v9314_v18 }
 0x770   : > { %3594 = vadd.xlane.f32.xlu0 %v3593_v8 }
 0x771   : > { %3599 = vadd.xlane.f32.xlu1 %v3598_v9  ;;  %v3639_v9 = vrot.slane %v3566_v51, %v9323_v21  ;;  %v8573_v51 = vld [vmem:[%s11563_s8 + $0x130] ss:$36 sps:$4 sm:$0xff]  }
 0x7fd   : > { %v3595_v34 = vpop.xlane.xlu0 %3594 }
 0x7fe   : > { %v3601_v54 = vmul.f32 0.003787879, %v3595_v34  ;;  %v3600_v58 = vpop.xlane.xlu1 %3599  ;;  %v8564_v34 = vld [vmem:[%s11563_s8 + $0xa8] ss:$36 sps:$4 sm:$0xff]  }
 0x7ff   : > { %v3602_v59 = vmul.f32 0.003787879, %v3600_v58  ;;  %v8572_v58 = vld [vmem:[%s11563_s8 + $0xf4] ss:$36 sps:$4 sm:$0xff]  }
 0x800   : > { %v3603_v31 = vadd.f32 1e-05, %v3601_v54  ;;  %v8569_v54 = vld [vmem:[%s11563_s8 + $0xec] ss:$36 sps:$4 sm:$0xff]  }
 0x801   : > { %v3604_v46 = vadd.f32 1e-05, %v3602_v59  ;;  %v8567_v59 = vld [vmem:[%s11563_s8 + $0xe8] ss:$36 sps:$4 sm:$0xff]  }
 0x802   : > { %8966 = vrsqrt.f32 %v3603_v31  ;;  %v8570_v31 = vld [vmem:[%s11563_s8 + $0xf0] ss:$36 sps:$4 sm:$0xff]  }
 0x803   : > { %8968 = vrsqrt.f32 %v3604_v46  ;;  %v8575_v46 = vld [vmem:[%s11563_s8 + $0x134] ss:$36 sps:$4 sm:$0xff]  }
 0x80c   : > { %v8967_v60 = vpop.eup %8966 }
 0x80d   : > { %v8969_v62 = vpop.eup %8968  ;;  %v3608_v63 = vmul.f32 %v8967_v60, %v10427_v40  ;;  %v3607_v4 = vmul.f32 %v8967_v60, %v10424_v39  ;;  %v3609_v6 = vmul.f32 %v8967_v60, %v10430_v33  ;;  %v8549_v33 = vld [vmem:[%s11563_s8 + $0x10] ss:$36 sps:$4 sm:$0xff]   ;;  %v8584_v60 = vld [vmem:[%s11563_s8 + $0x184] ss:$36 sps:$4 sm:$0xff]  }
 0x80e   : > { %v3611_v5 = vmul.f32 %v8969_v62, %v10436_v48  ;;  %v3610_v8 = vmul.f32 %v8969_v62, %v10433_v47  ;;  %v4637_v48 = vsel %vm1707_vm1, %v7431_v14, 0  ;;  %v4643_v47 = vsel %vm1707_vm1, %v7433_v15, 0  ;;  %v8602_v14 = vld [vmem:[%s11563_s8 + $0x25c] ss:$36 sps:$4 sm:$0xff]   ;;  %v8597_v15 = vld [vmem:[%s11563_s8 + $0x250] ss:$36 sps:$4 sm:$0xff]  }
 0x80f   : > { %v3630_v10 = vmul.f32 %v3621_v52, %v3608_v63  ;;  %v3629_v11 = vmul.f32 %v3617_v42, %v3607_v4  ;;  %v3612_v24 = vmul.f32 %v8969_v62, %v10439_v49  ;;  %v3625_v49 = vrot.slane %v3565_v50, %v9317_v19  ;;  %v8578_v50 = vld [vmem:[%s11563_s8 + $0x13c] ss:$36 sps:$4 sm:$0xff]   ;;  %v8587_v4 = vld [vmem:[%s11563_s8 + $0x1c4] ss:$36 sps:$4 sm:$0xff]  }
 0x810   : > { %v3633_v12 = vmul.f32 %v3621_v52, %v3611_v5  ;;  %v3632_v43 = vmul.f32 %v3617_v42, %v3610_v8  ;;  %v8576_v52 = vld [vmem:[%s11563_s8 + $0x138] ss:$36 sps:$4 sm:$0xff]   ;;  %v8582_v63 = vld [vmem:[%s11563_s8 + $0x180] ss:$36 sps:$4 sm:$0xff]   ;;  %v8590_v5 = vld [vmem:[%s11563_s8 + $0x1cc] ss:$36 sps:$4 sm:$0xff]  }
 0x811   : > { %v3652_v16 = vadd.f32 %v3643_v7, %v3630_v10  ;;  %v3651_v22 = vadd.f32 %v3639_v9, %v3629_v11  ;;  %v3634_v28 = vmul.f32 %v3625_v49, %v3612_v24  ;;  %v3631_v30 = vmul.f32 %v3625_v49, %v3609_v6  ;;  %v8581_v42 = vld [vmem:[%s11563_s8 + $0x17c] ss:$36 sps:$4 sm:$0xff]   ;;  %v8588_v8 = vld [vmem:[%s11563_s8 + $0x1c8] ss:$36 sps:$4 sm:$0xff]   ;;  %v8596_v10 = vld [vmem:[%s11563_s8 + $0x214] ss:$36 sps:$4 sm:$0xff]  }
 0x812   : > { %v3655_v20 = vadd.f32 %v3643_v7, %v3633_v12  ;;  %v3654_v40 = vadd.f32 %v3639_v9, %v3632_v43  ;;  %v8579_v62 = vld [vmem:[%s11563_s8 + $0x178] ss:$36 sps:$4 sm:$0xff]   ;;  %v8585_v7 = vld [vmem:[%s11563_s8 + $0x1c0] ss:$36 sps:$4 sm:$0xff]   ;;  %v8593_v9 = vld [vmem:[%s11563_s8 + $0x20c] ss:$36 sps:$4 sm:$0xff]  }
 0x813   : > { %v3656_v36 = vadd.f32 %v3647_v32, %v3634_v28  ;;  %v3653_v37 = vadd.f32 %v3647_v32, %v3631_v30  ;;  %v8591_v11 = vld [vmem:[%s11563_s8 + $0x208] ss:$36 sps:$4 sm:$0xff]   ;;  %v8594_v12 = vld [vmem:[%s11563_s8 + $0x210] ss:$36 sps:$4 sm:$0xff]  }
 0x814   : > { %v10549_v23 = vpack.c.bf16 %v3655_v20, %v3652_v16  ;;  %v10551_v39 = vpack.c.bf16 %v3654_v40, %v3651_v22  ;;  %v8599_v43 = vld [vmem:[%s11563_s8 + $0x254] ss:$36 sps:$4 sm:$0xff]   ;;  %v8605_v20 = vld [vmem:[%s11563_s8 + $0x29c] ss:$36 sps:$4 sm:$0xff]   ;;  %v8608_v22 = vld [vmem:[%s11563_s8 + $0x2a4] ss:$36 sps:$4 sm:$0xff]  }
 0x815   : > { %v10577_v0 = vpack.c.bf16 %v3656_v36, %v3653_v37  ;;  %v8600_v16 = vld [vmem:[%s11563_s8 + $0x258] ss:$36 sps:$4 sm:$0xff]   ;;  %v8614_v24 = vld [vmem:[%s11563_s8 + $0x2ec] ss:$36 sps:$4 sm:$0xff]  }
 0x816   : > { %4695 = vmatprep.mubr.bf16.mxu1 %v10549_v23  ;;  %4781 = vmatprep.mubr.bf16.mxu0 %v10549_v23  ;;  %v8603_v40 = vld [vmem:[%s11563_s8 + $0x298] ss:$36 sps:$4 sm:$0xff]   ;;  %v8617_v6 = vld [vmem:[%s11563_s8 + $0x32c] ss:$36 sps:$4 sm:$0xff]  }
 0x817   : > { %4696 = vmatmul.mubr.bf16.vlgmr.msra.gmra.mrb[44].mxu1 %v10551_v39  ;;  %4782 = vmatmul.mubr.bf16.vlgmr.msra.gmra.mrb[36].mxu0 %v10551_v39  ;;  %v8620_v49 = vld [vmem:[%s11563_s8 + $0x334] ss:$36 sps:$4 sm:$0xff]   ;;  %v8615_v28 = vld [vmem:[%s11563_s8 + $0x328] ss:$36 sps:$4 sm:$0xff]   ;;  %v8626_v36 = vld [vmem:[%s11563_s8 + $0x37c] ss:$36 sps:$4 sm:$0xff]  }
 0x818   : > { %4707 = vmatpush1.bf16.msra.mxu1 %v4637_v48  ;;  %4793 = vmatpush1.bf16.msra.mxu0 %v4643_v47  ;;  %v8606_v48 = vld [vmem:[%s11563_s8 + $0x2a0] ss:$36 sps:$4 sm:$0xff]   ;;  %v8618_v30 = vld [vmem:[%s11563_s8 + $0x330] ss:$36 sps:$4 sm:$0xff]  }
 0x819   : > { %4738 = vmatprep.mubr.bf16.mxu1 %v9040_v1  ;;  %4824 = vmatprep.mubr.bf16.mxu0 %v9040_v1  ;;  %v8611_v47 = vld [vmem:[%s11563_s8 + $0x2e4] ss:$36 sps:$4 sm:$0xff]   ;;  %v8623_v32 = vld [vmem:[%s11563_s8 + $0x374] ss:$36 sps:$4 sm:$0xff]  }
 0x81a   : > { %4835 = vmatprep.subr.bf16.mxu1 %v8551_v26  ;;  %4921 = vmatprep.subr.bf16.mxu0 %v8554_v3  ;;  %v8609_v26 = vld [vmem:[%s11563_s8 + $0x2e0] ss:$36 sps:$4 sm:$0xff]   ;;  %v8612_v3 = vld [vmem:[%s11563_s8 + $0x2e8] ss:$36 sps:$4 sm:$0xff]   ;;  %v8621_v37 = vld [vmem:[%s11563_s8 + $0x370] ss:$36 sps:$4 sm:$0xff]  }
 0x823   : > { %7441 = vmatmul.mubr.msk.bf16.vlgmr.msra.gmra.mrb[44].mxu1 %vm422_vm0, %v10577_v0  ;;  %7443 = vmatmul.mubr.msk.bf16.vlgmr.msra.gmra.mrb[36].mxu0 %vm422_vm0, %v10577_v0 }
 0x824   : > { %4836 = vmatpush1.bf16.msra.mxu1 %v8549_v33  ;;  %4922 = vmatpush1.bf16.msra.mxu0 %v8552_v61  ;;  %v8624_v33 = vld [vmem:[%s11563_s8 + $0x378] ss:$36 sps:$4 sm:$0xff]  }
 0x825   : > { %4867 = vmatprep.mubr.bf16.mxu1 %v10549_v23  ;;  %4953 = vmatprep.mubr.bf16.mxu0 %v10549_v23  ;;  %v8629_v61 = vld [vmem:[%s11563_s8 + $0x3bc] ss:$36 sps:$4 sm:$0xff]  }
 0x826   : > { %4837 = vmatprep.subr.bf16.mxu1 %v8557_v2  ;;  %4923 = vmatprep.subr.bf16.mxu0 %v8560_v55  ;;  %v8632_v2 = vld [vmem:[%s11563_s8 + $0x3c4] ss:$36 sps:$4 sm:$0xff]   ;;  %v8627_v55 = vld [vmem:[%s11563_s8 + $0x3b8] ss:$36 sps:$4 sm:$0xff]  }
 0x828   : > { %4838 = vmatpush1.bf16.msra.mxu1 %v8555_v41  ;;  %4924 = vmatpush1.bf16.msra.mxu0 %v8558_v53  ;;  %v8630_v41 = vld [vmem:[%s11563_s8 + $0x3c0] ss:$36 sps:$4 sm:$0xff]  }
 0x829   : > { %4839 = vmatprep.subr.bf16.mxu1 %v8563_v56  ;;  %4925 = vmatprep.subr.bf16.mxu0 %v8566_v57  ;;  %v8635_v53 = vld [vmem:[%s11563_s8 + $0x404] ss:$36 sps:$4 sm:$0xff]   ;;  %v8638_v56 = vld [vmem:[%s11563_s8 + $0x40c] ss:$36 sps:$4 sm:$0xff]  }
 0x82a   : > { %v8633_v57 = vld [vmem:[%s11563_s8 + $0x400] ss:$36 sps:$4 sm:$0xff]  }
 0x82c   : > { %4840 = vmatpush1.bf16.msra.mxu1 %v8561_v25  ;;  %4926 = vmatpush1.bf16.msra.mxu0 %v8564_v34  ;;  %v8636_v25 = vld [vmem:[%s11563_s8 + $0x408] ss:$36 sps:$4 sm:$0xff]  }
 0x82d   : > { %4841 = vmatprep.subr.bf16.mxu1 %v8569_v54  ;;  %4927 = vmatprep.subr.bf16.mxu0 %v8572_v58  ;;  %v8641_v34 = vld [vmem:[%s11563_s8 + $0x44c] ss:$36 sps:$4 sm:$0xff]   ;;  %v8644_v54 = vld [vmem:[%s11563_s8 + $0x454] ss:$36 sps:$4 sm:$0xff]  }
 0x82e   : > { %v3822_v58 = vld [vmem:[%s11563_s8 + $0x490] sm:$0xff] }
 0x830   : > { %4842 = vmatpush1.bf16.msra.mxu1 %v8567_v59  ;;  %4928 = vmatpush1.bf16.msra.mxu0 %v8570_v31  ;;  %v3823_v59 = vld [vmem:[%s11563_s8 + $0x498] sm:$0xff]  ;;  %v8639_v31 = vld [vmem:[%s11563_s8 + $0x448] ss:$36 sps:$4 sm:$0xff]  }
 0x831   : > { %4843 = vmatprep.subr.bf16.mxu1 %v8575_v46  ;;  %4929 = vmatprep.subr.bf16.mxu0 %v8578_v50  ;;  %v8642_v46 = vld [vmem:[%s11563_s8 + $0x450] ss:$36 sps:$4 sm:$0xff]   ;;  %v7436_v50 = vcombine.high %v3822_v58, %v3822_v58 }
 0x834   : > { %4844 = vmatpush1.bf16.msra.mxu1 %v8573_v51  ;;  %4930 = vmatpush1.bf16.msra.mxu0 %v8576_v52  ;;  %v7435_v51 = vcombine.low %v3822_v58, %v3822_v58  ;;  %v7438_v52 = vcombine.high %v3823_v59, %v3823_v59  ;;  %v8675_v58 = vld [vmem:[%s11565_s10 + $0x48] ss:$12 sps:$4 sm:$0xff]  }
 0x835   : > { %4845 = vmatprep.subr.bf16.mxu1 %v8581_v42  ;;  %4931 = vmatprep.subr.bf16.mxu0 %v8584_v60  ;;  %v7437_v42 = vcombine.low %v3823_v59, %v3823_v59  ;;  %v8680_v59 = vld [vmem:[%s11565_s10 + $0x64] ss:$12 sps:$4 sm:$0xff]  }
 0x836   : > { %v4649_v60 = vsel %vm1707_vm1, %v7435_v51, 0  ;;  %v8686_v51 = vld [vmem:[%s11565_s10 + $0x94] ss:$12 sps:$4 sm:$0xff]  }
 0x838   : > { %4846 = vmatpush1.bf16.msra.mxu1 %v8579_v62  ;;  %4932 = vmatpush1.bf16.msra.mxu0 %v8582_v63  ;;  %v4655_v62 = vsel %vm1707_vm1, %v7437_v42, 0  ;;  %v8649_v63 = vld [vmem:[%s11563_s8 + $0x260] ss:$36 sps:$4 sm:$0xff]   ;;  %v8689_v42 = vld [vmem:[%s11565_s10 + $0xac] ss:$12 sps:$4 sm:$0xff]  }
 0x839   : > { %4847 = vmatprep.subr.bf16.mxu1 %v8587_v4  ;;  %4933 = vmatprep.subr.bf16.mxu0 %v8590_v5  ;;  %v8693_v4 = vld [vmem:[%s11565_s10 + $0xc8] ss:$12 sps:$4 sm:$0xff]   ;;  %v8650_v5 = vld [vmem:[%s11563_s8 + $0x20] ss:$36 sps:$4 sm:$0xff]  }
 0x83c   : > { %4848 = vmatpush1.bf16.msra.mxu1 %v8585_v7  ;;  %4934 = vmatpush1.bf16.msra.mxu0 %v8588_v8  ;;  %v8651_v7 = vld [vmem:[%s11563_s8 + $0x2a8] ss:$36 sps:$4 sm:$0xff]  }
 0x83d   : > { %4849 = vmatprep.subr.bf16.mxu1 %v8593_v9  ;;  %4935 = vmatprep.subr.bf16.mxu0 %v8596_v10  ;;  %v8694_v8 = vld [vmem:[%s11565_s10 + $0x8] ss:$12 sps:$4 sm:$0xff]   ;;  %v8698_v9 = vld [vmem:[%s11565_s10 + $0xe0] ss:$12 sps:$4 sm:$0xff]  }
 0x83e   : > { %v8652_v10 = vld [vmem:[%s11563_s8 + $0x68] ss:$36 sps:$4 sm:$0xff]  }
 0x840   : > { %4850 = vmatpush1.bf16.msra.mxu1 %v8591_v11  ;;  %4936 = vmatpush1.bf16.msra.mxu0 %v8594_v12  ;;  %v8653_v11 = vld [vmem:[%s11563_s8 + $0x2f0] ss:$36 sps:$4 sm:$0xff]   ;;  %v8699_v12 = vld [vmem:[%s11565_s10 + $0x20] ss:$12 sps:$4 sm:$0xff]  }
 0x841   : > { %4851 = vmatprep.subr.bf16.mxu1 %v8599_v43  ;;  %4937 = vmatprep.subr.bf16.mxu0 %v8602_v14  ;;  %v8703_v43 = vld [vmem:[%s11565_s10 + $0xf8] ss:$12 sps:$4 sm:$0xff]  }
 0x842   : > { %v8655_v14 = vld [vmem:[%s11563_s8 + $0x338] ss:$36 sps:$4 sm:$0xff]  }
 0x844   : > { %4852 = vmatpush1.bf16.msra.mxu1 %v8597_v15  ;;  %4938 = vmatpush1.bf16.msra.mxu0 %v8600_v16  ;;  %v8704_v15 = vld [vmem:[%s11565_s10 + $0x38] ss:$12 sps:$4 sm:$0xff]   ;;  %v8708_v16 = vld [vmem:[%s11565_s10 + $0x110] ss:$12 sps:$4 sm:$0xff]  }
 0x845   : > { %4853 = vmatprep.subr.bf16.mxu1 %v8605_v20  ;;  %4939 = vmatprep.subr.bf16.mxu0 %v8608_v22  ;;  %v8656_v20 = vld [vmem:[%s11563_s8 + $0xf8] ss:$36 sps:$4 sm:$0xff]   ;;  %v8657_v22 = vld [vmem:[%s11563_s8 + $0x380] ss:$36 sps:$4 sm:$0xff]  }
 0x848   : > { %4854 = vmatpush1.bf16.msra.mxu1 %v8603_v40  ;;  %4940 = vmatpush1.bf16.msra.mxu0 %v8606_v48  ;;  %v8709_v40 = vld [vmem:[%s11565_s10 + $0x50] ss:$12 sps:$4 sm:$0xff]   ;;  %v8713_v48 = vld [vmem:[%s11565_s10 + $0x128] ss:$12 sps:$4 sm:$0xff]  }
 0x849   : > { %4855 = vmatprep.subr.bf16.mxu1 %v8611_v47  ;;  %4941 = vmatprep.subr.bf16.mxu0 %v8614_v24  ;;  %v8658_v47 = vld [vmem:[%s11563_s8 + $0x140] ss:$36 sps:$4 sm:$0xff]   ;;  %v8659_v24 = vld [vmem:[%s11563_s8 + $0x3c8] ss:$36 sps:$4 sm:$0xff]  }
 0x84c   : > { %4856 = vmatpush1.bf16.msra.mxu1 %v8609_v26  ;;  %4942 = vmatpush1.bf16.msra.mxu0 %v8612_v3  ;;  %v8714_v26 = vld [vmem:[%s11565_s10 + $0x68] ss:$12 sps:$4 sm:$0xff]   ;;  %v8718_v3 = vld [vmem:[%s11565_s10 + $0x140] ss:$12 sps:$4 sm:$0xff]  }
 0x84d   : > { %4857 = vmatprep.subr.bf16.mxu1 %v8617_v6  ;;  %4943 = vmatprep.subr.bf16.mxu0 %v8620_v49  ;;  %v8660_v6 = vld [vmem:[%s11563_s8 + $0x188] ss:$36 sps:$4 sm:$0xff]   ;;  %v8661_v49 = vld [vmem:[%s11563_s8 + $0x410] ss:$36 sps:$4 sm:$0xff]  }
 0x850   : > { %4858 = vmatpush1.bf16.msra.mxu1 %v8615_v28  ;;  %4944 = vmatpush1.bf16.msra.mxu0 %v8618_v30  ;;  %v8719_v28 = vld [vmem:[%s11565_s10 + $0x80] ss:$12 sps:$4 sm:$0xff]   ;;  %v8723_v30 = vld [vmem:[%s11565_s10 + $0x158] ss:$12 sps:$4 sm:$0xff]  }
 0x851   : > { %4859 = vmatprep.subr.bf16.mxu1 %v8623_v32  ;;  %4945 = vmatprep.subr.bf16.mxu0 %v8626_v36  ;;  %v8662_v32 = vld [vmem:[%s11563_s8 + $0x1d0] ss:$36 sps:$4 sm:$0xff]   ;;  %v8663_v36 = vld [vmem:[%s11563_s8 + $0x458] ss:$36 sps:$4 sm:$0xff]  }
 0x854   : > { %4860 = vmatpush1.bf16.msra.mxu1 %v8621_v37  ;;  %4946 = vmatpush1.bf16.msra.mxu0 %v8624_v33  ;;  %v8724_v37 = vld [vmem:[%s11565_s10 + $0x98] ss:$12 sps:$4 sm:$0xff]   ;;  %v8728_v33 = vld [vmem:[%s11565_s10 + $0x170] ss:$12 sps:$4 sm:$0xff]  }
 0x855   : > { %4861 = vmatprep.subr.bf16.mxu1 %v8629_v61  ;;  %4947 = vmatprep.subr.bf16.mxu0 %v8632_v2  ;;  %v8664_v61 = vld [vmem:[%s11563_s8 + $0x218] ss:$36 sps:$4 sm:$0xff]   ;;  %v8665_v2 = vld [vmem:[%s11563_s8 + $0x4a0] ss:$0 sps:$4 sm:$0xff]  }
 0x858   : > { %4862 = vmatpush1.bf16.msra.mxu1 %v8627_v55  ;;  %4948 = vmatpush1.bf16.msra.mxu0 %v8630_v41  ;;  %v8729_v55 = vld [vmem:[%s11565_s10 + $0xb0] ss:$12 sps:$4 sm:$0xff]   ;;  %v8733_v41 = vld [vmem:[%s11565_s10 + $0x248] ss:$12 sps:$4 sm:$0xff]  }
 0x859   : > { %4863 = vmatprep.subr.bf16.mxu1 %v8635_v53  ;;  %4949 = vmatprep.subr.bf16.mxu0 %v8638_v56  ;;  %v4661_v53 = vsel %vm1707_vm1, %v8665_v2, 0  ;;  %v8668_v56 = vld [vmem:[%s11565_s10 + $0x4] ss:$12 sps:$4 sm:$0xff]  }
 0x85c   : > { %4864 = vmatpush1.bf16.msra.mxu1 %v8633_v57  ;;  %4950 = vmatpush1.bf16.msra.mxu0 %v8636_v25  ;;  %v8666_v57 = vld [vmem:[%s11565_s10] ss:$12 sps:$4 sm:$0xff]   ;;  %v8671_v25 = vld [vmem:[%s11565_s10 + $0x1c] ss:$12 sps:$4 sm:$0xff]  }
 0x85d   : > { %4865 = vmatprep.subr.bf16.mxu1 %v8641_v34  ;;  %4951 = vmatprep.subr.bf16.mxu0 %v8644_v54  ;;  %v8674_v34 = vld [vmem:[%s11565_s10 + $0x34] ss:$12 sps:$4 sm:$0xff]   ;;  %v8672_v54 = vld [vmem:[%s11565_s10 + $0x30] ss:$12 sps:$4 sm:$0xff]  }
 0x860   : > { %4866 = vmatpush1.bf16.msra.mxu1 %v8639_v31  ;;  %4952 = vmatpush1.bf16.msra.mxu0 %v8642_v46  ;;  %v8678_v31 = vld [vmem:[%s11565_s10 + $0x60] ss:$12 sps:$4 sm:$0xff]   ;;  %v8683_v46 = vld [vmem:[%s11565_s10 + $0x7c] ss:$12 sps:$4 sm:$0xff]  }
 0x861   : > { %7444 = vmatprep.subr.msk.bf16.mxu1 %vm1707_vm1, %v7436_v50  ;;  %7446 = vmatprep.subr.msk.bf16.mxu0 %vm1707_vm1, %v7438_v52  ;;  %v8681_v50 = vld [vmem:[%s11565_s10 + $0x78] ss:$12 sps:$4 sm:$0xff]   ;;  %v8684_v52 = vld [vmem:[%s11565_s10 + $0x90] ss:$12 sps:$4 sm:$0xff]  }
 0x863   : > { %4868 = vmatmul.mubr.bf16.vlgmr.msra.gmra.mrb[48].mxu1 %v10551_v39  ;;  %4954 = vmatmul.mubr.bf16.vlgmr.msra.gmra.mrb[40].mxu0 %v10551_v39 }
 0x864   : > { %4879 = vmatpush1.bf16.msra.mxu1 %v4649_v60  ;;  %4965 = vmatpush1.bf16.msra.mxu0 %v4655_v62  ;;  %v8687_v60 = vld [vmem:[%s11565_s10 + $0xa8] ss:$12 sps:$4 sm:$0xff]   ;;  %v8692_v62 = vld [vmem:[%s11565_s10 + $0xc4] ss:$12 sps:$4 sm:$0xff]  }
 0x865   : > { %4910 = vmatprep.mubr.bf16.mxu1 %v9040_v1  ;;  %4996 = vmatprep.mubr.bf16.mxu0 %v9040_v1 }
 0x866   : > { %7712 = vmatprep.subr.bf16.mxu1 %v8649_v63  ;;  %7736 = vmatprep.subr.bf16.mxu0 %v8693_v4  ;;  %v8690_v63 = vld [vmem:[%s11565_s10 + $0xc0] ss:$12 sps:$4 sm:$0xff]   ;;  %v8697_v4 = vld [vmem:[%s11565_s10 + $0xdc] ss:$12 sps:$4 sm:$0xff]  }
 0x86f   : > { %7445 = vmatmul.mubr.msk.bf16.vlgmr.msra.gmra.mrb[48].mxu1 %vm422_vm0, %v10577_v0  ;;  %7447 = vmatmul.mubr.msk.bf16.vlgmr.msra.gmra.mrb[40].mxu0 %vm422_vm0, %v10577_v0 }
 0x870   : > { %7713 = vmatpush3.bf16.msra.mxu1 %v8650_v5  ;;  %5039 = vmatprep.mubr.bf16.mxu1 %v10549_v23  ;;  %v8654_v23 = vld [vmem:[%s11563_s8 + $0xb0] ss:$36 sps:$4 sm:$0xff]   ;;  %v8695_v5 = vld [vmem:[%s11565_s10 + $0xd8] ss:$12 sps:$4 sm:$0xff]  }
 0x871   : > { %7714 = vmatprep.subr.bf16.mxu1 %v8651_v7  ;;  %7737 = vmatpush3.bf16.msra.mxu0 %v8694_v8  ;;  %v8702_v7 = vld [vmem:[%s11565_s10 + $0xf4] ss:$12 sps:$4 sm:$0xff]   ;;  %v8700_v8 = vld [vmem:[%s11565_s10 + $0xf0] ss:$12 sps:$4 sm:$0xff]  }
 0x872   : > { %7738 = vmatprep.subr.bf16.mxu0 %v8698_v9  ;;  %v8707_v9 = vld [vmem:[%s11565_s10 + $0x10c] ss:$12 sps:$4 sm:$0xff]  }
 0x874   : > { %7715 = vmatpush3.bf16.msra.mxu1 %v8652_v10  ;;  %v8705_v10 = vld [vmem:[%s11565_s10 + $0x108] ss:$12 sps:$4 sm:$0xff]  }
 0x875   : > { %7716 = vmatprep.subr.bf16.mxu1 %v8653_v11  ;;  %7739 = vmatpush3.bf16.msra.mxu0 %v8699_v12  ;;  %v8712_v11 = vld [vmem:[%s11565_s10 + $0x124] ss:$12 sps:$4 sm:$0xff]   ;;  %v8710_v12 = vld [vmem:[%s11565_s10 + $0x120] ss:$12 sps:$4 sm:$0xff]  }
 0x876   : > { %7740 = vmatprep.subr.bf16.mxu0 %v8703_v43  ;;  %v8717_v43 = vld [vmem:[%s11565_s10 + $0x13c] ss:$12 sps:$4 sm:$0xff]  }
 0x878   : > { %7717 = vmatpush3.bf16.msra.mxu1 %v8654_v23  ;;  %v8715_v23 = vld [vmem:[%s11565_s10 + $0x138] ss:$12 sps:$4 sm:$0xff]  }
 0x879   : > { %7718 = vmatprep.subr.bf16.mxu1 %v8655_v14  ;;  %7741 = vmatpush3.bf16.msra.mxu0 %v8704_v15  ;;  %v8722_v14 = vld [vmem:[%s11565_s10 + $0x154] ss:$12 sps:$4 sm:$0xff]   ;;  %v8720_v15 = vld [vmem:[%s11565_s10 + $0x150] ss:$12 sps:$4 sm:$0xff]  }
 0x87a   : > { %7742 = vmatprep.subr.bf16.mxu0 %v8708_v16  ;;  %v8727_v16 = vld [vmem:[%s11565_s10 + $0x16c] ss:$12 sps:$4 sm:$0xff]  }
 0x87c   : > { %7719 = vmatpush3.bf16.msra.mxu1 %v8656_v20  ;;  %v8725_v20 = vld [vmem:[%s11565_s10 + $0x168] ss:$12 sps:$4 sm:$0xff]  }
 0x87d   : > { %7720 = vmatprep.subr.bf16.mxu1 %v8657_v22  ;;  %7743 = vmatpush3.bf16.msra.mxu0 %v8709_v40  ;;  %v8732_v22 = vld [vmem:[%s11565_s10 + $0x184] ss:$12 sps:$4 sm:$0xff]  }
 0x87e   : > { %7744 = vmatprep.subr.bf16.mxu0 %v8713_v48  ;;  %v10995_v40 = vld [vmem:[%s11564_s9] sm:$0xff]  ;;  %v3843_v48 = vsub.s32 3, %v9311_v17 }
 0x880   : > { %7721 = vmatpush3.bf16.msra.mxu1 %v8658_v47  ;;  %v3832_v47 = vrot.slane %v10995_v40, %v9323_v21 }
 0x881   : > { %7722 = vmatprep.subr.bf16.mxu1 %v8659_v24  ;;  %7745 = vmatpush3.bf16.msra.mxu0 %v8714_v26  ;;  %v3840_v24 = vrot.slane %v10995_v40, %v9317_v19  ;;  %v3836_v26 = vrot.slane %v10995_v40, %v9314_v18 }
 0x882   : > { %7746 = vmatprep.subr.bf16.mxu0 %v8718_v3  ;;  %v3844_v3 = vrot.slane %v10995_v40, %v3843_v48  ;;  %v8757_v48 = vld [vmem:[%s11565_s10 + $0x1fc] ss:$12 sps:$4 sm:$0xff]  }
 0x884   : > { %7723 = vmatpush3.bf16.msra.mxu1 %v8660_v6 }
 0x885   : > { %7724 = vmatprep.subr.bf16.mxu1 %v8661_v49  ;;  %7747 = vmatpush3.bf16.msra.mxu0 %v8719_v28 }
 0x886   : > { %7748 = vmatprep.subr.bf16.mxu0 %v8723_v30 }
 0x888   : > { %7725 = vmatpush3.bf16.msra.mxu1 %v8662_v32 }
 0x889   : > { %7726 = vmatprep.subr.bf16.mxu1 %v8663_v36  ;;  %7749 = vmatpush3.bf16.msra.mxu0 %v8724_v37 }
 0x88a   : > { %7750 = vmatprep.subr.bf16.mxu0 %v8728_v33 }
 0x88c   : > { %7727 = vmatpush3.bf16.msra.mxu1 %v8664_v61 }
 0x88d   : > { %7875 = vmatprep.subr.bf16.mxu1 %v9041_v13  ;;  %7751 = vmatpush3.bf16.msra.mxu0 %v8729_v55 }
 0x88e   : > { %7758 = vmatprep.subr.bf16.mxu0 %v8733_v41 }
 0x88f   : > { %5040 = vmatmul.mubr.bf16.vlgmr.msra.gmra.mrb[52].mxu1 %v10551_v39  ;;  %v8669_v39 = vld [vmem:[%s11565_s10 + $0x18] ss:$12 sps:$4 sm:$0xff]  }
 0x890   : > { %7876 = vmatpush3.bf16.msra.mxu1 %v4661_v53  ;;  %7877 = vmatprep.mubr.msk.bf16.mxu1 %vm9042_vm2, %v9041_v13 }
 0x891   : > { %6457 = vmatprep.subr.bf16.mxu1 %v8668_v56 }
 0x897   : > { %7878 = vmatmul.mubr.msk.bf16.vlgmr.msra.gmra.mrb[56].mxu1 %vm422_vm0, %v10577_v0  ;;  %v8677_v0 = vld [vmem:[%s11565_s10 + $0x4c] ss:$12 sps:$4 sm:$0xff]  }
 0x898   : > { %6458 = vmatpush1.bf16.msra.mxu1 %v8666_v57 }
 0x899   : > { %6459 = vmatprep.subr.bf16.mxu1 %v8671_v25 }
 0x89c   : > { %6460 = vmatpush1.bf16.msra.mxu1 %v8669_v39 }
 0x89d   : > { %6461 = vmatprep.subr.bf16.mxu1 %v8674_v34 }
 0x8a0   : > { %6462 = vmatpush1.bf16.msra.mxu1 %v8672_v54 }
 0x8a1   : > { %6463 = vmatprep.subr.bf16.mxu1 %v8677_v0 }
 0x8a4   : > { %6464 = vmatpush1.bf16.msra.mxu1 %v8675_v58 }
 0x8a5   : > { %6465 = vmatprep.subr.bf16.mxu1 %v8680_v59 }
 0x8a8   : > { %6466 = vmatpush1.bf16.msra.mxu1 %v8678_v31 }
 0x8a9   : > { %6467 = vmatprep.subr.bf16.mxu1 %v8683_v46 }
 0x8ac   : > { %6468 = vmatpush1.bf16.msra.mxu1 %v8681_v50 }
 0x8ad   : > { %6469 = vmatprep.subr.bf16.mxu1 %v8686_v51 }
 0x8b0   : > { %6470 = vmatpush1.bf16.msra.mxu1 %v8684_v52 }
 0x8b1   : > { %6471 = vmatprep.subr.bf16.mxu1 %v8689_v42 }
 0x8b4   : > { %6472 = vmatpush1.bf16.msra.mxu1 %v8687_v60  ;;  %v8730_v60 = vld [vmem:[%s11565_s10 + $0x180] ss:$12 sps:$4 sm:$0xff]  }
 0x8b5   : > { %6473 = vmatprep.subr.bf16.mxu1 %v8692_v62  ;;  %v8734_v62 = vld [vmem:[%s11565_s10 + $0x188] ss:$12 sps:$4 sm:$0xff]  }
 0x8b8   : > { %6474 = vmatpush1.bf16.msra.mxu1 %v8690_v63  ;;  %v8737_v63 = vld [vmem:[%s11565_s10 + $0x19c] ss:$12 sps:$4 sm:$0xff]  }
 0x8b9   : > { %6475 = vmatprep.subr.bf16.mxu1 %v8697_v4  ;;  %v8738_v4 = vld [vmem:[%s11565_s10 + $0x260] ss:$12 sps:$4 sm:$0xff]  }
 0x8bc   : > { %6476 = vmatpush1.bf16.msra.mxu1 %v8695_v5  ;;  %v8735_v5 = vld [vmem:[%s11565_s10 + $0x198] ss:$12 sps:$4 sm:$0xff]  }
 0x8bd   : > { %6477 = vmatprep.subr.bf16.mxu1 %v8702_v7  ;;  %v8739_v7 = vld [vmem:[%s11565_s10 + $0x1a0] ss:$12 sps:$4 sm:$0xff]  }
 0x8c0   : > { %6478 = vmatpush1.bf16.msra.mxu1 %v8700_v8  ;;  %v8742_v8 = vld [vmem:[%s11565_s10 + $0x1b4] ss:$12 sps:$4 sm:$0xff]  }
 0x8c1   : > { %6479 = vmatprep.subr.bf16.mxu1 %v8707_v9  ;;  %v8743_v9 = vld [vmem:[%s11565_s10 + $0x278] ss:$12 sps:$4 sm:$0xff]  }
 0x8c4   : > { %6480 = vmatpush1.bf16.msra.mxu1 %v8705_v10  ;;  %v8740_v10 = vld [vmem:[%s11565_s10 + $0x1b0] ss:$12 sps:$4 sm:$0xff]  }
 0x8c5   : > { %6481 = vmatprep.subr.bf16.mxu1 %v8712_v11  ;;  %v8744_v11 = vld [vmem:[%s11565_s10 + $0x1b8] ss:$12 sps:$4 sm:$0xff]  }
 0x8c8   : > { %6482 = vmatpush1.bf16.msra.mxu1 %v8710_v12  ;;  %v8747_v12 = vld [vmem:[%s11565_s10 + $0x1cc] ss:$12 sps:$4 sm:$0xff]  }
 0x8c9   : > { %6483 = vmatprep.subr.bf16.mxu1 %v8717_v43  ;;  %v8748_v43 = vld [vmem:[%s11565_s10 + $0x290] ss:$12 sps:$4 sm:$0xff]  }
 0x8cc   : > { %6484 = vmatpush1.bf16.msra.mxu1 %v8715_v23  ;;  %v8745_v23 = vld [vmem:[%s11565_s10 + $0x1c8] ss:$12 sps:$4 sm:$0xff]  }
 0x8cd   : > { %6485 = vmatprep.subr.bf16.mxu1 %v8722_v14  ;;  %v8749_v14 = vld [vmem:[%s11565_s10 + $0x1d0] ss:$12 sps:$4 sm:$0xff]  }
 0x8d0   : > { %6486 = vmatpush1.bf16.msra.mxu1 %v8720_v15  ;;  %v8752_v15 = vld [vmem:[%s11565_s10 + $0x1e4] ss:$12 sps:$4 sm:$0xff]  }
 0x8d1   : > { %6487 = vmatprep.subr.bf16.mxu1 %v8727_v16  ;;  %v8753_v16 = vld [vmem:[%s11565_s10 + $0x2a8] ss:$12 sps:$4 sm:$0xff]  }
 0x8d4   : > { %6488 = vmatpush1.bf16.msra.mxu1 %v8725_v20  ;;  %v8750_v20 = vld [vmem:[%s11565_s10 + $0x1e0] ss:$12 sps:$4 sm:$0xff]  }
 0x8d5   : > { %6500 = vmatprep.subr.bf16.mxu1 %v8732_v22  ;;  %v8754_v22 = vld [vmem:[%s11565_s10 + $0x1e8] ss:$12 sps:$4 sm:$0xff]  }
 0x8f6   : > { %v4740_v6 = vpop.f32.mrb[44].mxu1  ;;  %v4826_v49 = vpop.f32.mrb[36].mxu0 }
 0x8f7   : > { %v7905_v28 = vadd.f32 %v4740_v6, %v3832_v47  ;;  %v7909_v30 = vadd.f32 %v4826_v49, %v3840_v24  ;;  %v4742_v32 = vpop.f32.mrb[45].mxu1  ;;  %v4828_v36 = vpop.f32.mrb[37].mxu0  ;;  %v8763_v6 = vld [vmem:[%s11565_s10 + $0x2d8] ss:$12 sps:$4 sm:$0xff]   ;;  %v8760_v49 = vld [vmem:[%s11565_s10 + $0x210] ss:$12 sps:$4 sm:$0xff]  }
 0x8f8   : > { %v7906_v37 = vadd.f32 %v4742_v32, %v3836_v26  ;;  %v7910_v33 = vadd.f32 %v4828_v36, %v3844_v3  ;;  %v4744_v61 = vpop.f32.mrb[46].mxu1  ;;  %v4830_v2 = vpop.f32.mrb[38].mxu0  ;;  %v8768_v32 = vld [vmem:[%s11565_s10 + $0x2f0] ss:$12 sps:$4 sm:$0xff]   ;;  %v8765_v36 = vld [vmem:[%s11565_s10 + $0x228] ss:$12 sps:$4 sm:$0xff]  }
 0x8f9   : > { %v7907_v55 = vadd.f32 %v4744_v61, %v3832_v47  ;;  %v7911_v41 = vadd.f32 %v4830_v2, %v3840_v24  ;;  %v4746_v53 = vpop.f32.mrb[47].mxu1  ;;  %v4832_v56 = vpop.f32.mrb[39].mxu0  ;;  %v5089_v39 = vmax.f32 %v7905_v28, 0.0  ;;  %v5091_v34 = vmax.f32 %v7909_v30, 0.0  ;;  %v8758_v47 = vld [vmem:[%s11565_s10 + $0x2c0] ss:$12 sps:$4 sm:$0xff]  }
 0x8fa   : > { %v7908_v57 = vadd.f32 %v4746_v53, %v3836_v26  ;;  %v7912_v25 = vadd.f32 %v4832_v56, %v3844_v3  ;;  %v5090_v58 = vmax.f32 %v7906_v37, 0.0  ;;  %v5092_v59 = vmax.f32 %v7910_v33, 0.0  ;;  %v8755_v24 = vld [vmem:[%s11565_s10 + $0x1f8] ss:$12 sps:$4 sm:$0xff]   ;;  %v8759_v26 = vld [vmem:[%s11565_s10 + $0x200] ss:$12 sps:$4 sm:$0xff]  }
 0x8fb   : > { %v5098_v54 = vmax.f32 %v7907_v55, 0.0  ;;  %v5100_v0 = vmax.f32 %v7911_v41, 0.0  ;;  %v8762_v3 = vld [vmem:[%s11565_s10 + $0x214] ss:$12 sps:$4 sm:$0xff]   ;;  %v8764_v28 = vld [vmem:[%s11565_s10 + $0x218] ss:$12 sps:$4 sm:$0xff]  }
 0x8fc   : > { %v5099_v31 = vmax.f32 %v7908_v57, 0.0  ;;  %v5101_v46 = vmax.f32 %v7912_v25, 0.0  ;;  %v8767_v30 = vld [vmem:[%s11565_s10 + $0x22c] ss:$12 sps:$4 sm:$0xff]   ;;  %v8769_v37 = vld [vmem:[%s11565_s10 + $0x230] ss:$12 sps:$4 sm:$0xff]  }
 0x8fd   : > { %v5107_v50 = vpack.c.bf16 %v5098_v54, %v5089_v39  ;;  %v11005_v51 = vpack.c.bf16 %v5100_v0, %v5091_v34  ;;  %v8772_v33 = vld [vmem:[%s11565_s10 + $0x244] ss:$12 sps:$4 sm:$0xff]   ;;  %v8779_v61 = vld [vmem:[%s11565_s10 + $0x3c8] ss:$12 sps:$4 sm:$0xff]   ;;  %v8770_v2 = vld [vmem:[%s11565_s10 + $0x240] ss:$12 sps:$4 sm:$0xff]  }
 0x8fe   : > { %v5108_v52 = vpack.c.bf16 %v5099_v31, %v5090_v58  ;;  %v5110_v42 = vpack.c.bf16 %v5101_v46, %v5092_v59  ;;  %v8783_v55 = vld [vmem:[%s11565_s10 + $0x308] ss:$12 sps:$4 sm:$0xff]   ;;  %v8784_v53 = vld [vmem:[%s11565_s10 + $0x3e0] ss:$12 sps:$4 sm:$0xff]   ;;  %v8773_v56 = vld [vmem:[%s11565_s10 + $0x258] ss:$12 sps:$4 sm:$0xff]  }
 0x8ff   : > { %v8775_v41 = vld [vmem:[%s11565_s10 + $0x25c] ss:$12 sps:$4 sm:$0xff]   ;;  %v8788_v57 = vld [vmem:[%s11565_s10 + $0x320] ss:$12 sps:$4 sm:$0xff]   ;;  %v8789_v39 = vld [vmem:[%s11565_s10 + $0x3f8] ss:$12 sps:$4 sm:$0xff]  }
 0x900   : > { %6489 = vmatprep.mubr.bf16.mxu1 %v5108_v52  ;;  %6704 = vmatprep.mubr.bf16.mxu0 %v5108_v52  ;;  %v8778_v25 = vld [vmem:[%s11565_s10 + $0x274] ss:$12 sps:$4 sm:$0xff]   ;;  %v8776_v34 = vld [vmem:[%s11565_s10 + $0x270] ss:$12 sps:$4 sm:$0xff]   ;;  %v8793_v54 = vld [vmem:[%s11565_s10 + $0x338] ss:$12 sps:$4 sm:$0xff]  }
 0x901   : > { %6490 = vmatmul.mubr.bf16.vlgmr.msra.gmra.mrb[60].mxu1 %v5107_v50  ;;  %6705 = vmatmul.mubr.bf16.vlgmr.msra.gmra.mrb[44].mxu0 %v5107_v50  ;;  %v8782_v0 = vld [vmem:[%s11565_s10 + $0x28c] ss:$12 sps:$4 sm:$0xff]   ;;  %v8794_v58 = vld [vmem:[%s11565_s10 + $0x410] ss:$12 sps:$4 sm:$0xff]   ;;  %v8780_v59 = vld [vmem:[%s11565_s10 + $0x288] ss:$12 sps:$4 sm:$0xff]  }
 0x902   : > { %6501 = vmatpush1.bf16.msra.mxu1 %v8730_v60  ;;  %7759 = vmatpush3.bf16.msra.mxu0 %v8734_v62  ;;  %v8798_v31 = vld [vmem:[%s11565_s10 + $0x350] ss:$12 sps:$4 sm:$0xff]   ;;  %v8799_v50 = vld [vmem:[%s11565_s10 + $0x428] ss:$12 sps:$4 sm:$0xff]   ;;  %v8785_v52 = vld [vmem:[%s11565_s10 + $0x2a0] ss:$12 sps:$4 sm:$0xff]  }
 0x903   : > { %6532 = vmatprep.mubr.bf16.mxu1 %v5110_v42  ;;  %6745 = vmatprep.mubr.bf16.mxu0 %v5110_v42  ;;  %v8787_v46 = vld [vmem:[%s11565_s10 + $0x2a4] ss:$12 sps:$4 sm:$0xff]   ;;  %v8803_v42 = vld [vmem:[%s11565_s10 + $0x368] ss:$12 sps:$4 sm:$0xff]   ;;  %v8804_v62 = vld [vmem:[%s11565_s10 + $0x440] ss:$12 sps:$4 sm:$0xff]  }
 0x904   : > { %6502 = vmatprep.subr.bf16.mxu1 %v8737_v63  ;;  %7760 = vmatprep.subr.bf16.mxu0 %v8738_v4  ;;  %v8792_v60 = vld [vmem:[%s11565_s10 + $0x2bc] ss:$12 sps:$4 sm:$0xff]   ;;  %v8790_v63 = vld [vmem:[%s11565_s10 + $0x2b8] ss:$12 sps:$4 sm:$0xff]   ;;  %v8808_v4 = vld [vmem:[%s11565_s10 + $0x380] ss:$12 sps:$4 sm:$0xff]  }
 0x906   : > { %6503 = vmatpush1.bf16.msra.mxu1 %v8735_v5  ;;  %7761 = vmatpush3.bf16.msra.mxu0 %v8739_v7  ;;  %v8797_v5 = vld [vmem:[%s11565_s10 + $0x2d4] ss:$12 sps:$4 sm:$0xff]   ;;  %v8809_v7 = vld [vmem:[%s11565_s10 + $0x458] ss:$12 sps:$4 sm:$0xff]  }
 0x907   : > { %6504 = vmatprep.subr.bf16.mxu1 %v8742_v8  ;;  %7762 = vmatprep.subr.bf16.mxu0 %v8743_v9  ;;  %v8795_v8 = vld [vmem:[%s11565_s10 + $0x2d0] ss:$12 sps:$4 sm:$0xff]   ;;  %v8813_v9 = vld [vmem:[%s11565_s10 + $0x398] ss:$12 sps:$4 sm:$0xff]  }
 0x90a   : > { %6505 = vmatpush1.bf16.msra.mxu1 %v8740_v10  ;;  %7763 = vmatpush3.bf16.msra.mxu0 %v8744_v11  ;;  %v8802_v10 = vld [vmem:[%s11565_s10 + $0x2ec] ss:$12 sps:$4 sm:$0xff]   ;;  %v8814_v11 = vld [vmem:[%s11565_s10 + $0x470] ss:$12 sps:$4 sm:$0xff]  }
 0x90b   : > { %6506 = vmatprep.subr.bf16.mxu1 %v8747_v12  ;;  %7764 = vmatprep.subr.bf16.mxu0 %v8748_v43  ;;  %v8800_v12 = vld [vmem:[%s11565_s10 + $0x2e8] ss:$12 sps:$4 sm:$0xff]   ;;  %v8818_v43 = vld [vmem:[%s11565_s10 + $0x3b0] ss:$12 sps:$4 sm:$0xff]  }
 0x90e   : > { %6507 = vmatpush1.bf16.msra.mxu1 %v8745_v23  ;;  %7765 = vmatpush3.bf16.msra.mxu0 %v8749_v14  ;;  %v8807_v23 = vld [vmem:[%s11565_s10 + $0x304] ss:$12 sps:$4 sm:$0xff]   ;;  %v3847_v14 = vsub.s32 4, %v9311_v17 }
 0x90f   : > { %6508 = vmatprep.subr.bf16.mxu1 %v8752_v15  ;;  %7766 = vmatprep.subr.bf16.mxu0 %v8753_v16  ;;  %v3855_v15 = vsub.s32 6, %v9311_v17  ;;  %v8819_v16 = vld [vmem:[%s11565_s10 + $0x548] ss:$12 sps:$4 sm:$0xff]  }
 0x912   : > { %6509 = vmatpush1.bf16.msra.mxu1 %v8750_v20  ;;  %7767 = vmatpush3.bf16.msra.mxu0 %v8754_v22  ;;  %v3851_v20 = vsub.s32 5, %v9311_v17  ;;  %v3859_v22 = vsub.s32 7, %v9311_v17 }
 0x913   : > { %6510 = vmatprep.subr.bf16.mxu1 %v8757_v48  ;;  %7768 = vmatprep.subr.bf16.mxu0 %v8758_v47  ;;  %v8805_v48 = vld [vmem:[%s11565_s10 + $0x300] ss:$12 sps:$4 sm:$0xff]   ;;  %v3848_v47 = vrot.slane %v10995_v40, %v3847_v14  ;;  %v8834_v14 = vld [vmem:[%s11565_s10 + $0x590] ss:$12 sps:$4 sm:$0xff]  }
 0x914   : > { %v3860_v17 = vrot.slane %v10995_v40, %v3859_v22  ;;  %v8839_v22 = vld [vmem:[%s11565_s10 + $0x5a8] ss:$12 sps:$4 sm:$0xff]  }
 0x916   : > { %6511 = vmatpush1.bf16.msra.mxu1 %v8755_v24  ;;  %7769 = vmatpush3.bf16.msra.mxu0 %v8759_v26  ;;  %v3856_v24 = vrot.slane %v10995_v40, %v3855_v15  ;;  %v8812_v26 = vld [vmem:[%s11565_s10 + $0x31c] ss:$12 sps:$4 sm:$0xff]   ;;  %v8837_v15 = vld [vmem:[%s11565_s10 + $0x394] ss:$12 sps:$4 sm:$0xff]  }
 0x917   : > { %6512 = vmatprep.subr.bf16.mxu1 %v8762_v3  ;;  %7770 = vmatprep.subr.bf16.mxu0 %v8763_v6  ;;  %v3852_v3 = vrot.slane %v10995_v40, %v3851_v20  ;;  %v8838_v20 = vld [vmem:[%s11565_s10 + $0x4d0] ss:$12 sps:$4 sm:$0xff]  }
 0x91a   : > { %6513 = vmatpush1.bf16.msra.mxu1 %v8760_v49  ;;  %7771 = vmatpush3.bf16.msra.mxu0 %v8764_v28  ;;  %v8810_v28 = vld [vmem:[%s11565_s10 + $0x318] ss:$12 sps:$4 sm:$0xff]  }
 0x91b   : > { %6514 = vmatprep.subr.bf16.mxu1 %v8767_v30  ;;  %7772 = vmatprep.subr.bf16.mxu0 %v8768_v32 }
 0x91e   : > { %6515 = vmatpush1.bf16.msra.mxu1 %v8765_v36  ;;  %7773 = vmatpush3.bf16.msra.mxu0 %v8769_v37 }
 0x91f   : > { %6516 = vmatprep.subr.bf16.mxu1 %v8772_v33  ;;  %7780 = vmatprep.subr.bf16.mxu0 %v8779_v61  ;;  %v8817_v33 = vld [vmem:[%s11565_s10 + $0x334] ss:$12 sps:$4 sm:$0xff]  }
 0x921   : > { %6746 = vmatmul.mubr.bf16.vlgmr.msra.gmra.mrb[48].mxu0 %v11005_v51 }
 0x922   : > { %6517 = vmatpush1.bf16.msra.mxu1 %v8770_v2  ;;  %7781 = vmatpush3.bf16.msra.mxu0 %v8783_v55 }
 0x923   : > { %6518 = vmatprep.subr.bf16.mxu1 %v8775_v41  ;;  %7782 = vmatprep.subr.bf16.mxu0 %v8784_v53 }
 0x926   : > { %6519 = vmatpush1.bf16.msra.mxu1 %v8773_v56  ;;  %7783 = vmatpush3.bf16.msra.mxu0 %v8788_v57 }
 0x927   : > { %6520 = vmatprep.subr.bf16.mxu1 %v8778_v25  ;;  %7784 = vmatprep.subr.bf16.mxu0 %v8789_v39  ;;  %v8815_v39 = vld [vmem:[%s11565_s10 + $0x330] ss:$12 sps:$4 sm:$0xff]  }
 0x92a   : > { %6521 = vmatpush1.bf16.msra.mxu1 %v8776_v34  ;;  %7785 = vmatpush3.bf16.msra.mxu0 %v8793_v54 }
 0x92b   : > { %6522 = vmatprep.subr.bf16.mxu1 %v8782_v0  ;;  %7786 = vmatprep.subr.bf16.mxu0 %v8794_v58 }
 0x92e   : > { %6523 = vmatpush1.bf16.msra.mxu1 %v8780_v59  ;;  %7787 = vmatpush3.bf16.msra.mxu0 %v8798_v31  ;;  %v8822_v59 = vld [vmem:[%s11565_s10 + $0x34c] ss:$12 sps:$4 sm:$0xff]  }
 0x92f   : > { %6524 = vmatprep.subr.bf16.mxu1 %v8787_v46  ;;  %7788 = vmatprep.subr.bf16.mxu0 %v8799_v50 }
 0x932   : > { %6525 = vmatpush1.bf16.msra.mxu1 %v8785_v52  ;;  %7789 = vmatpush3.bf16.msra.mxu0 %v8803_v42 }
 0x933   : > { %6526 = vmatprep.subr.bf16.mxu1 %v8792_v60  ;;  %7790 = vmatprep.subr.bf16.mxu0 %v8804_v62 }
 0x936   : > { %6527 = vmatpush1.bf16.msra.mxu1 %v8790_v63  ;;  %7791 = vmatpush3.bf16.msra.mxu0 %v8808_v4  ;;  %v8820_v4 = vld [vmem:[%s11565_s10 + $0x348] ss:$12 sps:$4 sm:$0xff]  }
 0x937   : > { %6528 = vmatprep.subr.bf16.mxu1 %v8797_v5  ;;  %7792 = vmatprep.subr.bf16.mxu0 %v8809_v7  ;;  %v8823_v5 = vld [vmem:[%s11565_s10 + $0x488] ss:$12 sps:$4 sm:$0xff]   ;;  %v8824_v7 = vld [vmem:[%s11565_s10 + $0x560] ss:$12 sps:$4 sm:$0xff]  }
 0x93a   : > { %6529 = vmatpush1.bf16.msra.mxu1 %v8795_v8  ;;  %7793 = vmatpush3.bf16.msra.mxu0 %v8813_v9  ;;  %v8827_v8 = vld [vmem:[%s11565_s10 + $0x364] ss:$12 sps:$4 sm:$0xff]   ;;  %v8825_v9 = vld [vmem:[%s11565_s10 + $0x360] ss:$12 sps:$4 sm:$0xff]  }
 0x93b   : > { %6530 = vmatprep.subr.bf16.mxu1 %v8802_v10  ;;  %7794 = vmatprep.subr.bf16.mxu0 %v8814_v11  ;;  %v8828_v10 = vld [vmem:[%s11565_s10 + $0x4a0] ss:$12 sps:$4 sm:$0xff]   ;;  %v8829_v11 = vld [vmem:[%s11565_s10 + $0x578] ss:$12 sps:$4 sm:$0xff]  }
 0x93e   : > { %6531 = vmatpush1.bf16.msra.mxu1 %v8800_v12  ;;  %7795 = vmatpush3.bf16.msra.mxu0 %v8818_v43  ;;  %v8832_v12 = vld [vmem:[%s11565_s10 + $0x37c] ss:$12 sps:$4 sm:$0xff]   ;;  %v8830_v43 = vld [vmem:[%s11565_s10 + $0x378] ss:$12 sps:$4 sm:$0xff]  }
 0x93f   : > { %6543 = vmatprep.subr.bf16.mxu1 %v8807_v23  ;;  %7802 = vmatprep.subr.bf16.mxu0 %v8819_v16  ;;  %v8833_v23 = vld [vmem:[%s11565_s10 + $0x4b8] ss:$12 sps:$4 sm:$0xff]   ;;  %v8835_v16 = vld [vmem:[%s11565_s10 + $0x390] ss:$12 sps:$4 sm:$0xff]  }
 0x941   : > { %6533 = vmatmul.mubr.bf16.vlgmr.msra.gmra.mrb[60].mxu1 %v11005_v51 }
 0x942   : > { %v4912_v6 = vpop.f32.mrb[48].mxu1  ;;  %v4998_v49 = vpop.f32.mrb[40].mxu0  ;;  %6544 = vmatpush1.bf16.msra.mxu1 %v8805_v48  ;;  %v8842_v48 = vld [vmem:[%s11565_s10 + $0x3ac] ss:$12 sps:$4 sm:$0xff]  }
 0x943   : > { %v7913_v30 = vadd.f32 %v4912_v6, %v3848_v47  ;;  %v7917_v32 = vadd.f32 %v4998_v49, %v3856_v24  ;;  %v4914_v36 = vpop.f32.mrb[49].mxu1  ;;  %v5000_v37 = vpop.f32.mrb[41].mxu0  ;;  %6545 = vmatprep.subr.bf16.mxu1 %v8812_v26  ;;  %v8844_v26 = vld [vmem:[%s11565_s10 + $0x5c0] ss:$12 sps:$4 sm:$0xff]   ;;  %v8849_v49 = vld [vmem:[%s11565_s10 + $0x5d8] ss:$12 sps:$4 sm:$0xff]  }
 0x944   : > { %v7914_v61 = vadd.f32 %v4914_v36, %v3852_v3  ;;  %v7918_v40 = vadd.f32 %v5000_v37, %v3860_v17  ;;  %v4916_v2 = vpop.f32.mrb[50].mxu1  ;;  %v5002_v51 = vpop.f32.mrb[42].mxu0  ;;  %v8848_v6 = vld [vmem:[%s11565_s10 + $0x500] ss:$12 sps:$4 sm:$0xff]   ;;  %v8853_v36 = vld [vmem:[%s11565_s10 + $0x518] ss:$12 sps:$4 sm:$0xff]  }
 0x945   : > { %v7915_v55 = vadd.f32 %v4916_v2, %v3848_v47  ;;  %v7919_v41 = vadd.f32 %v5002_v51, %v3856_v24  ;;  %v4918_v53 = vpop.f32.mrb[51].mxu1  ;;  %v5004_v56 = vpop.f32.mrb[43].mxu0  ;;  %v5093_v34 = vmax.f32 %v7913_v30, 0.0  ;;  %v5095_v54 = vmax.f32 %v7917_v32, 0.0  ;;  %v8840_v47 = vld [vmem:[%s11565_s10 + $0x3a8] ss:$12 sps:$4 sm:$0xff]  }
 0x946   : > { %v7916_v57 = vadd.f32 %v4918_v53, %v3852_v3  ;;  %v7920_v25 = vadd.f32 %v5004_v56, %v3860_v17  ;;  %6546 = vmatpush1.bf16.msra.mxu1 %v8810_v28  ;;  %v5094_v31 = vmax.f32 %v7914_v61, 0.0  ;;  %v5096_v46 = vmax.f32 %v7918_v40, 0.0  ;;  %v8843_v24 = vld [vmem:[%s11565_s10 + $0x4e8] ss:$12 sps:$4 sm:$0xff]   ;;  %v8847_v3 = vld [vmem:[%s11565_s10 + $0x3c4] ss:$12 sps:$4 sm:$0xff]  }
 0x947   : > { %v5102_v0 = vmax.f32 %v7915_v55, 0.0  ;;  %v5104_v58 = vmax.f32 %v7919_v41, 0.0  ;;  %6547 = vmatprep.subr.bf16.mxu1 %v8817_v33  ;;  %v8845_v17 = vld [vmem:[%s11565_s10 + $0x3c0] ss:$12 sps:$4 sm:$0xff]   ;;  %v8852_v28 = vld [vmem:[%s11565_s10 + $0x3dc] ss:$12 sps:$4 sm:$0xff]  }
 0x948   : > { %v5103_v50 = vmax.f32 %v7916_v57, 0.0  ;;  %v5105_v52 = vmax.f32 %v7920_v25, 0.0  ;;  %v8850_v32 = vld [vmem:[%s11565_s10 + $0x3d8] ss:$12 sps:$4 sm:$0xff]   ;;  %v8854_v33 = vld [vmem:[%s11565_s10 + $0x5f0] ss:$12 sps:$4 sm:$0xff]  }
 0x949   : > { %v11227_v42 = vpack.c.bf16 %v5102_v0, %v5093_v34  ;;  %v11229_v60 = vpack.c.bf16 %v5104_v58, %v5095_v54  ;;  %v8857_v61 = vld [vmem:[%s11565_s10 + $0x3f4] ss:$12 sps:$4 sm:$0xff]   ;;  %v7286_v41 = vld [vmem:[%s11564_s9 + $0x8] ss:$0 sm:$0xff]  ;;  %v8855_v53 = vld [vmem:[%s11565_s10 + $0x3f0] ss:$12 sps:$4 sm:$0xff]  }
 0x94a   : > { %v5112_v62 = vpack.c.bf16 %v5103_v50, %v5094_v31  ;;  %v11231_v63 = vpack.c.bf16 %v5105_v52, %v5096_v46  ;;  %6548 = vmatpush1.bf16.msra.mxu1 %v8815_v39  ;;  %v8858_v56 = vld [vmem:[%s11565_s10 + $0x530] ss:$12 sps:$4 sm:$0xff]   ;;  %v8861_v57 = vld [vmem:[%s11565_s10 + $0x40c] ss:$12 sps:$4 sm:$0xff]   ;;  %v8859_v34 = vld [vmem:[%s11565_s10 + $0x408] ss:$12 sps:$4 sm:$0xff]  }
 0x94b   : > { %6549 = vmatprep.subr.bf16.mxu1 %v8822_v59  ;;  %v8862_v54 = vld [vmem:[%s11565_s10 + $0x608] ss:$12 sps:$4 sm:$0xff]   ;;  %v8865_v31 = vld [vmem:[%s11565_s10 + $0x424] ss:$12 sps:$4 sm:$0xff]  }
 0x94c   : > { %6575 = vmatprep.mubr.bf16.mxu1 %v5112_v62  ;;  %6786 = vmatprep.mubr.bf16.mxu0 %v5112_v62  ;;  %v8863_v62 = vld [vmem:[%s11565_s10 + $0x420] ss:$12 sps:$4 sm:$0xff]  }
 0x94d   : > { %6787 = vmatmul.mubr.bf16.vlgmr.msra.gmra.mrb[52].mxu0 %v11227_v42 }
 0x94e   : > { %7803 = vmatpush3.bf16.msra.mxu0 %v8823_v5  ;;  %6550 = vmatpush1.bf16.msra.mxu1 %v8820_v4  ;;  %v8866_v4 = vld [vmem:[%s11565_s10 + $0x620] ss:$12 sps:$4 sm:$0xff]  }
 0x94f   : > { %6827 = vmatprep.mubr.bf16.mxu0 %v11231_v63  ;;  %7804 = vmatprep.subr.bf16.mxu0 %v8824_v7 }
 0x950   : > { %6551 = vmatprep.subr.bf16.mxu1 %v8827_v8  ;;  %v8869_v8 = vld [vmem:[%s11565_s10 + $0x43c] ss:$12 sps:$4 sm:$0xff]  }
 0x952   : > { %7805 = vmatpush3.bf16.msra.mxu0 %v8828_v10  ;;  %6552 = vmatpush1.bf16.msra.mxu1 %v8825_v9  ;;  %v8867_v10 = vld [vmem:[%s11565_s10 + $0x438] ss:$12 sps:$4 sm:$0xff]  }
 0x953   : > { %7806 = vmatprep.subr.bf16.mxu0 %v8829_v11  ;;  %6553 = vmatprep.subr.bf16.mxu1 %v8832_v12  ;;  %v8872_v11 = vld [vmem:[%s11565_s10 + $0x454] ss:$12 sps:$4 sm:$0xff]   ;;  %v8875_v12 = vld [vmem:[%s11565_s10 + $0x46c] ss:$12 sps:$4 sm:$0xff]  }
 0x956   : > { %7807 = vmatpush3.bf16.msra.mxu0 %v8833_v23  ;;  %6554 = vmatpush1.bf16.msra.mxu1 %v8830_v43  ;;  %v8873_v43 = vld [vmem:[%s11565_s10 + $0x468] ss:$12 sps:$4 sm:$0xff]   ;;  %v8878_v23 = vld [vmem:[%s11565_s10 + $0x484] ss:$12 sps:$4 sm:$0xff]  }
 0x957   : > { %7808 = vmatprep.subr.bf16.mxu0 %v8834_v14  ;;  %6555 = vmatprep.subr.bf16.mxu1 %v8837_v15  ;;  %v8876_v14 = vld [vmem:[%s11565_s10 + $0x480] ss:$12 sps:$4 sm:$0xff]   ;;  %v8881_v15 = vld [vmem:[%s11565_s10 + $0x49c] ss:$12 sps:$4 sm:$0xff]  }
 0x95a   : > { %7809 = vmatpush3.bf16.msra.mxu0 %v8838_v20  ;;  %6556 = vmatpush1.bf16.msra.mxu1 %v8835_v16  ;;  %v8879_v16 = vld [vmem:[%s11565_s10 + $0x498] ss:$12 sps:$4 sm:$0xff]   ;;  %v8884_v20 = vld [vmem:[%s11565_s10 + $0x4b4] ss:$12 sps:$4 sm:$0xff]  }
 0x95b   : > { %7810 = vmatprep.subr.bf16.mxu0 %v8839_v22  ;;  %6557 = vmatprep.subr.bf16.mxu1 %v8842_v48  ;;  %v8882_v22 = vld [vmem:[%s11565_s10 + $0x4b0] ss:$12 sps:$4 sm:$0xff]  }
 0x95c   : > { %v8890_v48 = vld [vmem:[%s11565_s10 + $0x4e4] ss:$12 sps:$4 sm:$0xff]  }
 0x95e   : > { %7811 = vmatpush3.bf16.msra.mxu0 %v8843_v24  ;;  %6558 = vmatpush1.bf16.msra.mxu1 %v8840_v47  ;;  %v8888_v47 = vld [vmem:[%s11565_s10 + $0x4e0] ss:$12 sps:$4 sm:$0xff]   ;;  %v8893_v24 = vld [vmem:[%s11565_s10 + $0x4fc] ss:$12 sps:$4 sm:$0xff]  }
 0x95f   : > { %7812 = vmatprep.subr.bf16.mxu0 %v8844_v26  ;;  %6559 = vmatprep.subr.bf16.mxu1 %v8847_v3  ;;  %v8891_v26 = vld [vmem:[%s11565_s10 + $0x4f8] ss:$12 sps:$4 sm:$0xff]   ;;  %v8896_v3 = vld [vmem:[%s11565_s10 + $0x514] ss:$12 sps:$4 sm:$0xff]  }
 0x962   : > { %v7728_v30 = vpop.f32.mrb[52].mxu1  ;;  %7813 = vmatpush3.bf16.msra.mxu0 %v8848_v6  ;;  %6560 = vmatpush1.bf16.msra.mxu1 %v8845_v17  ;;  %v8894_v17 = vld [vmem:[%s11565_s10 + $0x510] ss:$12 sps:$4 sm:$0xff]   ;;  %v8899_v6 = vld [vmem:[%s11565_s10 + $0x52c] ss:$12 sps:$4 sm:$0xff]  }
 0x963   : > { %v7729_v37 = vpop.f32.mrb[53].mxu1  ;;  %7814 = vmatprep.subr.bf16.mxu0 %v8849_v49  ;;  %6561 = vmatprep.subr.bf16.mxu1 %v8852_v28  ;;  %v8897_v49 = vld [vmem:[%s11565_s10 + $0x528] ss:$12 sps:$4 sm:$0xff]   ;;  %v8902_v28 = vld [vmem:[%s11565_s10 + $0x544] ss:$12 sps:$4 sm:$0xff]  }
 0x964   : > { %v7730_v40 = vadd.f32 %v7729_v37, %v7728_v30  ;;  %v7731_v2 = vpop.f32.mrb[54].mxu1  ;;  %v8900_v30 = vld [vmem:[%s11565_s10 + $0x540] ss:$12 sps:$4 sm:$0xff]  }
 0x965   : > { %v7732_v51 = vpop.f32.mrb[55].mxu1  ;;  %v8908_v37 = vld [vmem:[%s11565_s10 + $0x574] ss:$12 sps:$4 sm:$0xff]  }
 0x966   : > { %v7733_v55 = vadd.f32 %v7732_v51, %v7731_v2  ;;  %7815 = vmatpush3.bf16.msra.mxu0 %v8853_v36  ;;  %6562 = vmatpush1.bf16.msra.mxu1 %v8850_v32  ;;  %v5042_v25 = vadd.f32 %v7730_v40, %v7286_v41  ;;  %v8905_v32 = vld [vmem:[%s11565_s10 + $0x55c] ss:$12 sps:$4 sm:$0xff]   ;;  %v8903_v36 = vld [vmem:[%s11565_s10 + $0x558] ss:$12 sps:$4 sm:$0xff]   ;;  %v8912_v51 = vld [vmem:[%s11565_s10 + $0x5a0] ss:$12 sps:$4 sm:$0xff]  }
 0x967   : > { %7816 = vmatprep.subr.bf16.mxu0 %v8854_v33  ;;  %6563 = vmatprep.subr.bf16.mxu1 %v8857_v61  ;;  %v8906_v33 = vld [vmem:[%s11565_s10 + $0x570] ss:$12 sps:$4 sm:$0xff]   ;;  %v8911_v61 = vld [vmem:[%s11565_s10 + $0x58c] ss:$12 sps:$4 sm:$0xff]   ;;  %v8909_v40 = vld [vmem:[%s11565_s10 + $0x588] ss:$12 sps:$4 sm:$0xff]  }
 0x968   : > { %v5045_v59 = vadd.f32 %v7733_v55, %v7286_v41  ;;  %v8914_v2 = vld [vmem:[%s11565_s10 + $0x5a4] ss:$12 sps:$4 sm:$0xff]   ;;  %v8917_v55 = vld [vmem:[%s11565_s10 + $0x5bc] ss:$12 sps:$4 sm:$0xff]  }
 0x969   : > { %v8915_v41 = vld [vmem:[%s11565_s10 + $0x5b8] ss:$12 sps:$4 sm:$0xff]  }
 0x96a   : > { %v5082_v39 = vpop.f32.mrb[56].mxu1  ;;  %7817 = vmatpush3.bf16.msra.mxu0 %v8858_v56  ;;  %6564 = vmatpush1.bf16.msra.mxu1 %v8855_v53  ;;  %v8920_v53 = vld [vmem:[%s11565_s10 + $0x5d4] ss:$12 sps:$4 sm:$0xff]   ;;  %v8918_v56 = vld [vmem:[%s11565_s10 + $0x5d0] ss:$12 sps:$4 sm:$0xff]  }
 0x96b   : > { %v5083_v0 = vadd.f32 %v5082_v39, %v5042_v25  ;;  %v7879_v58 = vpop.f32.mrb[57].mxu1  ;;  %7881 = vmatprep.subr.bf16.mxu0 %v9041_v13  ;;  %6565 = vmatprep.subr.bf16.mxu1 %v8861_v57  ;;  %v8923_v57 = vld [vmem:[%s11565_s10 + $0x5ec] ss:$12 sps:$4 sm:$0xff]   ;;  %v8921_v25 = vld [vmem:[%s11565_s10 + $0x5e8] ss:$12 sps:$4 sm:$0xff]  }
 0x96c   : > { %v5085_v46 = vpop.f32.mrb[58].mxu1  ;;  %v8926_v39 = vld [vmem:[%s11565_s10 + $0x604] ss:$12 sps:$4 sm:$0xff]  }
 0x96d   : > { %v5086_v50 = vadd.f32 %v5085_v46, %v5045_v59  ;;  %v7880_v52 = vpop.f32.mrb[59].mxu1  ;;  %6828 = vmatmul.mubr.bf16.vlgmr.msra.gmra.mrb[56].mxu0 %v11229_v60  ;;  %v5097_v5 = vmax.f32 %v5083_v0, 0.0  ;;  %v8927_v0 = vld [vmem:[%s11565_s10 + $0x618] ss:$12 sps:$4 sm:$0xff]  }
 0x96e   : > { %7882 = vmatpush3.bf16.msra.mxu0 %v8862_v54  ;;  %6566 = vmatpush1.bf16.msra.mxu1 %v8859_v34  ;;  %v8924_v34 = vld [vmem:[%s11565_s10 + $0x600] ss:$12 sps:$4 sm:$0xff]   ;;  %v8929_v54 = vld [vmem:[%s11565_s10 + $0x61c] ss:$12 sps:$4 sm:$0xff]  }
 0x96f   : > { %v5106_v7 = vmax.f32 %v5086_v50, 0.0  ;;  %7883 = vmatprep.subr.bf16.mxu0 %v9041_v13  ;;  %6567 = vmatprep.subr.bf16.mxu1 %v8865_v31 }
 0x970   : > { %7885 = vmatprep.mubr.msk.bf16.mxu0 %vm9042_vm2, %v9041_v13  ;;  %v8870_v13 = vld [vmem:[%s11565_s10 + $0x450] ss:$12 sps:$4 sm:$0xff]  }
 0x971   : > { %v11354_v9 = vpack.c.bf16 %v5106_v7, %v5097_v5 }
 0x972   : > { %7884 = vmatpush3.bf16.msra.mxu0 %v8866_v4  ;;  %6568 = vmatpush1.bf16.msra.mxu1 %v8863_v62 }
 0x973   : > { %6569 = vmatprep.subr.bf16.mxu1 %v8869_v8 }
 0x975   : > { %7886 = vmatmul.mubr.msk.bf16.vlgmr.msra.gmra.mrb[60].mxu0 %vm6453_vm6, %v11354_v9 }
 0x976   : > { %6570 = vmatpush1.bf16.msra.mxu1 %v8867_v10 }
 0x977   : > { %6571 = vmatprep.subr.bf16.mxu1 %v8872_v11 }
 0x97a   : > { %6572 = vmatpush1.bf16.msra.mxu1 %v8870_v13 }
 0x97b   : > { %6573 = vmatprep.subr.bf16.mxu1 %v8875_v12 }
 0x97e   : > { %6574 = vmatpush1.bf16.msra.mxu1 %v8873_v43 }
 0x97f   : > { %6586 = vmatprep.subr.bf16.mxu1 %v8878_v23 }
 0x981   : > { %6576 = vmatmul.mubr.bf16.vlgmr.msra.gmra.mrb[60].mxu1 %v11227_v42  ;;  %v8887_v42 = vld [vmem:[%s11565_s10 + $0x4cc] ss:$12 sps:$4 sm:$0xff]  }
 0x982   : > { %6587 = vmatpush1.bf16.msra.mxu1 %v8876_v14  ;;  %6618 = vmatprep.mubr.bf16.mxu1 %v11231_v63  ;;  %v8885_v63 = vld [vmem:[%s11565_s10 + $0x4c8] ss:$12 sps:$4 sm:$0xff]  }
 0x983   : > { %6588 = vmatprep.subr.bf16.mxu1 %v8881_v15 }
 0x986   : > { %6589 = vmatpush1.bf16.msra.mxu1 %v8879_v16 }
 0x987   : > { %6590 = vmatprep.subr.bf16.mxu1 %v8884_v20 }
 0x98a   : > { %6591 = vmatpush1.bf16.msra.mxu1 %v8882_v22 }
 0x98b   : > { %6592 = vmatprep.subr.bf16.mxu1 %v8887_v42 }
 0x98e   : > { %6593 = vmatpush1.bf16.msra.mxu1 %v8885_v63 }
 0x98f   : > { %6594 = vmatprep.subr.bf16.mxu1 %v8890_v48 }
 0x992   : > { %6595 = vmatpush1.bf16.msra.mxu1 %v8888_v47 }
 0x993   : > { %6596 = vmatprep.subr.bf16.mxu1 %v8893_v24 }
 0x996   : > { %6597 = vmatpush1.bf16.msra.mxu1 %v8891_v26 }
 0x997   : > { %6598 = vmatprep.subr.bf16.mxu1 %v8896_v3 }
 0x99a   : > { %6599 = vmatpush1.bf16.msra.mxu1 %v8894_v17 }
 0x99b   : > { %6600 = vmatprep.subr.bf16.mxu1 %v8899_v6 }
 0x99e   : > { %6601 = vmatpush1.bf16.msra.mxu1 %v8897_v49 }
 0x99f   : > { %6602 = vmatprep.subr.bf16.mxu1 %v8902_v28 }
 0x9a2   : > { %6603 = vmatpush1.bf16.msra.mxu1 %v8900_v30 }
 0x9a3   : > { %6604 = vmatprep.subr.bf16.mxu1 %v8905_v32 }
 0x9a6   : > { %6605 = vmatpush1.bf16.msra.mxu1 %v8903_v36 }
 0x9a7   : > { %6606 = vmatprep.subr.bf16.mxu1 %v8908_v37 }
 0x9aa   : > { %6607 = vmatpush1.bf16.msra.mxu1 %v8906_v33 }
 0x9ab   : > { %6608 = vmatprep.subr.bf16.mxu1 %v8911_v61 }
 0x9ae   : > { %6609 = vmatpush1.bf16.msra.mxu1 %v8909_v40 }
 0x9af   : > { %6610 = vmatprep.subr.bf16.mxu1 %v8914_v2 }
 0x9b2   : > { %6611 = vmatpush1.bf16.msra.mxu1 %v8912_v51 }
 0x9b3   : > { %6612 = vmatprep.subr.bf16.mxu1 %v8917_v55 }
 0x9b6   : > { %6613 = vmatpush1.bf16.msra.mxu1 %v8915_v41 }
 0x9b7   : > { %6614 = vmatprep.subr.bf16.mxu1 %v8920_v53 }
 0x9ba   : > { %6615 = vmatpush1.bf16.msra.mxu1 %v8918_v56 }
 0x9bb   : > { %6616 = vmatprep.subr.bf16.mxu1 %v8923_v57 }
 0x9be   : > { %6617 = vmatpush1.bf16.msra.mxu1 %v8921_v25 }
 0x9bf   : > { %6629 = vmatprep.subr.bf16.mxu1 %v8926_v39 }
 0x9c1   : > { %6619 = vmatmul.mubr.bf16.vlgmr.msra.gmra.mrb[60].mxu1 %v11229_v60  ;;  %v5380_v60 = vld [vmem:[%s11566_s11] sm:$0x7] }
 0x9c2   : > { %6630 = vmatpush1.bf16.msra.mxu1 %v8924_v34  ;;  %6661 = vmatprep.mubr.bf16.mxu1 %v9040_v1  ;;  %v5393_v62 = vrot.slane %v5380_v60, %v9317_v19  ;;  %v5385_v61 = vrot.slane %v5380_v60, %v9323_v21  ;;  %v5389_v40 = vrot.slane %v5380_v60, %v9314_v18 }
 0x9c3   : > { %6631 = vmatprep.subr.bf16.mxu1 %v8929_v54 }
 0x9c6   : > { %6632 = vmatpush1.bf16.msra.mxu1 %v8927_v0 }
 0x9cd   : > { %7647 = vmatmul.mubr.msk.bf16.vlgmr.msra.gmra.mrb[60].mxu1 %vm6453_vm6, %v11354_v9 }
 0x9d4   : > { %v7752_v58 = vpop.f32.mrb[44].mxu0 }
 0x9d5   : > { %v7753_v59 = vpop.f32.mrb[45].mxu0 }
 0x9d6   : > { %v7754_v31 = vadd.f32 %v7753_v59, %v7752_v58  ;;  %v7755_v46 = vpop.f32.mrb[46].mxu0 }
 0x9d7   : > { %v7756_v50 = vpop.f32.mrb[47].mxu0 }
 0x9d8   : > { %v7757_v52 = vadd.f32 %v7756_v50, %v7755_v46  ;;  %v6707_v1 = vadd.f32 %v7754_v31, %v5393_v62 }
 0x9da   : > { %v6710_v11 = vadd.f32 %v7757_v52, %v5393_v62 }
 0x9f4   : > { %v7774_v4 = vpop.f32.mrb[48].mxu0 }
 0x9f5   : > { %v7775_v5 = vpop.f32.mrb[49].mxu0 }
 0x9f6   : > { %v7776_v7 = vadd.f32 %v7775_v5, %v7774_v4  ;;  %v7777_v8 = vpop.f32.mrb[50].mxu0 }
 0x9f7   : > { %v7778_v10 = vpop.f32.mrb[51].mxu0 }
 0x9f8   : > { %v6748_v9 = vadd.f32 %v7776_v7, %v6707_v1  ;;  %v7779_v13 = vadd.f32 %v7778_v10, %v7777_v8 }
 0x9fa   : > { %v6751_v12 = vadd.f32 %v7779_v13, %v6710_v11 }
 0xa20   : > { %v7796_v43 = vpop.f32.mrb[52].mxu0 }
 0xa21   : > { %v7797_v23 = vpop.f32.mrb[53].mxu0 }
 0xa22   : > { %v7798_v14 = vadd.f32 %v7797_v23, %v7796_v43  ;;  %v7799_v15 = vpop.f32.mrb[54].mxu0 }
 0xa23   : > { %v7800_v16 = vpop.f32.mrb[55].mxu0 }
 0xa24   : > { %v6789_v20 = vadd.f32 %v7798_v14, %v6748_v9  ;;  %v7801_v22 = vadd.f32 %v7800_v16, %v7799_v15 }
 0xa26   : > { %v6792_v19 = vadd.f32 %v7801_v22, %v6751_v12 }
 0xa40   : > { %v7818_v42 = vpop.f32.mrb[56].mxu0 }
 0xa41   : > { %v7819_v63 = vpop.f32.mrb[57].mxu0 }
 0xa42   : > { %v7820_v48 = vadd.f32 %v7819_v63, %v7818_v42  ;;  %v7821_v47 = vpop.f32.mrb[58].mxu0 }
 0xa43   : > { %v7822_v24 = vpop.f32.mrb[59].mxu0 }
 0xa44   : > { %v7823_v26 = vadd.f32 %v7822_v24, %v7821_v47  ;;  %v6830_v3 = vadd.f32 %v7820_v48, %v6789_v20 }
 0xa46   : > { %v6833_v17 = vadd.f32 %v7823_v26, %v6792_v19 }
 0xa48   : > { %v6870_v6 = vpop.f32.mrb[60].mxu0 }
 0xa49   : > { %v6871_v49 = vadd.f32 %v6870_v6, %v6830_v3  ;;  %v7887_v28 = vpop.f32.mrb[61].mxu0 }
 0xa4a   : > { %v6873_v30 = vpop.f32.mrb[62].mxu0 }
 0xa4b   : > { %v6879_v32 = vadd.f32 %v6871_v49, %v10278_v27  ;;  %v6874_v36 = vadd.f32 %v6873_v30, %v6833_v17  ;;  %v7888_v37 = vpop.f32.mrb[63].mxu0 }
 0xa4d   : > { %6885 = vst.msk [vmem:[%s406_s16 + $0x10] sm:$0xff] %vm422_vm0, %v6879_v32  ;;  %v6882_v33 = vadd.f32 %v6874_v36, %v10287_v35 }
 0xa4f   : > { %6888 = vst.msk [vmem:[%s406_s16 + $0x28] sm:$0xff] %vm422_vm0, %v6882_v33 }
 0xaa0   : > { %v6663_v2 = vpop.f32.mrb[60].mxu1 }
 0xaa1   : > { %v7921_v51 = vadd.f32 %v6663_v2, %v5385_v61  ;;  %v6665_v55 = vpop.f32.mrb[61].mxu1 }
 0xaa2   : > { %v7922_v41 = vadd.f32 %v6665_v55, %v5389_v40  ;;  %v6667_v27 = vpop.f32.mrb[62].mxu1 }
 0xaa3   : > { %v6877_v53 = vadd.f32 %v7921_v51, %v10281_v38  ;;  %v7923_v56 = vadd.f32 %v6667_v27, %v5385_v61  ;;  %v6669_v57 = vpop.f32.mrb[63].mxu1 }
 0xaa4   : > { %v6878_v35 = vadd.f32 %v7922_v41, %v10284_v29  ;;  %v7924_v25 = vadd.f32 %v6669_v57, %v5389_v40 }
 0xaa5   : > { %6883 = vst [vmem:[%s406_s16] sm:$0xff] %v6877_v53  ;;  %v6880_v21 = vadd.f32 %v7923_v56, %v10290_v44 }
 0xaa6   : > { %6884 = vst [vmem:[%s406_s16 + $0x8] sm:$0xff] %v6878_v35  ;;  %v6881_v18 = vadd.f32 %v7924_v25, %v10293_v45 }
 0xaa7   : > { %6886 = vst [vmem:[%s406_s16 + $0x18] sm:$0xff] %v6880_v21 }
 0xaa8   : > { %6887 = vst [vmem:[%s406_s16 + $0x20] sm:$0xff] %v6881_v18 }
 0xaa9   : > { %8989 = shalt.err (!%p8986_p3)
}
 0xaaa   : > { %s8990_s15 = scalar_lea.hbm %s11507_s20, 768  ;;  %s8994_s0 = scalar_lea.hbm %s11567_s12, 1536 }
 0xaab   : > { %p8991_p4 = scmp.ne.s32.totalorder %s11507_s20, %s8990_s15  ;;  %p8995_p9 = scmp.lt.u32.totalorder %s11507_s20, %s11567_s12 }
 0xaac   : > { %p8996_p10 = scmp.lt.u32.totalorder %s8994_s0, %s8990_s15  ;;  %p8998_p12 = scmp.lt.u32.totalorder %s8990_s15, %s11507_s20 }
 0xaad   : > { %p8992_p7 = pnand %p8991_p4, %p9150_p5 }
 0xaae   : > { %p8997_p11 = por %p8996_p10, %p8995_p9 }
 0xaaf   : > { %p8993_p8 = pneg %p8992_p7 }
 0xab0   : > { %p8999_p13 = por %p8998_p12, %p8997_p11 }
 0xab2   : > { %p9000_p0 = pnand %p8999_p13, %p8993_p8 }
 0xab4   : > { %9003 = shalt.err (!%p9000_p0)
}
 0xab5   : > { %s9045_s26 = smov 384   ;;  %s9046_s29 = smov 24  }
 0xab6   : > { %7976 = dma.vmem_to_hbm [thread:$0]  (%p9150_p5), %s11510_s18, 768, %s11507_s20, %s11514_s25, %s9045_s26, %s9045_s26, %s9046_s29  }
 0xab7 PF: > { %p7982_p1 = scmp.ge.s32.totalorder %s9038_s24, 2  ;;  %s6918_s19 = sand.u32 1, %s9026_s21  }
 0xab8   : > { %s6919_s15 = scalar_lea.sflag [#allocation4], %s6918_s19 }
 0xab9   : > { %p7979_p2 = pnand %p7982_p1, %p9154_p6 }
 0xabb   : > { %9021 = dma.done.wait (!%p7979_p2), %s6919_s15, 768  }
 0xabc   : > { %9023 = vsyncadd (!%p7979_p2), %s6919_s15, 4294966528  ;;  %s11573_s16 = sld [smem:[#allocation6_spill]]  ;;  %p22_p3 = scmp.ge.s32.totalorder %s9137_s27, 4  }
 0xabd   : > { %s11574_s21 = smov %s9030_s22  ;;  %s11575_s22 = smov %s9034_s23 }
 0xabe   : > { %s11577_s24 = smov %s9137_s27  ;;  %24 = sbr.rel (!%p22_p3) target bundleno = 5 (0x5), region = 103 }
 0xac2   : > { %s11576_s23 = smov %s11573_s16 }
 0xac5   :  { %6924 = vsyncpa [#allocation4], 1 }
 0xac6   :  { %6926 = vsyncpa [#allocation4 + $0x1], 1 }

</bundles_post_ra>
